<compile_context>
chip_gen: v5e
topology: v5e:2x2
jax: 0.10.0
libtpu: 0.0.40
codegen_flags: <defaults>
</compile_context>

<pallas_src>
import jax
import jax.numpy as jnp
from jax import lax
from jax.experimental import pallas as pl
from jax.experimental.pallas import tpu as pltpu

INPUT_SIZE = 28
HIDDEN_SIZE = 64
OUT_FEATURES = 10

HP = 128          # per-gate width padded to one vreg lane span
GP = 4 * HP       # 512: padded concat of [i, f, g, o]
IP = 128          # input size padded to one lane span (K dim of x @ W_ih)
OUTP = 128        # lane-dense padded logits width


def lstm_kernel(x_ref, wih_ref, bias_ref, whh_ref, wout_ref, bout_ref, out_ref):
    """Whole LSTM recurrence + output projection in one grid step.

    x_ref   : (T, B, IP)  time-major input, lane-padded (cols >= 28 are 0)
    wih_ref : (IP, GP)    padded input->gate weights   (zero-filled padding)
    bias_ref: (1, GP)     padded b_ih + b_hh
    whh_ref : (HP, GP)    padded recurrent weights     (zero-filled padding)
    wout_ref: (HP, OUTP)  padded output projection
    bout_ref: (1, OUTP)   padded output bias
    out_ref : (B, OUTP)   lane-dense logits (sliced to 10 in the wrapper)
    """
    T = x_ref.shape[0]

    def in_proj(t):
        # Depends only on x -> off the serial h-chain; scheduler may hoist it.
        return (jnp.dot(x_ref[t], wih_ref[...],
                        preferred_element_type=jnp.float32)
                + bias_ref[...])

    # ---- peeled timestep 0 (h0 = c0 = 0: no h @ W_hh, no f-gate term) ----
    g0 = in_proj(0)
    i0 = jax.nn.sigmoid(g0[:, 0 * HP:1 * HP])
    gg0 = jnp.tanh(g0[:, 2 * HP:3 * HP])
    o0 = jax.nn.sigmoid(g0[:, 3 * HP:4 * HP])
    c1 = i0 * gg0                      # padded lanes: 0.5 * 0 = 0
    h1 = o0 * jnp.tanh(c1)             # padded lanes stay 0

    # ---- steps 1 .. T-1, h/c carried in vregs ----
    def step(t, carry):
        h, c = carry
        gates = in_proj(t) + jnp.dot(h, whh_ref[...],
                                     preferred_element_type=jnp.float32)
        # 128-lane-aligned gate slices, PyTorch LSTM gate order [i, f, g, o].
        i_g = jax.nn.sigmoid(gates[:, 0 * HP:1 * HP])
        f_g = jax.nn.sigmoid(gates[:, 1 * HP:2 * HP])
        g_g = jnp.tanh(gates[:, 2 * HP:3 * HP])
        o_g = jax.nn.sigmoid(gates[:, 3 * HP:4 * HP])
        c_new = f_g * c + i_g * g_g
        h_new = o_g * jnp.tanh(c_new)
        return (h_new, c_new)

    # Full unroll is fine at T=8; cap the unroll factor if T is ever scaled up.
    h_fin, _ = lax.fori_loop(1, T, step, (h1, c1), unroll=True)

    logits = (jnp.dot(h_fin, wout_ref[...],
                      preferred_element_type=jnp.float32)
              + bout_ref[...])
    out_ref[...] = logits.astype(out_ref.dtype)


def _pad_gate_cols(w, h, hp):
    """w: (rows, 4h) -> (rows, 4*hp): gate g goes to cols [g*hp, g*hp+h), rest 0."""
    rows = w.shape[0]
    out = jnp.zeros((rows, 4 * hp), w.dtype)
    for g in range(4):
        out = out.at[:, g * hp:g * hp + h].set(w[:, g * h:(g + 1) * h])
    return out


def prepare_params(params):
    """One-time weight padding/transposition (cache the result across calls).

    NOTE: the kernel relies on all padded rows/cols/lanes here being exactly 0
    so that the padded lanes of h/c remain 0 through the recurrence.
    """
    H, I = HIDDEN_SIZE, INPUT_SIZE
    wih_p = jnp.zeros((IP, GP), jnp.float32).at[:I, :].set(
        _pad_gate_cols(params["w_ih"].T, H, HP))                         # (IP, GP)
    bias_p = _pad_gate_cols(
        (params["b_ih"] + params["b_hh"])[None, :], H, HP)               # (1, GP)
    whh_p = jnp.zeros((HP, GP), jnp.float32).at[:H, :].set(
        _pad_gate_cols(params["w_hh"].T, H, HP))                         # (HP, GP)
    wout_p = jnp.zeros((HP, OUTP), jnp.float32).at[:H, :OUT_FEATURES].set(
        params["w_out"].T)                                               # (HP, OUTP)
    bout_p = jnp.zeros((1, OUTP), jnp.float32).at[:, :OUT_FEATURES].set(
        params["b_out"])                                                 # (1, OUTP)
    return {"wih_p": wih_p, "bias_p": bias_p, "whh_p": whh_p,
            "wout_p": wout_p, "bout_p": bout_p}


@jax.jit
def rnn_forward(x, padded_params):
    """x: (B, T, INPUT_SIZE) float32, batch_first (PyTorch convention)."""
    B, T, I = x.shape
    pp = padded_params

    # batch_first -> time-major, lane-pad the input feature dim to IP=128.
    x_tm = jnp.transpose(x, (1, 0, 2))                                   # (T, B, I)
    x_p = jnp.zeros((T, B, IP), jnp.float32).at[:, :, :I].set(x_tm)      # (T, B, IP)

    out = pl.pallas_call(
        lstm_kernel,
        out_shape=jax.ShapeDtypeStruct((B, OUTP), jnp.float32),
        grid_spec=pltpu.PrefetchScalarGridSpec(
            num_scalar_prefetch=0,
            grid=(1,),
            in_specs=[
                pl.BlockSpec((T, B, IP), lambda i: (0, 0, 0)),   # x (time-major)
                pl.BlockSpec((IP, GP), lambda i: (0, 0)),        # W_ih^T (padded)
                pl.BlockSpec((1, GP), lambda i: (0, 0)),         # b_ih + b_hh
                pl.BlockSpec((HP, GP), lambda i: (0, 0)),        # W_hh^T (padded)
                pl.BlockSpec((HP, OUTP), lambda i: (0, 0)),      # W_out^T (padded)
                pl.BlockSpec((1, OUTP), lambda i: (0, 0)),       # b_out (padded)
            ],
            out_specs=pl.BlockSpec((B, OUTP), lambda i: (0, 0)),
        ),
        compiler_params=pltpu.CompilerParams(
            dimension_semantics=("arbitrary",)),
    )(x_p, pp["wih_p"], pp["bias_p"], pp["whh_p"], pp["wout_p"], pp["bout_p"])
    return out[:, :OUT_FEATURES]


def rnn_reference(x, params):
    """Pure-JAX reference matching torch.nn.LSTM(batch_first) + Linear."""
    B, T, I = x.shape
    H = HIDDEN_SIZE
    h = jnp.zeros((B, H), jnp.float32)
    c = jnp.zeros((B, H), jnp.float32)
    bias = params["b_ih"] + params["b_hh"]
    for t in range(T):
        gates = x[:, t, :] @ params["w_ih"].T + h @ params["w_hh"].T + bias
        i_g = jax.nn.sigmoid(gates[:, 0 * H:1 * H])
        f_g = jax.nn.sigmoid(gates[:, 1 * H:2 * H])
        g_g = jnp.tanh(gates[:, 2 * H:3 * H])
        o_g = jax.nn.sigmoid(gates[:, 3 * H:4 * H])
        c = f_g * c + i_g * g_g
        h = o_g * jnp.tanh(c)
    return h @ params["w_out"].T + params["b_out"]


def init_params(key):
    """Deterministic synthetic parameters with PyTorch LSTM/Linear shapes."""
    H, I = HIDDEN_SIZE, INPUT_SIZE
    ks = jax.random.split(key, 6)
    bound = 1.0 / jnp.sqrt(H)
    u = lambda k, s: jax.random.uniform(k, s, jnp.float32, -bound, bound)
    return {
        "w_ih": u(ks[0], (4 * H, I)),          # torch weight_ih_l0
        "w_hh": u(ks[1], (4 * H, H)),          # torch weight_hh_l0
        "b_ih": u(ks[2], (4 * H,)),
        "b_hh": u(ks[3], (4 * H,)),
        "w_out": u(ks[4], (OUT_FEATURES, H)),  # torch Linear weight
        "b_out": u(ks[5], (OUT_FEATURES,)),
    }


if __name__ == "__main__":
    key = jax.random.PRNGKey(0)
    kx, kp = jax.random.split(key)
    B, T = 2, 8
    x = jax.random.normal(kx, (B, T, INPUT_SIZE), jnp.float32)
    params = init_params(kp)
    padded_params = prepare_params(params)   # one-time weight prep, cached

    out = rnn_forward(x, padded_params)
    out = jax.block_until_ready(out)

    ref = rnn_reference(x, params)
    assert out.shape == (B, OUT_FEATURES)
    assert jnp.allclose(out, ref, atol=2e-3, rtol=2e-3), (
        f"max abs err {jnp.max(jnp.abs(out - ref))}")
    print("KERNEL_OK")
</pallas_src>

<mosaic_0001>
module attributes {stable_mosaic.version = 11 : i64} {
  func.func @lstm_kernel(%arg0: i32, %arg1: memref<8x2x128xf32, #tpu.memory_space<vmem>>, %arg2: memref<128x512xf32, #tpu.memory_space<vmem>>, %arg3: memref<1x512xf32, #tpu.memory_space<vmem>>, %arg4: memref<128x512xf32, #tpu.memory_space<vmem>>, %arg5: memref<128x128xf32, #tpu.memory_space<vmem>>, %arg6: memref<1x128xf32, #tpu.memory_space<vmem>>, %arg7: memref<2x128xf32, #tpu.memory_space<vmem>>) attributes {dimension_semantics = [#tpu.dimension_semantics<arbitrary>], iteration_bounds = array<i64: 1>, scalar_prefetch = 0 : i64, scratch_operands = 0 : i64, tpu.core_type = #tpu.core_type<tc>, window_params = [{pipeline_mode = #tpu.pipeline_mode<synchronous>, transform_indices = @transform_0, window_bounds = array<i64: 8, 2, 128>}, {pipeline_mode = #tpu.pipeline_mode<synchronous>, transform_indices = @transform_1, window_bounds = array<i64: 128, 512>}, {pipeline_mode = #tpu.pipeline_mode<synchronous>, transform_indices = @transform_2, window_bounds = array<i64: 1, 512>}, {pipeline_mode = #tpu.pipeline_mode<synchronous>, transform_indices = @transform_3, window_bounds = array<i64: 128, 512>}, {pipeline_mode = #tpu.pipeline_mode<synchronous>, transform_indices = @transform_4, window_bounds = array<i64: 128, 128>}, {pipeline_mode = #tpu.pipeline_mode<synchronous>, transform_indices = @transform_5, window_bounds = array<i64: 1, 128>}, {pipeline_mode = #tpu.pipeline_mode<synchronous>, transform_indices = @transform_6, window_bounds = array<i64: 2, 128>}]} {
    %c0 = arith.constant 0 : index
    %c0_0 = arith.constant 0 : index
    %c0_1 = arith.constant 0 : index
    %0 = vector.load %arg1[%c0, %c0_0, %c0_1] : memref<8x2x128xf32, #tpu.memory_space<vmem>>, vector<1x2x128xf32>
    %1 = vector.shape_cast %0 : vector<1x2x128xf32> to vector<2x128xf32>
    %c0_2 = arith.constant 0 : index
    %c0_3 = arith.constant 0 : index
    %2 = vector.load %arg2[%c0_2, %c0_3] : memref<128x512xf32, #tpu.memory_space<vmem>>, vector<128x512xf32>
    %cst = arith.constant dense<0.000000e+00> : vector<2x512xf32>
    %3 = tpu.matmul %1, %2, %cst {dimension_numbers = #tpu.dot_dimension_numbers<[1], [0], [0], [1], [0, 0, 1, 1], [], []>} : vector<2x128xf32>, vector<128x512xf32>, vector<2x512xf32> -> vector<2x512xf32>
    %c0_4 = arith.constant 0 : index
    %c0_5 = arith.constant 0 : index
    %4 = vector.load %arg3[%c0_4, %c0_5] : memref<1x512xf32, #tpu.memory_space<vmem>>, vector<1x512xf32>
    %5 = vector.broadcast %4 : vector<1x512xf32> to vector<2x512xf32>
    %6 = arith.addf %3, %5 : vector<2x512xf32>
    %7 = vector.extract_strided_slice %6 {offsets = [0, 0], sizes = [2, 128], strides = [1, 1]} : vector<2x512xf32> to vector<2x128xf32>
    %8 = arith.negf %7 : vector<2x128xf32>
    %9 = math.exp %8 : vector<2x128xf32>
    %cst_6 = arith.constant 1.000000e+00 : f32
    %10 = vector.broadcast %cst_6 : f32 to vector<2x128xf32>
    %11 = arith.addf %10, %9 : vector<2x128xf32>
    %12 = arith.divf %10, %11 : vector<2x128xf32>
    %13 = vector.extract_strided_slice %6 {offsets = [0, 256], sizes = [2, 128], strides = [1, 1]} : vector<2x512xf32> to vector<2x128xf32>
    %14 = math.tanh %13 : vector<2x128xf32>
    %15 = vector.extract_strided_slice %6 {offsets = [0, 384], sizes = [2, 128], strides = [1, 1]} : vector<2x512xf32> to vector<2x128xf32>
    %16 = arith.negf %15 : vector<2x128xf32>
    %17 = math.exp %16 : vector<2x128xf32>
    %cst_7 = arith.constant 1.000000e+00 : f32
    %18 = vector.broadcast %cst_7 : f32 to vector<2x128xf32>
    %19 = arith.addf %18, %17 : vector<2x128xf32>
    %20 = arith.divf %18, %19 : vector<2x128xf32>
    %21 = arith.mulf %12, %14 : vector<2x128xf32>
    %22 = math.tanh %21 : vector<2x128xf32>
    %23 = arith.mulf %20, %22 : vector<2x128xf32>
    %c1_i32 = arith.constant 1 : i32
    %24 = arith.index_cast %c1_i32 : i32 to index
    %c0_8 = arith.constant 0 : index
    %c0_9 = arith.constant 0 : index
    %25 = vector.load %arg1[%24, %c0_8, %c0_9] : memref<8x2x128xf32, #tpu.memory_space<vmem>>, vector<1x2x128xf32>
    %26 = vector.shape_cast %25 : vector<1x2x128xf32> to vector<2x128xf32>
    %c0_10 = arith.constant 0 : index
    %c0_11 = arith.constant 0 : index
    %27 = vector.load %arg2[%c0_10, %c0_11] : memref<128x512xf32, #tpu.memory_space<vmem>>, vector<128x512xf32>
    %cst_12 = arith.constant dense<0.000000e+00> : vector<2x512xf32>
    %28 = tpu.matmul %26, %27, %cst_12 {dimension_numbers = #tpu.dot_dimension_numbers<[1], [0], [0], [1], [0, 0, 1, 1], [], []>} : vector<2x128xf32>, vector<128x512xf32>, vector<2x512xf32> -> vector<2x512xf32>
    %c0_13 = arith.constant 0 : index
    %c0_14 = arith.constant 0 : index
    %29 = vector.load %arg3[%c0_13, %c0_14] : memref<1x512xf32, #tpu.memory_space<vmem>>, vector<1x512xf32>
    %30 = vector.broadcast %29 : vector<1x512xf32> to vector<2x512xf32>
    %31 = arith.addf %28, %30 : vector<2x512xf32>
    %c0_15 = arith.constant 0 : index
    %c0_16 = arith.constant 0 : index
    %32 = vector.load %arg4[%c0_15, %c0_16] : memref<128x512xf32, #tpu.memory_space<vmem>>, vector<128x512xf32>
    %cst_17 = arith.constant dense<0.000000e+00> : vector<2x512xf32>
    %33 = tpu.matmul %23, %32, %cst_17 {dimension_numbers = #tpu.dot_dimension_numbers<[1], [0], [0], [1], [0, 0, 1, 1], [], []>} : vector<2x128xf32>, vector<128x512xf32>, vector<2x512xf32> -> vector<2x512xf32>
    %34 = arith.addf %31, %33 : vector<2x512xf32>
    %35 = vector.extract_strided_slice %34 {offsets = [0, 0], sizes = [2, 128], strides = [1, 1]} : vector<2x512xf32> to vector<2x128xf32>
    %36 = arith.negf %35 : vector<2x128xf32>
    %37 = math.exp %36 : vector<2x128xf32>
    %cst_18 = arith.constant 1.000000e+00 : f32
    %38 = vector.broadcast %cst_18 : f32 to vector<2x128xf32>
    %39 = arith.addf %38, %37 : vector<2x128xf32>
    %40 = arith.divf %38, %39 : vector<2x128xf32>
    %41 = vector.extract_strided_slice %34 {offsets = [0, 128], sizes = [2, 128], strides = [1, 1]} : vector<2x512xf32> to vector<2x128xf32>
    %42 = arith.negf %41 : vector<2x128xf32>
    %43 = math.exp %42 : vector<2x128xf32>
    %cst_19 = arith.constant 1.000000e+00 : f32
    %44 = vector.broadcast %cst_19 : f32 to vector<2x128xf32>
    %45 = arith.addf %44, %43 : vector<2x128xf32>
    %46 = arith.divf %44, %45 : vector<2x128xf32>
    %47 = vector.extract_strided_slice %34 {offsets = [0, 256], sizes = [2, 128], strides = [1, 1]} : vector<2x512xf32> to vector<2x128xf32>
    %48 = math.tanh %47 : vector<2x128xf32>
    %49 = vector.extract_strided_slice %34 {offsets = [0, 384], sizes = [2, 128], strides = [1, 1]} : vector<2x512xf32> to vector<2x128xf32>
    %50 = arith.negf %49 : vector<2x128xf32>
    %51 = math.exp %50 : vector<2x128xf32>
    %cst_20 = arith.constant 1.000000e+00 : f32
    %52 = vector.broadcast %cst_20 : f32 to vector<2x128xf32>
    %53 = arith.addf %52, %51 : vector<2x128xf32>
    %54 = arith.divf %52, %53 : vector<2x128xf32>
    %55 = arith.mulf %46, %21 : vector<2x128xf32>
    %56 = arith.mulf %40, %48 : vector<2x128xf32>
    %57 = arith.addf %55, %56 : vector<2x128xf32>
    %58 = math.tanh %57 : vector<2x128xf32>
    %59 = arith.mulf %54, %58 : vector<2x128xf32>
    %c2_i32 = arith.constant 2 : i32
    %60 = arith.index_cast %c2_i32 : i32 to index
    %c0_21 = arith.constant 0 : index
    %c0_22 = arith.constant 0 : index
    %61 = vector.load %arg1[%60, %c0_21, %c0_22] : memref<8x2x128xf32, #tpu.memory_space<vmem>>, vector<1x2x128xf32>
    %62 = vector.shape_cast %61 : vector<1x2x128xf32> to vector<2x128xf32>
    %c0_23 = arith.constant 0 : index
    %c0_24 = arith.constant 0 : index
    %63 = vector.load %arg2[%c0_23, %c0_24] : memref<128x512xf32, #tpu.memory_space<vmem>>, vector<128x512xf32>
    %cst_25 = arith.constant dense<0.000000e+00> : vector<2x512xf32>
    %64 = tpu.matmul %62, %63, %cst_25 {dimension_numbers = #tpu.dot_dimension_numbers<[1], [0], [0], [1], [0, 0, 1, 1], [], []>} : vector<2x128xf32>, vector<128x512xf32>, vector<2x512xf32> -> vector<2x512xf32>
    %c0_26 = arith.constant 0 : index
    %c0_27 = arith.constant 0 : index
    %65 = vector.load %arg3[%c0_26, %c0_27] : memref<1x512xf32, #tpu.memory_space<vmem>>, vector<1x512xf32>
    %66 = vector.broadcast %65 : vector<1x512xf32> to vector<2x512xf32>
    %67 = arith.addf %64, %66 : vector<2x512xf32>
    %c0_28 = arith.constant 0 : index
    %c0_29 = arith.constant 0 : index
    %68 = vector.load %arg4[%c0_28, %c0_29] : memref<128x512xf32, #tpu.memory_space<vmem>>, vector<128x512xf32>
    %cst_30 = arith.constant dense<0.000000e+00> : vector<2x512xf32>
    %69 = tpu.matmul %59, %68, %cst_30 {dimension_numbers = #tpu.dot_dimension_numbers<[1], [0], [0], [1], [0, 0, 1, 1], [], []>} : vector<2x128xf32>, vector<128x512xf32>, vector<2x512xf32> -> vector<2x512xf32>
    %70 = arith.addf %67, %69 : vector<2x512xf32>
    %71 = vector.extract_strided_slice %70 {offsets = [0, 0], sizes = [2, 128], strides = [1, 1]} : vector<2x512xf32> to vector<2x128xf32>
    %72 = arith.negf %71 : vector<2x128xf32>
    %73 = math.exp %72 : vector<2x128xf32>
    %cst_31 = arith.constant 1.000000e+00 : f32
    %74 = vector.broadcast %cst_31 : f32 to vector<2x128xf32>
    %75 = arith.addf %74, %73 : vector<2x128xf32>
    %76 = arith.divf %74, %75 : vector<2x128xf32>
    %77 = vector.extract_strided_slice %70 {offsets = [0, 128], sizes = [2, 128], strides = [1, 1]} : vector<2x512xf32> to vector<2x128xf32>
    %78 = arith.negf %77 : vector<2x128xf32>
    %79 = math.exp %78 : vector<2x128xf32>
    %cst_32 = arith.constant 1.000000e+00 : f32
    %80 = vector.broadcast %cst_32 : f32 to vector<2x128xf32>
    %81 = arith.addf %80, %79 : vector<2x128xf32>
    %82 = arith.divf %80, %81 : vector<2x128xf32>
    %83 = vector.extract_strided_slice %70 {offsets = [0, 256], sizes = [2, 128], strides = [1, 1]} : vector<2x512xf32> to vector<2x128xf32>
    %84 = math.tanh %83 : vector<2x128xf32>
    %85 = vector.extract_strided_slice %70 {offsets = [0, 384], sizes = [2, 128], strides = [1, 1]} : vector<2x512xf32> to vector<2x128xf32>
    %86 = arith.negf %85 : vector<2x128xf32>
    %87 = math.exp %86 : vector<2x128xf32>
    %cst_33 = arith.constant 1.000000e+00 : f32
    %88 = vector.broadcast %cst_33 : f32 to vector<2x128xf32>
    %89 = arith.addf %88, %87 : vector<2x128xf32>
    %90 = arith.divf %88, %89 : vector<2x128xf32>
    %91 = arith.mulf %82, %57 : vector<2x128xf32>
    %92 = arith.mulf %76, %84 : vector<2x128xf32>
    %93 = arith.addf %91, %92 : vector<2x128xf32>
    %94 = math.tanh %93 : vector<2x128xf32>
    %95 = arith.mulf %90, %94 : vector<2x128xf32>
    %c3_i32 = arith.constant 3 : i32
    %96 = arith.index_cast %c3_i32 : i32 to index
    %c0_34 = arith.constant 0 : index
    %c0_35 = arith.constant 0 : index
    %97 = vector.load %arg1[%96, %c0_34, %c0_35] : memref<8x2x128xf32, #tpu.memory_space<vmem>>, vector<1x2x128xf32>
    %98 = vector.shape_cast %97 : vector<1x2x128xf32> to vector<2x128xf32>
    %c0_36 = arith.constant 0 : index
    %c0_37 = arith.constant 0 : index
    %99 = vector.load %arg2[%c0_36, %c0_37] : memref<128x512xf32, #tpu.memory_space<vmem>>, vector<128x512xf32>
    %cst_38 = arith.constant dense<0.000000e+00> : vector<2x512xf32>
    %100 = tpu.matmul %98, %99, %cst_38 {dimension_numbers = #tpu.dot_dimension_numbers<[1], [0], [0], [1], [0, 0, 1, 1], [], []>} : vector<2x128xf32>, vector<128x512xf32>, vector<2x512xf32> -> vector<2x512xf32>
    %c0_39 = arith.constant 0 : index
    %c0_40 = arith.constant 0 : index
    %101 = vector.load %arg3[%c0_39, %c0_40] : memref<1x512xf32, #tpu.memory_space<vmem>>, vector<1x512xf32>
    %102 = vector.broadcast %101 : vector<1x512xf32> to vector<2x512xf32>
    %103 = arith.addf %100, %102 : vector<2x512xf32>
    %c0_41 = arith.constant 0 : index
    %c0_42 = arith.constant 0 : index
    %104 = vector.load %arg4[%c0_41, %c0_42] : memref<128x512xf32, #tpu.memory_space<vmem>>, vector<128x512xf32>
    %cst_43 = arith.constant dense<0.000000e+00> : vector<2x512xf32>
    %105 = tpu.matmul %95, %104, %cst_43 {dimension_numbers = #tpu.dot_dimension_numbers<[1], [0], [0], [1], [0, 0, 1, 1], [], []>} : vector<2x128xf32>, vector<128x512xf32>, vector<2x512xf32> -> vector<2x512xf32>
    %106 = arith.addf %103, %105 : vector<2x512xf32>
    %107 = vector.extract_strided_slice %106 {offsets = [0, 0], sizes = [2, 128], strides = [1, 1]} : vector<2x512xf32> to vector<2x128xf32>
    %108 = arith.negf %107 : vector<2x128xf32>
    %109 = math.exp %108 : vector<2x128xf32>
    %cst_44 = arith.constant 1.000000e+00 : f32
    %110 = vector.broadcast %cst_44 : f32 to vector<2x128xf32>
    %111 = arith.addf %110, %109 : vector<2x128xf32>
    %112 = arith.divf %110, %111 : vector<2x128xf32>
    %113 = vector.extract_strided_slice %106 {offsets = [0, 128], sizes = [2, 128], strides = [1, 1]} : vector<2x512xf32> to vector<2x128xf32>
    %114 = arith.negf %113 : vector<2x128xf32>
    %115 = math.exp %114 : vector<2x128xf32>
    %cst_45 = arith.constant 1.000000e+00 : f32
    %116 = vector.broadcast %cst_45 : f32 to vector<2x128xf32>
    %117 = arith.addf %116, %115 : vector<2x128xf32>
    %118 = arith.divf %116, %117 : vector<2x128xf32>
    %119 = vector.extract_strided_slice %106 {offsets = [0, 256], sizes = [2, 128], strides = [1, 1]} : vector<2x512xf32> to vector<2x128xf32>
    %120 = math.tanh %119 : vector<2x128xf32>
    %121 = vector.extract_strided_slice %106 {offsets = [0, 384], sizes = [2, 128], strides = [1, 1]} : vector<2x512xf32> to vector<2x128xf32>
    %122 = arith.negf %121 : vector<2x128xf32>
    %123 = math.exp %122 : vector<2x128xf32>
    %cst_46 = arith.constant 1.000000e+00 : f32
    %124 = vector.broadcast %cst_46 : f32 to vector<2x128xf32>
    %125 = arith.addf %124, %123 : vector<2x128xf32>
    %126 = arith.divf %124, %125 : vector<2x128xf32>
    %127 = arith.mulf %118, %93 : vector<2x128xf32>
    %128 = arith.mulf %112, %120 : vector<2x128xf32>
    %129 = arith.addf %127, %128 : vector<2x128xf32>
    %130 = math.tanh %129 : vector<2x128xf32>
    %131 = arith.mulf %126, %130 : vector<2x128xf32>
    %c4_i32 = arith.constant 4 : i32
    %132 = arith.index_cast %c4_i32 : i32 to index
    %c0_47 = arith.constant 0 : index
    %c0_48 = arith.constant 0 : index
    %133 = vector.load %arg1[%132, %c0_47, %c0_48] : memref<8x2x128xf32, #tpu.memory_space<vmem>>, vector<1x2x128xf32>
    %134 = vector.shape_cast %133 : vector<1x2x128xf32> to vector<2x128xf32>
    %c0_49 = arith.constant 0 : index
    %c0_50 = arith.constant 0 : index
    %135 = vector.load %arg2[%c0_49, %c0_50] : memref<128x512xf32, #tpu.memory_space<vmem>>, vector<128x512xf32>
    %cst_51 = arith.constant dense<0.000000e+00> : vector<2x512xf32>
    %136 = tpu.matmul %134, %135, %cst_51 {dimension_numbers = #tpu.dot_dimension_numbers<[1], [0], [0], [1], [0, 0, 1, 1], [], []>} : vector<2x128xf32>, vector<128x512xf32>, vector<2x512xf32> -> vector<2x512xf32>
    %c0_52 = arith.constant 0 : index
    %c0_53 = arith.constant 0 : index
    %137 = vector.load %arg3[%c0_52, %c0_53] : memref<1x512xf32, #tpu.memory_space<vmem>>, vector<1x512xf32>
    %138 = vector.broadcast %137 : vector<1x512xf32> to vector<2x512xf32>
    %139 = arith.addf %136, %138 : vector<2x512xf32>
    %c0_54 = arith.constant 0 : index
    %c0_55 = arith.constant 0 : index
    %140 = vector.load %arg4[%c0_54, %c0_55] : memref<128x512xf32, #tpu.memory_space<vmem>>, vector<128x512xf32>
    %cst_56 = arith.constant dense<0.000000e+00> : vector<2x512xf32>
    %141 = tpu.matmul %131, %140, %cst_56 {dimension_numbers = #tpu.dot_dimension_numbers<[1], [0], [0], [1], [0, 0, 1, 1], [], []>} : vector<2x128xf32>, vector<128x512xf32>, vector<2x512xf32> -> vector<2x512xf32>
    %142 = arith.addf %139, %141 : vector<2x512xf32>
    %143 = vector.extract_strided_slice %142 {offsets = [0, 0], sizes = [2, 128], strides = [1, 1]} : vector<2x512xf32> to vector<2x128xf32>
    %144 = arith.negf %143 : vector<2x128xf32>
    %145 = math.exp %144 : vector<2x128xf32>
    %cst_57 = arith.constant 1.000000e+00 : f32
    %146 = vector.broadcast %cst_57 : f32 to vector<2x128xf32>
    %147 = arith.addf %146, %145 : vector<2x128xf32>
    %148 = arith.divf %146, %147 : vector<2x128xf32>
    %149 = vector.extract_strided_slice %142 {offsets = [0, 128], sizes = [2, 128], strides = [1, 1]} : vector<2x512xf32> to vector<2x128xf32>
    %150 = arith.negf %149 : vector<2x128xf32>
    %151 = math.exp %150 : vector<2x128xf32>
    %cst_58 = arith.constant 1.000000e+00 : f32
    %152 = vector.broadcast %cst_58 : f32 to vector<2x128xf32>
    %153 = arith.addf %152, %151 : vector<2x128xf32>
    %154 = arith.divf %152, %153 : vector<2x128xf32>
    %155 = vector.extract_strided_slice %142 {offsets = [0, 256], sizes = [2, 128], strides = [1, 1]} : vector<2x512xf32> to vector<2x128xf32>
    %156 = math.tanh %155 : vector<2x128xf32>
    %157 = vector.extract_strided_slice %142 {offsets = [0, 384], sizes = [2, 128], strides = [1, 1]} : vector<2x512xf32> to vector<2x128xf32>
    %158 = arith.negf %157 : vector<2x128xf32>
    %159 = math.exp %158 : vector<2x128xf32>
    %cst_59 = arith.constant 1.000000e+00 : f32
    %160 = vector.broadcast %cst_59 : f32 to vector<2x128xf32>
    %161 = arith.addf %160, %159 : vector<2x128xf32>
    %162 = arith.divf %160, %161 : vector<2x128xf32>
    %163 = arith.mulf %154, %129 : vector<2x128xf32>
    %164 = arith.mulf %148, %156 : vector<2x128xf32>
    %165 = arith.addf %163, %164 : vector<2x128xf32>
    %166 = math.tanh %165 : vector<2x128xf32>
    %167 = arith.mulf %162, %166 : vector<2x128xf32>
    %c5_i32 = arith.constant 5 : i32
    %168 = arith.index_cast %c5_i32 : i32 to index
    %c0_60 = arith.constant 0 : index
    %c0_61 = arith.constant 0 : index
    %169 = vector.load %arg1[%168, %c0_60, %c0_61] : memref<8x2x128xf32, #tpu.memory_space<vmem>>, vector<1x2x128xf32>
    %170 = vector.shape_cast %169 : vector<1x2x128xf32> to vector<2x128xf32>
    %c0_62 = arith.constant 0 : index
    %c0_63 = arith.constant 0 : index
    %171 = vector.load %arg2[%c0_62, %c0_63] : memref<128x512xf32, #tpu.memory_space<vmem>>, vector<128x512xf32>
    %cst_64 = arith.constant dense<0.000000e+00> : vector<2x512xf32>
    %172 = tpu.matmul %170, %171, %cst_64 {dimension_numbers = #tpu.dot_dimension_numbers<[1], [0], [0], [1], [0, 0, 1, 1], [], []>} : vector<2x128xf32>, vector<128x512xf32>, vector<2x512xf32> -> vector<2x512xf32>
    %c0_65 = arith.constant 0 : index
    %c0_66 = arith.constant 0 : index
    %173 = vector.load %arg3[%c0_65, %c0_66] : memref<1x512xf32, #tpu.memory_space<vmem>>, vector<1x512xf32>
    %174 = vector.broadcast %173 : vector<1x512xf32> to vector<2x512xf32>
    %175 = arith.addf %172, %174 : vector<2x512xf32>
    %c0_67 = arith.constant 0 : index
    %c0_68 = arith.constant 0 : index
    %176 = vector.load %arg4[%c0_67, %c0_68] : memref<128x512xf32, #tpu.memory_space<vmem>>, vector<128x512xf32>
    %cst_69 = arith.constant dense<0.000000e+00> : vector<2x512xf32>
    %177 = tpu.matmul %167, %176, %cst_69 {dimension_numbers = #tpu.dot_dimension_numbers<[1], [0], [0], [1], [0, 0, 1, 1], [], []>} : vector<2x128xf32>, vector<128x512xf32>, vector<2x512xf32> -> vector<2x512xf32>
    %178 = arith.addf %175, %177 : vector<2x512xf32>
    %179 = vector.extract_strided_slice %178 {offsets = [0, 0], sizes = [2, 128], strides = [1, 1]} : vector<2x512xf32> to vector<2x128xf32>
    %180 = arith.negf %179 : vector<2x128xf32>
    %181 = math.exp %180 : vector<2x128xf32>
    %cst_70 = arith.constant 1.000000e+00 : f32
    %182 = vector.broadcast %cst_70 : f32 to vector<2x128xf32>
    %183 = arith.addf %182, %181 : vector<2x128xf32>
    %184 = arith.divf %182, %183 : vector<2x128xf32>
    %185 = vector.extract_strided_slice %178 {offsets = [0, 128], sizes = [2, 128], strides = [1, 1]} : vector<2x512xf32> to vector<2x128xf32>
    %186 = arith.negf %185 : vector<2x128xf32>
    %187 = math.exp %186 : vector<2x128xf32>
    %cst_71 = arith.constant 1.000000e+00 : f32
    %188 = vector.broadcast %cst_71 : f32 to vector<2x128xf32>
    %189 = arith.addf %188, %187 : vector<2x128xf32>
    %190 = arith.divf %188, %189 : vector<2x128xf32>
    %191 = vector.extract_strided_slice %178 {offsets = [0, 256], sizes = [2, 128], strides = [1, 1]} : vector<2x512xf32> to vector<2x128xf32>
    %192 = math.tanh %191 : vector<2x128xf32>
    %193 = vector.extract_strided_slice %178 {offsets = [0, 384], sizes = [2, 128], strides = [1, 1]} : vector<2x512xf32> to vector<2x128xf32>
    %194 = arith.negf %193 : vector<2x128xf32>
    %195 = math.exp %194 : vector<2x128xf32>
    %cst_72 = arith.constant 1.000000e+00 : f32
    %196 = vector.broadcast %cst_72 : f32 to vector<2x128xf32>
    %197 = arith.addf %196, %195 : vector<2x128xf32>
    %198 = arith.divf %196, %197 : vector<2x128xf32>
    %199 = arith.mulf %190, %165 : vector<2x128xf32>
    %200 = arith.mulf %184, %192 : vector<2x128xf32>
    %201 = arith.addf %199, %200 : vector<2x128xf32>
    %202 = math.tanh %201 : vector<2x128xf32>
    %203 = arith.mulf %198, %202 : vector<2x128xf32>
    %c6_i32 = arith.constant 6 : i32
    %204 = arith.index_cast %c6_i32 : i32 to index
    %c0_73 = arith.constant 0 : index
    %c0_74 = arith.constant 0 : index
    %205 = vector.load %arg1[%204, %c0_73, %c0_74] : memref<8x2x128xf32, #tpu.memory_space<vmem>>, vector<1x2x128xf32>
    %206 = vector.shape_cast %205 : vector<1x2x128xf32> to vector<2x128xf32>
    %c0_75 = arith.constant 0 : index
    %c0_76 = arith.constant 0 : index
    %207 = vector.load %arg2[%c0_75, %c0_76] : memref<128x512xf32, #tpu.memory_space<vmem>>, vector<128x512xf32>
    %cst_77 = arith.constant dense<0.000000e+00> : vector<2x512xf32>
    %208 = tpu.matmul %206, %207, %cst_77 {dimension_numbers = #tpu.dot_dimension_numbers<[1], [0], [0], [1], [0, 0, 1, 1], [], []>} : vector<2x128xf32>, vector<128x512xf32>, vector<2x512xf32> -> vector<2x512xf32>
    %c0_78 = arith.constant 0 : index
    %c0_79 = arith.constant 0 : index
    %209 = vector.load %arg3[%c0_78, %c0_79] : memref<1x512xf32, #tpu.memory_space<vmem>>, vector<1x512xf32>
    %210 = vector.broadcast %209 : vector<1x512xf32> to vector<2x512xf32>
    %211 = arith.addf %208, %210 : vector<2x512xf32>
    %c0_80 = arith.constant 0 : index
    %c0_81 = arith.constant 0 : index
    %212 = vector.load %arg4[%c0_80, %c0_81] : memref<128x512xf32, #tpu.memory_space<vmem>>, vector<128x512xf32>
    %cst_82 = arith.constant dense<0.000000e+00> : vector<2x512xf32>
    %213 = tpu.matmul %203, %212, %cst_82 {dimension_numbers = #tpu.dot_dimension_numbers<[1], [0], [0], [1], [0, 0, 1, 1], [], []>} : vector<2x128xf32>, vector<128x512xf32>, vector<2x512xf32> -> vector<2x512xf32>
    %214 = arith.addf %211, %213 : vector<2x512xf32>
    %215 = vector.extract_strided_slice %214 {offsets = [0, 0], sizes = [2, 128], strides = [1, 1]} : vector<2x512xf32> to vector<2x128xf32>
    %216 = arith.negf %215 : vector<2x128xf32>
    %217 = math.exp %216 : vector<2x128xf32>
    %cst_83 = arith.constant 1.000000e+00 : f32
    %218 = vector.broadcast %cst_83 : f32 to vector<2x128xf32>
    %219 = arith.addf %218, %217 : vector<2x128xf32>
    %220 = arith.divf %218, %219 : vector<2x128xf32>
    %221 = vector.extract_strided_slice %214 {offsets = [0, 128], sizes = [2, 128], strides = [1, 1]} : vector<2x512xf32> to vector<2x128xf32>
    %222 = arith.negf %221 : vector<2x128xf32>
    %223 = math.exp %222 : vector<2x128xf32>
    %cst_84 = arith.constant 1.000000e+00 : f32
    %224 = vector.broadcast %cst_84 : f32 to vector<2x128xf32>
    %225 = arith.addf %224, %223 : vector<2x128xf32>
    %226 = arith.divf %224, %225 : vector<2x128xf32>
    %227 = vector.extract_strided_slice %214 {offsets = [0, 256], sizes = [2, 128], strides = [1, 1]} : vector<2x512xf32> to vector<2x128xf32>
    %228 = math.tanh %227 : vector<2x128xf32>
    %229 = vector.extract_strided_slice %214 {offsets = [0, 384], sizes = [2, 128], strides = [1, 1]} : vector<2x512xf32> to vector<2x128xf32>
    %230 = arith.negf %229 : vector<2x128xf32>
    %231 = math.exp %230 : vector<2x128xf32>
    %cst_85 = arith.constant 1.000000e+00 : f32
    %232 = vector.broadcast %cst_85 : f32 to vector<2x128xf32>
    %233 = arith.addf %232, %231 : vector<2x128xf32>
    %234 = arith.divf %232, %233 : vector<2x128xf32>
    %235 = arith.mulf %226, %201 : vector<2x128xf32>
    %236 = arith.mulf %220, %228 : vector<2x128xf32>
    %237 = arith.addf %235, %236 : vector<2x128xf32>
    %238 = math.tanh %237 : vector<2x128xf32>
    %239 = arith.mulf %234, %238 : vector<2x128xf32>
    %c7_i32 = arith.constant 7 : i32
    %240 = arith.index_cast %c7_i32 : i32 to index
    %c0_86 = arith.constant 0 : index
    %c0_87 = arith.constant 0 : index
    %241 = vector.load %arg1[%240, %c0_86, %c0_87] : memref<8x2x128xf32, #tpu.memory_space<vmem>>, vector<1x2x128xf32>
    %242 = vector.shape_cast %241 : vector<1x2x128xf32> to vector<2x128xf32>
    %c0_88 = arith.constant 0 : index
    %c0_89 = arith.constant 0 : index
    %243 = vector.load %arg2[%c0_88, %c0_89] : memref<128x512xf32, #tpu.memory_space<vmem>>, vector<128x512xf32>
    %cst_90 = arith.constant dense<0.000000e+00> : vector<2x512xf32>
    %244 = tpu.matmul %242, %243, %cst_90 {dimension_numbers = #tpu.dot_dimension_numbers<[1], [0], [0], [1], [0, 0, 1, 1], [], []>} : vector<2x128xf32>, vector<128x512xf32>, vector<2x512xf32> -> vector<2x512xf32>
    %c0_91 = arith.constant 0 : index
    %c0_92 = arith.constant 0 : index
    %245 = vector.load %arg3[%c0_91, %c0_92] : memref<1x512xf32, #tpu.memory_space<vmem>>, vector<1x512xf32>
    %246 = vector.broadcast %245 : vector<1x512xf32> to vector<2x512xf32>
    %247 = arith.addf %244, %246 : vector<2x512xf32>
    %c0_93 = arith.constant 0 : index
    %c0_94 = arith.constant 0 : index
    %248 = vector.load %arg4[%c0_93, %c0_94] : memref<128x512xf32, #tpu.memory_space<vmem>>, vector<128x512xf32>
    %cst_95 = arith.constant dense<0.000000e+00> : vector<2x512xf32>
    %249 = tpu.matmul %239, %248, %cst_95 {dimension_numbers = #tpu.dot_dimension_numbers<[1], [0], [0], [1], [0, 0, 1, 1], [], []>} : vector<2x128xf32>, vector<128x512xf32>, vector<2x512xf32> -> vector<2x512xf32>
    %250 = arith.addf %247, %249 : vector<2x512xf32>
    %251 = vector.extract_strided_slice %250 {offsets = [0, 0], sizes = [2, 128], strides = [1, 1]} : vector<2x512xf32> to vector<2x128xf32>
    %252 = arith.negf %251 : vector<2x128xf32>
    %253 = math.exp %252 : vector<2x128xf32>
    %cst_96 = arith.constant 1.000000e+00 : f32
    %254 = vector.broadcast %cst_96 : f32 to vector<2x128xf32>
    %255 = arith.addf %254, %253 : vector<2x128xf32>
    %256 = arith.divf %254, %255 : vector<2x128xf32>
    %257 = vector.extract_strided_slice %250 {offsets = [0, 128], sizes = [2, 128], strides = [1, 1]} : vector<2x512xf32> to vector<2x128xf32>
    %258 = arith.negf %257 : vector<2x128xf32>
    %259 = math.exp %258 : vector<2x128xf32>
    %cst_97 = arith.constant 1.000000e+00 : f32
    %260 = vector.broadcast %cst_97 : f32 to vector<2x128xf32>
    %261 = arith.addf %260, %259 : vector<2x128xf32>
    %262 = arith.divf %260, %261 : vector<2x128xf32>
    %263 = vector.extract_strided_slice %250 {offsets = [0, 256], sizes = [2, 128], strides = [1, 1]} : vector<2x512xf32> to vector<2x128xf32>
    %264 = math.tanh %263 : vector<2x128xf32>
    %265 = vector.extract_strided_slice %250 {offsets = [0, 384], sizes = [2, 128], strides = [1, 1]} : vector<2x512xf32> to vector<2x128xf32>
    %266 = arith.negf %265 : vector<2x128xf32>
    %267 = math.exp %266 : vector<2x128xf32>
    %cst_98 = arith.constant 1.000000e+00 : f32
    %268 = vector.broadcast %cst_98 : f32 to vector<2x128xf32>
    %269 = arith.addf %268, %267 : vector<2x128xf32>
    %270 = arith.divf %268, %269 : vector<2x128xf32>
    %271 = arith.mulf %262, %237 : vector<2x128xf32>
    %272 = arith.mulf %256, %264 : vector<2x128xf32>
    %273 = arith.addf %271, %272 : vector<2x128xf32>
    %274 = math.tanh %273 : vector<2x128xf32>
    %275 = arith.mulf %270, %274 : vector<2x128xf32>
    %c7_i32_99 = arith.constant 7 : i32
    %c0_100 = arith.constant 0 : index
    %c0_101 = arith.constant 0 : index
    %276 = vector.load %arg5[%c0_100, %c0_101] : memref<128x128xf32, #tpu.memory_space<vmem>>, vector<128x128xf32>
    %cst_102 = arith.constant dense<0.000000e+00> : vector<2x128xf32>
    %277 = tpu.matmul %275, %276, %cst_102 {dimension_numbers = #tpu.dot_dimension_numbers<[1], [0], [0], [1], [0, 0, 1, 1], [], []>} : vector<2x128xf32>, vector<128x128xf32>, vector<2x128xf32> -> vector<2x128xf32>
    %c0_103 = arith.constant 0 : index
    %c0_104 = arith.constant 0 : index
    %278 = vector.load %arg6[%c0_103, %c0_104] : memref<1x128xf32, #tpu.memory_space<vmem>>, vector<1x128xf32>
    %279 = vector.broadcast %278 : vector<1x128xf32> to vector<2x128xf32>
    %280 = arith.addf %277, %279 : vector<2x128xf32>
    %c0_105 = arith.constant 0 : index
    %c0_106 = arith.constant 0 : index
    %281 = vector.load %arg7[%c0_105, %c0_106] : memref<2x128xf32, #tpu.memory_space<vmem>>, vector<2x128xf32>
    tpu.vector_store %arg7[%c0_105, %c0_106], %280 {strides = array<i32>} : memref<2x128xf32, #tpu.memory_space<vmem>>, vector<2x128xf32>,
    return
  }
  func.func @transform_0(%arg0: i32) -> (i32, i32, i32) {
    %c0_i32 = arith.constant 0 : i32
    %c0_i32_0 = arith.constant 0 : i32
    %c0_i32_1 = arith.constant 0 : i32
    %c0_i32_2 = arith.constant 0 : i32
    return %c0_i32, %c0_i32_0, %c0_i32_1 : i32, i32, i32
  }
  func.func @transform_1(%arg0: i32) -> (i32, i32) {
    %c0_i32 = arith.constant 0 : i32
    %c0_i32_0 = arith.constant 0 : i32
    %c0_i32_1 = arith.constant 0 : i32
    return %c0_i32, %c0_i32_0 : i32, i32
  }
  func.func @transform_2(%arg0: i32) -> (i32, i32) {
    %c0_i32 = arith.constant 0 : i32
    %c0_i32_0 = arith.constant 0 : i32
    %c0_i32_1 = arith.constant 0 : i32
    return %c0_i32, %c0_i32_0 : i32, i32
  }
  func.func @transform_3(%arg0: i32) -> (i32, i32) {
    %c0_i32 = arith.constant 0 : i32
    %c0_i32_0 = arith.constant 0 : i32
    %c0_i32_1 = arith.constant 0 : i32
    return %c0_i32, %c0_i32_0 : i32, i32
  }
  func.func @transform_4(%arg0: i32) -> (i32, i32) {
    %c0_i32 = arith.constant 0 : i32
    %c0_i32_0 = arith.constant 0 : i32
    %c0_i32_1 = arith.constant 0 : i32
    return %c0_i32, %c0_i32_0 : i32, i32
  }
  func.func @transform_5(%arg0: i32) -> (i32, i32) {
    %c0_i32 = arith.constant 0 : i32
    %c0_i32_0 = arith.constant 0 : i32
    %c0_i32_1 = arith.constant 0 : i32
    return %c0_i32, %c0_i32_0 : i32, i32
  }
  func.func @transform_6(%arg0: i32) -> (i32, i32) {
    %c0_i32 = arith.constant 0 : i32
    %c0_i32_0 = arith.constant 0 : i32
    %c0_i32_1 = arith.constant 0 : i32
    return %c0_i32, %c0_i32_0 : i32, i32
  }
}

</mosaic_0001>

<bundles_post_ra>
// kernel: rnn_forward.1
= control target key start
LH: loop header
LB: loop body
LE: loop exit
PB: predicated region body
PF: predicated region fallthrough
CT: control target
= control target key end

     0   :  { %11 = vsyncpa [#allocation3], 0  ;;  %s4300_s0 = inlined_call_operand.vmem [shape: f32[8,2,128], index: 0, kind: input, shape index: {}]   ;;  %s4301_s1 = inlined_call_operand.hbm [shape: f32[128,512], index: 1, kind: input, shape index: {}]   ;;  %s4302_s2 = inlined_call_operand.vmem [shape: f32[1,512], index: 2, kind: input, shape index: {}]   ;;  %s4303_s3 = inlined_call_operand.hbm [shape: f32[128,512], index: 3, kind: input, shape index: {}]   ;;  %s4304_s4 = inlined_call_operand.hbm [shape: f32[128,128], index: 4, kind: input, shape index: {}]   ;;  %s4305_s5 = inlined_call_operand.vmem [shape: f32[1,128], index: 5, kind: input, shape index: {}]   ;;  %s4306_s6 = inlined_call_operand.hbm [shape: f32[2,128], index: 6, kind: output, shape index: {}]  }
   0x1   :  { %12 = vsyncpa [#allocation6], 0 }
   0x2   :  { %13 = vsyncpa [#allocation4], 0  ;;  %s35_s23 = sshll.u32 %s4303_s3, 4  ;;  %s2495_s24 = smov [#allocation5]   ;;  %s36_s23 = int_to_ptr.hbm [resolvable:$true] %s35_s23 }
   0x3   :  { %s37_s25 = sshll.u32 %s2495_s24, 4  ;;  %s20_s28 = sshll.u32 %s4301_s1, 4  ;;  %s38_s25 = int_to_ptr.vmem [resolvable:$true] %s37_s25  ;;  %s21_s28 = int_to_ptr.hbm [resolvable:$true] %s20_s28 }
   0x4   :  { %s2496_s29 = smov 512   ;;  %s2497_s30 = smov 32  }
   0x5   :  { %43 = dma.hbm_to_vmem [thread:$0]  %s36_s23, 8192, %s38_s25, [#allocation6], %s2496_s29, %s2496_s29, %s2497_s30  }
   0x6   :  { %s2498_s7 = smov [#allocation2]   ;;  %s48_s11 = sshll.u32 %s4304_s4, 4  ;;  %s49_s11 = int_to_ptr.hbm [resolvable:$true] %s48_s11 }
   0x7   :  { %s22_s8 = sshll.u32 %s2498_s7, 4  ;;  %s2499_s3 = smov [#allocation7]   ;;  %s23_s8 = int_to_ptr.vmem [resolvable:$true] %s22_s8 }
   0x8   :  { %28 = dma.hbm_to_vmem [thread:$0]  %s21_s28, 8192, %s23_s8, [#allocation3], %s2496_s29, %s2496_s29, %s2497_s30  }
   0x9   :  { %s50_s12 = sshll.u32 %s2499_s3, 4  ;;  %s2500_s13 = smov 128   ;;  %s51_s12 = int_to_ptr.vmem [resolvable:$true] %s50_s12 }
   0xa   :  { %s2501_s14 = smov 8  }
   0xb   :  { %56 = dma.hbm_to_vmem [thread:$0]  %s49_s11, 2048, %s51_s12, [#allocation6], %s2500_s13, %s2500_s13, %s2501_s14  }
   0xc   :  { %2489 = dma.done.wait [#allocation3], 8192  }
   0xd   :  { %2490 = vsyncadd [#allocation3], 4294959104 }
   0xe   :  { %2491 = dma.done.wait [#allocation6], 10240  }
   0xf   :  { %2492 = vsyncadd [#allocation6], 4294957056  ;;  %v2547_v0 = vld [vmem:[#allocation2 + $0x1e0] sm:$0xff]  ;;  %v2549_v1 = vld [vmem:[#allocation2 + $0x1f8] sm:$0xff]  ;;  %s2502_s7 = smov [#allocation8]   ;;  %s1963_s11 = sshll.u32 %s4306_s6, 4  ;;  %s1964_s11 = int_to_ptr.hbm [resolvable:$true] %s1963_s11 }
  0x10   :  { %v2551_v2 = vld [vmem:[#allocation2 + $0x1c0] sm:$0xff]  ;;  %146 = vmatpush.msra.mxu0 %v2547_v0  ;;  %186 = vmatpush.msra.mxu2 %v2549_v1  ;;  %v2555_v3 = vld [vmem:[#allocation2 + $0x1d8] sm:$0xff]  ;;  %v2578_v10 = vld [vmem:[#allocation2 + $0x1f0] sm:$0xff]  ;;  %s1961_s8 = sshll.u32 %s2502_s7, 4  ;;  %s1962_s8 = int_to_ptr.vmem [resolvable:$true] %s1961_s8 }
  0x11   :  { %v2557_v4 = vld [vmem:[#allocation2 + $0x1a0] sm:$0xff]  ;;  %v2559_v5 = vld [vmem:[#allocation2 + $0x1b8] sm:$0xff]  ;;  %250 = vmatpush.msra.mxu3 %v2547_v0  ;;  %4623 = vst [vmem:[#allocation12_spill] sm:$0xff] %v2578_v10  ;;  %166 = vmatpush.msra.mxu1 %v2578_v10  ;;  %v2585_v13 = vld [vmem:[#allocation2 + $0x1d0] sm:$0xff] }
  0x12   :  { %147 = vmatpush.msra.mxu0 %v2551_v2  ;;  %187 = vmatpush.msra.mxu2 %v2555_v3  ;;  %v2564_v6 = vld [vmem:[#allocation2 + $0x180] sm:$0xff]  ;;  %v2566_v7 = vld [vmem:[#allocation2 + $0x198] sm:$0xff]  ;;  %v2590_v14 = vld [vmem:[#allocation2 + $0x1b0] sm:$0xff] }
  0x13   :  { %251 = vmatpush.msra.mxu3 %v2551_v2  ;;  %v2571_v8 = vld [vmem:[#allocation2 + $0x160] sm:$0xff]  ;;  %v2573_v9 = vld [vmem:[#allocation2 + $0x178] sm:$0xff]  ;;  %167 = vmatpush.msra.mxu1 %v2585_v13  ;;  %v2600_v17 = vld [vmem:[#allocation2 + $0x190] sm:$0xff] }
  0x14   :  { %148 = vmatpush.msra.mxu0 %v2557_v4  ;;  %188 = vmatpush.msra.mxu2 %v2559_v5  ;;  %v2580_v11 = vld [vmem:[#allocation2 + $0x140] sm:$0xff]  ;;  %v2582_v12 = vld [vmem:[#allocation2 + $0x158] sm:$0xff]  ;;  %v2610_v20 = vld [vmem:[#allocation2 + $0x170] sm:$0xff] }
  0x15   :  { %252 = vmatpush.msra.mxu3 %v2557_v4  ;;  %v2592_v15 = vld [vmem:[#allocation2 + $0x120] sm:$0xff]  ;;  %v2594_v16 = vld [vmem:[#allocation2 + $0x138] sm:$0xff]  ;;  %168 = vmatpush.msra.mxu1 %v2590_v14  ;;  %v2620_v23 = vld [vmem:[#allocation2 + $0x150] sm:$0xff] }
  0x16   :  { %149 = vmatpush.msra.mxu0 %v2564_v6  ;;  %189 = vmatpush.msra.mxu2 %v2566_v7  ;;  %v2602_v18 = vld [vmem:[#allocation2 + $0x100] sm:$0xff]  ;;  %v2604_v19 = vld [vmem:[#allocation2 + $0x118] sm:$0xff]  ;;  %v2630_v26 = vld [vmem:[#allocation2 + $0x130] sm:$0xff] }
  0x17   :  { %253 = vmatpush.msra.mxu3 %v2564_v6  ;;  %v2612_v21 = vld [vmem:[#allocation2 + $0xe0] sm:$0xff]  ;;  %v2614_v22 = vld [vmem:[#allocation2 + $0xf8] sm:$0xff]  ;;  %169 = vmatpush.msra.mxu1 %v2600_v17  ;;  %v2640_v29 = vld [vmem:[#allocation2 + $0x110] sm:$0xff] }
  0x18   :  { %150 = vmatpush.msra.mxu0 %v2571_v8  ;;  %190 = vmatpush.msra.mxu2 %v2573_v9  ;;  %v2622_v24 = vld [vmem:[#allocation2 + $0xc0] sm:$0xff]  ;;  %v2624_v25 = vld [vmem:[#allocation2 + $0xd8] sm:$0xff]  ;;  %v2650_v32 = vld [vmem:[#allocation2 + $0xf0] sm:$0xff] }
  0x19   :  { %254 = vmatpush.msra.mxu3 %v2571_v8  ;;  %170 = vmatpush.msra.mxu1 %v2610_v20  ;;  %v2632_v27 = vld [vmem:[#allocation2 + $0xa0] sm:$0xff]  ;;  %v2634_v28 = vld [vmem:[#allocation2 + $0xb8] sm:$0xff]  ;;  %v2660_v35 = vld [vmem:[#allocation2 + $0xd0] sm:$0xff] }
  0x1a   :  { %151 = vmatpush.msra.mxu0 %v2580_v11  ;;  %191 = vmatpush.msra.mxu2 %v2582_v12  ;;  %v2642_v30 = vld [vmem:[#allocation2 + $0x80] sm:$0xff]  ;;  %v2644_v31 = vld [vmem:[#allocation2 + $0x98] sm:$0xff]  ;;  %v2670_v38 = vld [vmem:[#allocation2 + $0xb0] sm:$0xff] }
  0x1b   :  { %255 = vmatpush.msra.mxu3 %v2580_v11  ;;  %171 = vmatpush.msra.mxu1 %v2620_v23  ;;  %v2652_v33 = vld [vmem:[#allocation2 + $0x60] sm:$0xff]  ;;  %v2654_v34 = vld [vmem:[#allocation2 + $0x78] sm:$0xff]  ;;  %v2680_v41 = vld [vmem:[#allocation2 + $0x90] sm:$0xff] }
  0x1c   :  { %152 = vmatpush.msra.mxu0 %v2592_v15  ;;  %192 = vmatpush.msra.mxu2 %v2594_v16  ;;  %4624 = vst [vmem:[#allocation13_spill] sm:$0xff] %v2654_v34  ;;  %v2662_v36 = vld [vmem:[#allocation2 + $0x40] sm:$0xff]  ;;  %v2664_v37 = vld [vmem:[#allocation2 + $0x58] sm:$0xff]  ;;  %v2694_v45 = vld [vmem:[#allocation2 + $0x70] sm:$0xff] }
  0x1d   :  { %256 = vmatpush.msra.mxu3 %v2592_v15  ;;  %172 = vmatpush.msra.mxu1 %v2630_v26  ;;  %4625 = vst [vmem:[#allocation14_spill] sm:$0xff] %v2662_v36  ;;  %v2672_v39 = vld [vmem:[#allocation2 + $0x20] sm:$0xff]  ;;  %v2674_v40 = vld [vmem:[#allocation2 + $0x38] sm:$0xff]  ;;  %v2696_v46 = vld [vmem:[#allocation2 + $0x1e8] sm:$0xff] }
  0x1e   :  { %153 = vmatpush.msra.mxu0 %v2602_v18  ;;  %193 = vmatpush.msra.mxu2 %v2604_v19  ;;  %4626 = vst [vmem:[#allocation15_spill] sm:$0xff] %v2664_v37  ;;  %v2682_v42 = vld [vmem:[#allocation2] sm:$0xff]  ;;  %v2684_v43 = vld [vmem:[#allocation2 + $0x18] sm:$0xff]  ;;  %v2701_v47 = vld [vmem:[#allocation2 + $0x50] sm:$0xff] }
  0x1f   :  { %257 = vmatpush.msra.mxu3 %v2602_v18  ;;  %173 = vmatpush.msra.mxu1 %v2640_v29  ;;  %4627 = vst [vmem:[#allocation16_spill] sm:$0xff] %v2672_v39  ;;  %v71_v44 = vld [vmem:[%s4300_s0] sm:$0x3]  ;;  %v2703_v48 = vld [vmem:[#allocation2 + $0x1c8] sm:$0xff]  ;;  %v2707_v49 = vld [vmem:[#allocation2 + $0x30] sm:$0xff] }
  0x20   :  { %154 = vmatpush.msra.mxu0 %v2612_v21  ;;  %194 = vmatpush.msra.mxu2 %v2614_v22  ;;  %4628 = vst [vmem:[#allocation17_spill] sm:$0xff] %v2674_v40  ;;  %v2710_v50 = vld [vmem:[#allocation2 + $0x1a8] sm:$0xff]  ;;  %v2715_v51 = vld [vmem:[#allocation2 + $0x10] sm:$0xff] }
  0x21   :  { %258 = vmatpush.msra.mxu3 %v2612_v21  ;;  %174 = vmatpush.msra.mxu1 %v2650_v32  ;;  %4629 = vst [vmem:[#allocation18_spill] sm:$0xff] %v2682_v42  ;;  %v2718_v52 = vld [vmem:[#allocation2 + $0x188] sm:$0xff] }
  0x22   :  { %155 = vmatpush.msra.mxu0 %v2622_v24  ;;  %195 = vmatpush.msra.mxu2 %v2624_v25  ;;  %4630 = vst [vmem:[#allocation19_spill] sm:$0xff] %v2684_v43  ;;  %v2723_v53 = vld [vmem:[#allocation2 + $0x168] sm:$0xff] }
  0x23   :  { %259 = vmatpush.msra.mxu3 %v2622_v24  ;;  %175 = vmatpush.msra.mxu1 %v2660_v35  ;;  %4631 = vst [vmem:[#allocation20_spill] sm:$0xff] %v2694_v45  ;;  %v2728_v54 = vld [vmem:[#allocation2 + $0x148] sm:$0xff] }
  0x24   :  { %156 = vmatpush.msra.mxu0 %v2632_v27  ;;  %196 = vmatpush.msra.mxu2 %v2634_v28  ;;  %4632 = vst [vmem:[#allocation21_spill] sm:$0xff] %v2701_v47  ;;  %v2733_v55 = vld [vmem:[#allocation2 + $0x128] sm:$0xff] }
  0x25   :  { %260 = vmatpush.msra.mxu3 %v2632_v27  ;;  %176 = vmatpush.msra.mxu1 %v2670_v38  ;;  %4633 = vst [vmem:[#allocation22_spill] sm:$0xff] %v2707_v49  ;;  %v2738_v56 = vld [vmem:[#allocation2 + $0x108] sm:$0xff] }
  0x26   :  { %157 = vmatpush.msra.mxu0 %v2642_v30  ;;  %197 = vmatpush.msra.mxu2 %v2644_v31  ;;  %4634 = vst [vmem:[#allocation23_spill] sm:$0xff] %v2715_v51  ;;  %v2743_v57 = vld [vmem:[#allocation2 + $0xe8] sm:$0xff] }
  0x27   :  { %261 = vmatpush.msra.mxu3 %v2642_v30  ;;  %177 = vmatpush.msra.mxu1 %v2680_v41  ;;  %v2748_v58 = vld [vmem:[#allocation2 + $0xc8] sm:$0xff] }
  0x28   :  { %158 = vmatpush.msra.mxu0 %v2652_v33  ;;  %198 = vmatpush.msra.mxu2 %v2654_v34  ;;  %v2772_v59 = vld [vmem:[#allocation2 + $0xa8] sm:$0xff] }
  0x29   :  { %262 = vmatpush.msra.mxu3 %v2652_v33  ;;  %178 = vmatpush.msra.mxu1 %v2694_v45  ;;  %v2775_v60 = vld [vmem:[#allocation2 + $0x88] sm:$0xff] }
  0x2a   :  { %159 = vmatpush.msra.mxu0 %v2662_v36  ;;  %199 = vmatpush.msra.mxu2 %v2664_v37  ;;  %v2778_v61 = vld [vmem:[#allocation2 + $0x68] sm:$0xff] }
  0x2b   :  { %263 = vmatpush.msra.mxu3 %v2662_v36  ;;  %179 = vmatpush.msra.mxu1 %v2701_v47  ;;  %4635 = vst [vmem:[#allocation24_spill] sm:$0xff] %v2778_v61  ;;  %v2781_v62 = vld [vmem:[#allocation2 + $0x48] sm:$0xff] }
  0x2c   :  { %160 = vmatpush.msra.mxu0 %v2672_v39  ;;  %200 = vmatpush.msra.mxu2 %v2674_v40  ;;  %4636 = vst [vmem:[#allocation25_spill] sm:$0xff] %v2781_v62  ;;  %v2784_v63 = vld [vmem:[#allocation2 + $0x28] sm:$0xff] }
  0x2d   :  { %264 = vmatpush.msra.mxu3 %v2672_v39  ;;  %180 = vmatpush.msra.mxu1 %v2707_v49  ;;  %4637 = vst [vmem:[#allocation26_spill] sm:$0xff] %v2784_v63  ;;  %v2810_v39 = vld [vmem:[#allocation5 + $0x1d8] sm:$0xff] }
  0x2e   :  { %161 = vmatpush.msra.mxu0 %v2682_v42  ;;  %201 = vmatpush.msra.mxu2 %v2684_v43  ;;  %4646 = vst [vmem:[#allocation35_spill] sm:$0xff] %v2810_v39 }
  0x2f   :  { %162 = vmatmul.f32.vlgmr.msra.gmra.mxu0 %v71_v44  ;;  %202 = vmatmul.f32.vlgmr.msra.gmra.mxu2 %v71_v44 }
  0x30   :  { %270 = vmatpush.msrb.mxu0 %v2696_v46  ;;  %310 = vmatpush.msrb.mxu2 %v2549_v1 }
  0x31   :  { %265 = vmatpush.msra.mxu3 %v2682_v42  ;;  %181 = vmatpush.msra.mxu1 %v2715_v51  ;;  %v2794_v42 = vld [vmem:[#allocation5 + $0x1f0] sm:$0xff] }
  0x32   :  { %271 = vmatpush.msrb.mxu0 %v2703_v48  ;;  %311 = vmatpush.msrb.mxu2 %v2555_v3  ;;  %4641 = vst [vmem:[#allocation30_spill] sm:$0xff] %v2794_v42 }
  0x33   :  { %182 = vmatmul.f32.vlgmr.msra.gmra.mxu1 %v71_v44  ;;  %v2787_v44 = vld [vmem:[#allocation2 + $0x8] sm:$0xff] }
  0x34   :  { %272 = vmatpush.msrb.mxu0 %v2710_v50  ;;  %312 = vmatpush.msrb.mxu2 %v2559_v5  ;;  %4638 = vst [vmem:[#allocation27_spill] sm:$0xff] %v2787_v44 }
  0x35   :  { %290 = vmatpush.msrb.mxu1 %v2578_v10 }
  0x36   :  { %273 = vmatpush.msrb.mxu0 %v2718_v52  ;;  %313 = vmatpush.msrb.mxu2 %v2566_v7 }
  0x37   :  { %291 = vmatpush.msrb.mxu1 %v2585_v13 }
  0x38   :  { %274 = vmatpush.msrb.mxu0 %v2723_v53  ;;  %314 = vmatpush.msrb.mxu2 %v2573_v9 }
  0x39   :  { %292 = vmatpush.msrb.mxu1 %v2590_v14 }
  0x3a   :  { %275 = vmatpush.msrb.mxu0 %v2728_v54  ;;  %315 = vmatpush.msrb.mxu2 %v2582_v12 }
  0x3b   :  { %293 = vmatpush.msrb.mxu1 %v2600_v17 }
  0x3c   :  { %276 = vmatpush.msrb.mxu0 %v2733_v55  ;;  %316 = vmatpush.msrb.mxu2 %v2594_v16 }
  0x3d   :  { %294 = vmatpush.msrb.mxu1 %v2610_v20 }
  0x3e   :  { %277 = vmatpush.msrb.mxu0 %v2738_v56  ;;  %317 = vmatpush.msrb.mxu2 %v2604_v19 }
  0x3f   :  { %295 = vmatpush.msrb.mxu1 %v2620_v23 }
  0x40   :  { %278 = vmatpush.msrb.mxu0 %v2743_v57  ;;  %318 = vmatpush.msrb.mxu2 %v2614_v22 }
  0x41   :  { %296 = vmatpush.msrb.mxu1 %v2630_v26 }
  0x42   :  { %279 = vmatpush.msrb.mxu0 %v2748_v58  ;;  %319 = vmatpush.msrb.mxu2 %v2624_v25 }
  0x43   :  { %297 = vmatpush.msrb.mxu1 %v2640_v29 }
  0x44   :  { %320 = vmatpush.msrb.mxu2 %v2634_v28  ;;  %280 = vmatpush.msrb.mxu0 %v2772_v59 }
  0x45   :  { %298 = vmatpush.msrb.mxu1 %v2650_v32 }
  0x46   :  { %321 = vmatpush.msrb.mxu2 %v2644_v31  ;;  %281 = vmatpush.msrb.mxu0 %v2775_v60 }
  0x47   :  { %299 = vmatpush.msrb.mxu1 %v2660_v35 }
  0x48   :  { %322 = vmatpush.msrb.mxu2 %v2654_v34  ;;  %282 = vmatpush.msrb.mxu0 %v2778_v61 }
  0x49   :  { %300 = vmatpush.msrb.mxu1 %v2670_v38 }
  0x4a   :  { %323 = vmatpush.msrb.mxu2 %v2664_v37  ;;  %283 = vmatpush.msrb.mxu0 %v2781_v62  ;;  %v2899_v37 = vld [vmem:[#allocation5 + $0xf8] sm:$0xff] }
  0x4b   :  { %301 = vmatpush.msrb.mxu1 %v2680_v41  ;;  %4674 = vst [vmem:[#allocation63_spill] sm:$0xff] %v2899_v37 }
  0x4c   :  { %324 = vmatpush.msrb.mxu2 %v2674_v40  ;;  %284 = vmatpush.msrb.mxu0 %v2784_v63  ;;  %v2798_v40 = vld [vmem:[#allocation5 + $0x1f8] sm:$0xff]  ;;  %v2804_v63 = vld [vmem:[#allocation5 + $0x1c8] sm:$0xff] }
  0x4d   :  { %302 = vmatpush.msrb.mxu1 %v2694_v45  ;;  %4642 = vst [vmem:[#allocation31_spill] sm:$0xff] %v2798_v40  ;;  %v2969_v45 = vld [vmem:[#allocation5 + $0x20] sm:$0xff] }
  0x4e   :  { %325 = vmatpush.msrb.mxu2 %v2684_v43  ;;  %285 = vmatpush.msrb.mxu0 %v2787_v44  ;;  %v2790_v43 = vld [vmem:[#allocation5 + $0x1e0] sm:$0xff]  ;;  %4644 = vst [vmem:[#allocation33_spill] sm:$0xff] %v2804_v63  ;;  %v2806_v44 = vld [vmem:[#allocation5 + $0x1d0] sm:$0xff] }
  0x4f   :  { %303 = vmatpush.msrb.mxu1 %v2701_v47  ;;  %4639 = vst [vmem:[#allocation28_spill] sm:$0xff] %v2790_v43  ;;  %394 = vmatpush.msrb.mxu3 %v2790_v43  ;;  %v2822_v43 = vld [vmem:[#allocation5 + $0x1b8] sm:$0xff] }
  0x50   :  { %454 = vmatpush.msra.mxu2 %v2798_v40  ;;  %4645 = vst [vmem:[#allocation34_spill] sm:$0xff] %v2806_v44  ;;  %v2818_v40 = vld [vmem:[#allocation5 + $0x1b0] sm:$0xff]  ;;  %v2926_v47 = vld [vmem:[#allocation5 + $0xb8] sm:$0xff] }
  0x51   :  { %304 = vmatpush.msrb.mxu1 %v2707_v49  ;;  %v2802_v49 = vld [vmem:[#allocation5 + $0x1c0] sm:$0xff]  ;;  %4649 = vst [vmem:[#allocation38_spill] sm:$0xff] %v2818_v40 }
  0x52   :  { %4643 = vst [vmem:[#allocation32_spill] sm:$0xff] %v2802_v49  ;;  %395 = vmatpush.msrb.mxu3 %v2802_v49  ;;  %455 = vmatpush.msra.mxu2 %v2810_v39  ;;  %v2830_v39 = vld [vmem:[#allocation5 + $0x190] sm:$0xff]  ;;  %v2834_v49 = vld [vmem:[#allocation5 + $0x198] sm:$0xff] }
  0x53   :  { %305 = vmatpush.msrb.mxu1 %v2715_v51  ;;  %v2792_v51 = vld [vmem:[#allocation5 + $0x1e8] sm:$0xff]  ;;  %4650 = vst [vmem:[#allocation39_spill] sm:$0xff] %v2822_v43 }
  0x54   :  { %4640 = vst [vmem:[#allocation29_spill] sm:$0xff] %v2792_v51  ;;  %414 = vmatpush.msra.mxu0 %v2792_v51  ;;  %v2814_v51 = vld [vmem:[#allocation5 + $0x1a0] sm:$0xff]  ;;  %456 = vmatpush.msra.mxu2 %v2822_v43  ;;  %v2842_v43 = vld [vmem:[#allocation5 + $0x170] sm:$0xff] }
  0x55   :  { %434 = vmatpush.msra.mxu1 %v2794_v42  ;;  %4647 = vst [vmem:[#allocation36_spill] sm:$0xff] %v2814_v51  ;;  %v2816_v42 = vld [vmem:[#allocation5 + $0x1a8] sm:$0xff]  ;;  %396 = vmatpush.msrb.mxu3 %v2814_v51  ;;  %v2846_v51 = vld [vmem:[#allocation5 + $0x178] sm:$0xff] }
  0x56   :  { %415 = vmatpush.msra.mxu0 %v2804_v63  ;;  %4648 = vst [vmem:[#allocation37_spill] sm:$0xff] %v2816_v42  ;;  %v2826_v63 = vld [vmem:[#allocation5 + $0x180] sm:$0xff]  ;;  %457 = vmatpush.msra.mxu2 %v2834_v49 }
  0x57   :  { %435 = vmatpush.msra.mxu1 %v2806_v44  ;;  %4651 = vst [vmem:[#allocation40_spill] sm:$0xff] %v2826_v63  ;;  %v2828_v44 = vld [vmem:[#allocation5 + $0x188] sm:$0xff]  ;;  %397 = vmatpush.msrb.mxu3 %v2826_v63  ;;  %v2858_v63 = vld [vmem:[#allocation5 + $0x158] sm:$0xff] }
  0x58   :  { %416 = vmatpush.msra.mxu0 %v2816_v42  ;;  %4652 = vst [vmem:[#allocation41_spill] sm:$0xff] %v2828_v44  ;;  %v2838_v42 = vld [vmem:[#allocation5 + $0x160] sm:$0xff]  ;;  %458 = vmatpush.msra.mxu2 %v2846_v51 }
  0x59   :  { %436 = vmatpush.msra.mxu1 %v2818_v40  ;;  %4653 = vst [vmem:[#allocation42_spill] sm:$0xff] %v2830_v39  ;;  %v2840_v40 = vld [vmem:[#allocation5 + $0x168] sm:$0xff]  ;;  %398 = vmatpush.msrb.mxu3 %v2838_v42 }
  0x5a   :  { %417 = vmatpush.msra.mxu0 %v2828_v44  ;;  %4654 = vst [vmem:[#allocation43_spill] sm:$0xff] %v2834_v49  ;;  %v2850_v44 = vld [vmem:[#allocation5 + $0x140] sm:$0xff]  ;;  %v2854_v49 = vld [vmem:[#allocation5 + $0x150] sm:$0xff]  ;;  %459 = vmatpush.msra.mxu2 %v2858_v63 }
  0x5b   :  { %437 = vmatpush.msra.mxu1 %v2830_v39  ;;  %4655 = vst [vmem:[#allocation44_spill] sm:$0xff] %v2838_v42  ;;  %v2852_v39 = vld [vmem:[#allocation5 + $0x148] sm:$0xff]  ;;  %399 = vmatpush.msrb.mxu3 %v2850_v44  ;;  %v2870_v42 = vld [vmem:[#allocation5 + $0x138] sm:$0xff] }
  0x5c   :  { %4656 = vst [vmem:[#allocation45_spill] sm:$0xff] %v2840_v40  ;;  %418 = vmatpush.msra.mxu0 %v2840_v40  ;;  %v2862_v40 = vld [vmem:[#allocation5 + $0x120] sm:$0xff]  ;;  %460 = vmatpush.msra.mxu2 %v2870_v42 }
  0x5d   :  { %4657 = vst [vmem:[#allocation46_spill] sm:$0xff] %v2842_v43  ;;  %438 = vmatpush.msra.mxu1 %v2842_v43  ;;  %v2864_v43 = vld [vmem:[#allocation5 + $0x128] sm:$0xff]  ;;  %400 = vmatpush.msrb.mxu3 %v2862_v40 }
  0x5e   :  { %4658 = vst [vmem:[#allocation47_spill] sm:$0xff] %v2846_v51  ;;  %419 = vmatpush.msra.mxu0 %v2852_v39  ;;  %v2866_v51 = vld [vmem:[#allocation5 + $0x130] sm:$0xff] }
  0x5f   :  { %4659 = vst [vmem:[#allocation48_spill] sm:$0xff] %v2850_v44  ;;  %439 = vmatpush.msra.mxu1 %v2854_v49  ;;  %v2883_v44 = vld [vmem:[%s4302_s2] sm:$0xf] }
  0x60   :  { %4660 = vst [vmem:[#allocation49_spill] sm:$0xff] %v2852_v39  ;;  %420 = vmatpush.msra.mxu0 %v2864_v43  ;;  %v2874_v39 = vld [vmem:[#allocation5 + $0x100] sm:$0xff] }
  0x61   :  { %4661 = vst [vmem:[#allocation50_spill] sm:$0xff] %v2854_v49  ;;  %440 = vmatpush.msra.mxu1 %v2866_v51  ;;  %v2876_v49 = vld [vmem:[#allocation5 + $0x108] sm:$0xff]  ;;  %401 = vmatpush.msrb.mxu3 %v2874_v39 }
  0x62   :  { %4662 = vst [vmem:[#allocation51_spill] sm:$0xff] %v2858_v63  ;;  %v2878_v63 = vld [vmem:[#allocation5 + $0x110] sm:$0xff]  ;;  %421 = vmatpush.msra.mxu0 %v2876_v49 }
  0x63   :  { %4663 = vst [vmem:[#allocation52_spill] sm:$0xff] %v2862_v40  ;;  %441 = vmatpush.msra.mxu1 %v2878_v63  ;;  %v2895_v40 = vld [vmem:[#allocation5 + $0xf0] sm:$0xff] }
  0x64   :  { %4664 = vst [vmem:[#allocation53_spill] sm:$0xff] %v2864_v43  ;;  %v2887_v43 = vld [vmem:[#allocation5 + $0x118] sm:$0xff] }
  0x65   :  { %4665 = vst [vmem:[#allocation54_spill] sm:$0xff] %v2866_v51  ;;  %461 = vmatpush.msra.mxu2 %v2887_v43  ;;  %v2893_v51 = vld [vmem:[#allocation5 + $0xe8] sm:$0xff]  ;;  %442 = vmatpush.msra.mxu1 %v2895_v40 }
  0x66   :  { %4666 = vst [vmem:[#allocation55_spill] sm:$0xff] %v2870_v42  ;;  %v2891_v42 = vld [vmem:[#allocation5 + $0xe0] sm:$0xff]  ;;  %422 = vmatpush.msra.mxu0 %v2893_v51 }
  0x67   :  { %4667 = vst [vmem:[#allocation56_spill] sm:$0xff] %v2874_v39  ;;  %402 = vmatpush.msrb.mxu3 %v2891_v42  ;;  %462 = vmatpush.msra.mxu2 %v2899_v37  ;;  %v2910_v39 = vperm.slane %v2883_v44, 0  ;;  %v2918_v37 = vld [vmem:[#allocation5 + $0xa0] sm:$0xff] }
  0x68   :  { %4668 = vst [vmem:[#allocation57_spill] sm:$0xff] %v2876_v49  ;;  %v2903_v49 = vld [vmem:[#allocation5 + $0xc0] sm:$0xff] }
  0x69   :  { %4669 = vst [vmem:[#allocation58_spill] sm:$0xff] %v2878_v63  ;;  %v2905_v63 = vld [vmem:[#allocation5 + $0xc8] sm:$0xff]  ;;  %403 = vmatpush.msrb.mxu3 %v2903_v49 }
  0x6a   :  { %4670 = vst [vmem:[#allocation59_spill] sm:$0xff] %v2887_v43  ;;  %v2907_v43 = vld [vmem:[#allocation5 + $0xd0] sm:$0xff]  ;;  %423 = vmatpush.msra.mxu0 %v2905_v63 }
  0x6b   :  { %4671 = vst [vmem:[#allocation60_spill] sm:$0xff] %v2891_v42  ;;  %443 = vmatpush.msra.mxu1 %v2907_v43  ;;  %v2922_v42 = vld [vmem:[#allocation5 + $0xb0] sm:$0xff]  ;;  %404 = vmatpush.msrb.mxu3 %v2918_v37 }
  0x6c   :  { %4672 = vst [vmem:[#allocation61_spill] sm:$0xff] %v2893_v51  ;;  %v2914_v51 = vld [vmem:[#allocation5 + $0xd8] sm:$0xff] }
  0x6d   :  { %4673 = vst [vmem:[#allocation62_spill] sm:$0xff] %v2895_v40  ;;  %463 = vmatpush.msra.mxu2 %v2914_v51  ;;  %v2920_v40 = vld [vmem:[#allocation5 + $0xa8] sm:$0xff]  ;;  %444 = vmatpush.msra.mxu1 %v2922_v42 }
  0x6e   :  { %4675 = vst [vmem:[#allocation64_spill] sm:$0xff] %v2903_v49  ;;  %424 = vmatpush.msra.mxu0 %v2920_v40 }
  0x6f   :  { %4676 = vst [vmem:[#allocation65_spill] sm:$0xff] %v2905_v63  ;;  %464 = vmatpush.msra.mxu2 %v2926_v47  ;;  %v2934_v63 = vld [vmem:[#allocation5 + $0x90] sm:$0xff] }
  0x70   :  { %4677 = vst [vmem:[#allocation66_spill] sm:$0xff] %v2907_v43  ;;  %v2930_v43 = vld [vmem:[#allocation5 + $0x80] sm:$0xff]  ;;  %445 = vmatpush.msra.mxu1 %v2934_v63 }
  0x71   :  { %4678 = vst [vmem:[#allocation67_spill] sm:$0xff] %v2910_v39  ;;  %405 = vmatpush.msrb.mxu3 %v2930_v43 }
  0x72   :  { %4679 = vst [vmem:[#allocation68_spill] sm:$0xff] %v2914_v51  ;;  %v2932_v51 = vld [vmem:[#allocation5 + $0x88] sm:$0xff] }
  0x73   :  { %4680 = vst [vmem:[#allocation69_spill] sm:$0xff] %v2918_v37  ;;  %425 = vmatpush.msra.mxu0 %v2932_v51  ;;  %v2948_v37 = vld [vmem:[#allocation5 + $0x68] sm:$0xff] }
  0x74   :  { %4681 = vst [vmem:[#allocation70_spill] sm:$0xff] %v2920_v40  ;;  %v2939_v40 = vld [vmem:[#allocation5 + $0x98] sm:$0xff] }
  0x75   :  { %4682 = vst [vmem:[#allocation71_spill] sm:$0xff] %v2922_v42  ;;  %v1976_v42 = vld [vmem:[%s4300_s0 + $0x2] sm:$0x3]  ;;  %465 = vmatpush.msra.mxu2 %v2939_v40  ;;  %426 = vmatpush.msra.mxu0 %v2948_v37 }
  0x76   :  { %4683 = vst [vmem:[#allocation72_spill] sm:$0xff] %v2926_v47  ;;  %v2946_v47 = vld [vmem:[#allocation5 + $0x60] sm:$0xff]  ;;  %266 = vmatmul.f32.vlgmr.msra.gmra.mxu3 %v1976_v42  ;;  %286 = vmatmul.f32.vlgmr.msrb.gmra.mxu0 %v1976_v42 }
  0x77   :  { %4684 = vst [vmem:[#allocation73_spill] sm:$0xff] %v2930_v43  ;;  %306 = vmatmul.f32.vlgmr.msrb.gmra.mxu1 %v1976_v42  ;;  %326 = vmatmul.f32.vlgmr.msrb.gmra.mxu2 %v1976_v42  ;;  %v2957_v43 = vld [vmem:[#allocation5 + $0x40] sm:$0xff]  ;;  %v2971_v42 = vld [vmem:[#allocation5 + $0x28] sm:$0xff] }
  0x78   :  { %4685 = vst [vmem:[#allocation74_spill] sm:$0xff] %v2932_v51  ;;  %v2955_v51 = vld [vmem:[#allocation5 + $0x78] sm:$0xff]  ;;  %406 = vmatpush.msrb.mxu3 %v2946_v47 }
  0x79   :  { %4686 = vst [vmem:[#allocation75_spill] sm:$0xff] %v2934_v63  ;;  %v2959_v63 = vld [vmem:[#allocation5 + $0x48] sm:$0xff]  ;;  %466 = vmatpush.msra.mxu2 %v2955_v51 }
  0x7a   :  { %4687 = vst [vmem:[#allocation76_spill] sm:$0xff] %v2939_v40  ;;  %v2965_v40 = vld [vmem:[#allocation5 + $0x58] sm:$0xff]  ;;  %407 = vmatpush.msrb.mxu3 %v2957_v43  ;;  %427 = vmatpush.msra.mxu0 %v2959_v63 }
  0x7b   :  { %4688 = vst [vmem:[#allocation77_spill] sm:$0xff] %v2946_v47  ;;  %467 = vmatpush.msra.mxu2 %v2965_v40 }
  0x7c   :  { %4689 = vst [vmem:[#allocation78_spill] sm:$0xff] %v2948_v37  ;;  %v2978_v37 = vld [vmem:[#allocation5 + $0x38] sm:$0xff]  ;;  %408 = vmatpush.msrb.mxu3 %v2969_v45  ;;  %428 = vmatpush.msra.mxu0 %v2971_v42 }
  0x7d   :  { %4692 = vst [vmem:[#allocation81_spill] sm:$0xff] %v2955_v51  ;;  %v2984_v51 = vld [vmem:[#allocation5 + $0x8] sm:$0xff]  ;;  %468 = vmatpush.msra.mxu2 %v2978_v37 }
  0x7e   :  { %4693 = vst [vmem:[#allocation82_spill] sm:$0xff] %v2957_v43  ;;  %429 = vmatpush.msra.mxu0 %v2984_v51 }
  0x7f   :  { %4694 = vst [vmem:[#allocation83_spill] sm:$0xff] %v2959_v63 }
  0x80   :  { %4696 = vst [vmem:[#allocation85_spill] sm:$0xff] %v2965_v40  ;;  %563 = vmatpush.msrb.mxu0 %v2696_v46 }
  0x81   :  { %4697 = vst [vmem:[#allocation86_spill] sm:$0xff] %v2969_v45 }
  0x82   :  { %4698 = vst [vmem:[#allocation87_spill] sm:$0xff] %v2971_v42  ;;  %564 = vmatpush.msrb.mxu0 %v2703_v48 }
  0x83   :  { %4700 = vst [vmem:[#allocation89_spill] sm:$0xff] %v2978_v37 }
  0x84   :  { %4702 = vst [vmem:[#allocation91_spill] sm:$0xff] %v2984_v51  ;;  %565 = vmatpush.msrb.mxu0 %v2710_v50 }
  0x86   :  { %566 = vmatpush.msrb.mxu0 %v2718_v52 }
  0x88   :  { %567 = vmatpush.msrb.mxu0 %v2723_v53 }
  0x8a   :  { %568 = vmatpush.msrb.mxu0 %v2728_v54 }
  0x8c   :  { %569 = vmatpush.msrb.mxu0 %v2733_v55 }
  0x8e   :  { %570 = vmatpush.msrb.mxu0 %v2738_v56 }
  0x90   :  { %571 = vmatpush.msrb.mxu0 %v2743_v57 }
  0x92   :  { %572 = vmatpush.msrb.mxu0 %v2748_v58 }
  0x94   :  { %573 = vmatpush.msrb.mxu0 %v2772_v59 }
  0x96   :  { %574 = vmatpush.msrb.mxu0 %v2775_v60 }
  0xac   :  { %v163_v49 = vpop.f32.mrf.mxu0 }
  0xad   :  { %v164_v62 = vadd.f32 %v163_v49, %v2910_v39  ;;  %v2951_v49 = vperm.slane %v2883_v44, 3  ;;  %v2953_v39 = vld [vmem:[#allocation5 + $0x70] sm:$0xff] }
  0xae   :  { %4691 = vst [vmem:[#allocation80_spill] sm:$0xff] %v2953_v39  ;;  %446 = vmatpush.msra.mxu1 %v2953_v39  ;;  %v2982_v39 = vld [vmem:[#allocation5] sm:$0xff] }
  0xaf   :  { %v1974_v36 = vmul.f32 -1.442695, %v164_v62  ;;  %4690 = vst [vmem:[#allocation79_spill] sm:$0xff] %v2951_v49  ;;  %v2963_v62 = vld [vmem:[#allocation5 + $0x50] sm:$0xff]  ;;  %409 = vmatpush.msrb.mxu3 %v2982_v39 }
  0xb0   :  { %4695 = vst [vmem:[#allocation84_spill] sm:$0xff] %v2963_v62  ;;  %447 = vmatpush.msra.mxu1 %v2963_v62 }
  0xb1   :  { %2013 = vpow2.f32 %v1974_v36  ;;  %v2976_v36 = vld [vmem:[#allocation5 + $0x30] sm:$0xff]  ;;  %4701 = vst [vmem:[#allocation90_spill] sm:$0xff] %v2982_v39  ;;  %543 = vmatpush.msra.mxu3 %v2547_v0 }
  0xb2   :  { %v203_v34 = vpop.f32.mrf.mxu2  ;;  %4699 = vst [vmem:[#allocation88_spill] sm:$0xff] %v2976_v36  ;;  %448 = vmatpush.msra.mxu1 %v2976_v36 }
  0xb3   :  { %v204_v61 = vadd.f32 %v203_v34, %v2951_v49  ;;  %v2988_v34 = vld [vmem:[#allocation5 + $0x10] sm:$0xff]  ;;  %v2990_v49 = vld [vmem:[#allocation5 + $0x18] sm:$0xff]  ;;  %544 = vmatpush.msra.mxu3 %v2551_v2 }
  0xb4   :  { %4703 = vst [vmem:[#allocation92_spill] sm:$0xff] %v2988_v34  ;;  %449 = vmatpush.msra.mxu1 %v2988_v34  ;;  %469 = vmatpush.msra.mxu2 %v2990_v49 }
  0xb5   :  { %v1975_v47 = vmul.f32 -1.442695, %v204_v61  ;;  %4704 = vst [vmem:[#allocation93_spill] sm:$0xff] %v2990_v49  ;;  %v3001_v61 = vperm.slane %v2883_v44, 2  ;;  %545 = vmatpush.msra.mxu3 %v2557_v4 }
  0xb6   :  { %583 = vmatpush.msrb.mxu1 %v2578_v10  ;;  %603 = vmatpush.msrb.mxu2 %v2549_v1 }
  0xb7   :  { %v2014_v62 = vpop.eup %2013  ;;  %2015 = vpow2.f32 %v1975_v47  ;;  %4705 = vst [vmem:[#allocation94_spill] sm:$0xff] %v3001_v61  ;;  %v183_v47 = vpop.f32.mrf.mxu1  ;;  %546 = vmatpush.msra.mxu3 %v2564_v6 }
  0xb8   :  { %v209_v40 = vadd.f32 1.0, %v2014_v62  ;;  %584 = vmatpush.msrb.mxu1 %v2585_v13  ;;  %604 = vmatpush.msrb.mxu2 %v2555_v3  ;;  %v184_v10 = vadd.f32 %v183_v47, %v3001_v61  ;;  %v4707_v47 = vld [vmem:[#allocation20_spill] sm:$0xff] }
  0xb9   :  { %547 = vmatpush.msra.mxu3 %v2571_v8 }
  0xba   :  { %2017 = vrcp.f32 %v209_v40  ;;  %585 = vmatpush.msrb.mxu1 %v2590_v14  ;;  %605 = vmatpush.msrb.mxu2 %v2559_v5  ;;  %v221_v4 = vand.u32 2147483648, %v209_v40  ;;  %v219_v6 = vand.u32 2147483647, %v209_v40  ;;  %vm215_vm1 = vweird.f32 %v209_v40 }
  0xbb   :  { %548 = vmatpush.msra.mxu3 %v2580_v11 }
  0xbc   :  { %586 = vmatpush.msrb.mxu1 %v2600_v17  ;;  %606 = vmatpush.msrb.mxu2 %v2566_v7  ;;  %v222_v11 = vor.u32 1.1754944e-38, %v221_v4  ;;  %vm220_vm3 = vcmp.eq.f32.partialorder %v219_v6, 8.507059e+37  ;;  %v4713_v4 = vld [vmem:[#allocation16_spill] sm:$0xff]  ;;  %v4716_v6 = vld [vmem:[#allocation17_spill] sm:$0xff] }
  0xbd   :  { %v2016_v0 = vpop.eup %2015  ;;  %549 = vmatpush.msra.mxu3 %v2592_v15 }
  0xbe   :  { %v3011_v62 = vadd.f32 1.0, %v2016_v0  ;;  %587 = vmatpush.msrb.mxu1 %v2610_v20  ;;  %607 = vmatpush.msrb.mxu2 %v2573_v9  ;;  %v4708_v0 = vld [vmem:[#allocation13_spill] sm:$0xff] }
  0xbf   :  { %550 = vmatpush.msra.mxu3 %v2602_v18 }
  0xc0   :  { %v2018_v1 = vpop.eup %2017  ;;  %2019 = vrcp.f32 %v3011_v62  ;;  %588 = vmatpush.msrb.mxu1 %v2620_v23  ;;  %608 = vmatpush.msrb.mxu2 %v2582_v12  ;;  %vm235_vm5 = vweird.f32 %v3011_v62 }
  0xc1   :  { %v211_v2 = vmul.f32 %v2018_v1, %v209_v40  ;;  %2021 = vtanh.f32 %v184_v10  ;;  %vm216_vm0 = vweird.f32 %v2018_v1  ;;  %551 = vmatpush.msra.mxu3 %v2612_v21  ;;  %v241_v21 = vand.u32 2147483648, %v3011_v62 }
  0xc2   :  { %589 = vmatpush.msrb.mxu1 %v2630_v26  ;;  %609 = vmatpush.msrb.mxu2 %v2594_v16  ;;  %vm217_vm2 = vmor %vm215_vm1, %vm216_vm0 }
  0xc3   :  { %v212_v3 = vsub.f32 1.0, %v211_v2  ;;  %552 = vmatpush.msra.mxu3 %v2622_v24 }
  0xc4   :  { %590 = vmatpush.msrb.mxu1 %v2640_v29  ;;  %610 = vmatpush.msrb.mxu2 %v2604_v19 }
  0xc5   :  { %v213_v5 = vmul.f32 %v2018_v1, %v212_v3  ;;  %553 = vmatpush.msra.mxu3 %v2632_v27  ;;  %v4706_v27 = vld [vmem:[#allocation24_spill] sm:$0xff]  ;;  %v4711_v3 = vld [vmem:[#allocation21_spill] sm:$0xff] }
  0xc6   :  { %v2020_v7 = vpop.eup %2019  ;;  %591 = vmatpush.msrb.mxu1 %v2650_v32  ;;  %611 = vmatpush.msrb.mxu2 %v2614_v22  ;;  %v239_v22 = vand.u32 2147483647, %v3011_v62 }
  0xc7   :  { %v231_v8 = vmul.f32 %v2020_v7, %v3011_v62  ;;  %v214_v9 = vadd.f32 %v2018_v1, %v213_v5  ;;  %v2022_v10 = vpop.eup %2021  ;;  %vm236_vm4 = vweird.f32 %v2020_v7  ;;  %554 = vmatpush.msra.mxu3 %v2642_v30  ;;  %575 = vmatpush.msrb.mxu0 %v4706_v27  ;;  %v4709_v30 = vld [vmem:[#allocation14_spill] sm:$0xff] }
  0xc8   :  { %592 = vmatpush.msrb.mxu1 %v2660_v35  ;;  %612 = vmatpush.msrb.mxu2 %v2624_v25  ;;  %vm237_vm6 = vmor %vm235_vm5, %vm236_vm4  ;;  %v242_v25 = vor.u32 1.1754944e-38, %v241_v21  ;;  %vm240_vm7 = vcmp.eq.f32.partialorder %v239_v22, 8.507059e+37  ;;  %v4715_v5 = vld [vmem:[#allocation22_spill] sm:$0xff]  ;;  %v4728_v22 = vld [vmem:[#allocation35_spill] sm:$0xff] }
  0xc9   :  { %v232_v12 = vsub.f32 1.0, %v231_v8  ;;  %v218_v15 = vsel %vm217_vm2, %v2018_v1, %v214_v9  ;;  %555 = vmatpush.msra.mxu3 %v2652_v33  ;;  %v4710_v1 = vld [vmem:[#allocation25_spill] sm:$0xff]  ;;  %v4714_v33 = vld [vmem:[#allocation26_spill] sm:$0xff]  ;;  %v4718_v8 = vld [vmem:[#allocation27_spill] sm:$0xff] }
  0xca   :  { %v223_v16 = vsel %vm220_vm3, %v222_v11, %v218_v15  ;;  %593 = vmatpush.msrb.mxu1 %v2670_v38  ;;  %613 = vmatpush.msrb.mxu2 %v2634_v28  ;;  %v4719_v9 = vld [vmem:[#allocation23_spill] sm:$0xff]  ;;  %v4721_v11 = vld [vmem:[#allocation28_spill] sm:$0xff]  ;;  %v4723_v15 = vld [vmem:[#allocation30_spill] sm:$0xff] }
  0xcb   :  { %v3042_v18 = vmul.f32 %v2022_v10, %v223_v16  ;;  %v233_v40 = vmul.f32 %v2020_v7, %v232_v12  ;;  %556 = vmatpush.msra.mxu3 %v4709_v30  ;;  %576 = vmatpush.msrb.mxu0 %v4710_v1  ;;  %v4720_v10 = vld [vmem:[#allocation19_spill] sm:$0xff]  ;;  %v4722_v12 = vld [vmem:[#allocation29_spill] sm:$0xff]  ;;  %v4727_v21 = vld [vmem:[#allocation34_spill] sm:$0xff] }
  0xcc   :  { %594 = vmatpush.msrb.mxu1 %v2680_v41  ;;  %614 = vmatpush.msrb.mxu2 %v2644_v31  ;;  %v4712_v31 = vld [vmem:[#allocation15_spill] sm:$0xff]  ;;  %v4734_v30 = vld [vmem:[#allocation41_spill] sm:$0xff] }
  0xcd   :  { %2023 = vtanh.f32 %v3042_v18  ;;  %v234_v19 = vadd.f32 %v2020_v7, %v233_v40  ;;  %557 = vmatpush.msra.mxu3 %v4713_v4  ;;  %577 = vmatpush.msrb.mxu0 %v4714_v33  ;;  %v4724_v16 = vld [vmem:[#allocation31_spill] sm:$0xff]  ;;  %v4725_v40 = vld [vmem:[#allocation32_spill] sm:$0xff] }
  0xce   :  { %595 = vmatpush.msrb.mxu1 %v4707_v47  ;;  %615 = vmatpush.msrb.mxu2 %v4708_v0  ;;  %v4731_v0 = vld [vmem:[#allocation38_spill] sm:$0xff]  ;;  %v4737_v4 = vld [vmem:[#allocation44_spill] sm:$0xff] }
  0xcf   :  { %v238_v24 = vsel %vm237_vm6, %v2020_v7, %v234_v19  ;;  %v4717_v7 = vld [vmem:[#allocation18_spill] sm:$0xff]  ;;  %578 = vmatpush.msrb.mxu0 %v4718_v8  ;;  %v4726_v19 = vld [vmem:[#allocation33_spill] sm:$0xff] }
  0xd0   :  { %v243_v62 = vsel %vm240_vm7, %v242_v25, %v238_v24  ;;  %596 = vmatpush.msrb.mxu1 %v4711_v3  ;;  %616 = vmatpush.msrb.mxu2 %v4712_v31  ;;  %v4729_v24 = vld [vmem:[#allocation36_spill] sm:$0xff]  ;;  %v4730_v25 = vld [vmem:[#allocation37_spill] sm:$0xff]  ;;  %v4736_v31 = vld [vmem:[#allocation43_spill] sm:$0xff] }
  0xd1   :  { %558 = vmatpush.msra.mxu3 %v4717_v7  ;;  %v4740_v7 = vld [vmem:[#allocation47_spill] sm:$0xff] }
  0xd2   :  { %597 = vmatpush.msrb.mxu1 %v4715_v5  ;;  %617 = vmatpush.msrb.mxu2 %v4716_v6  ;;  %v4738_v5 = vld [vmem:[#allocation45_spill] sm:$0xff]  ;;  %v4739_v6 = vld [vmem:[#allocation46_spill] sm:$0xff] }
  0xd3   :  { %v2024_v28 = vpop.eup %2023 }
  0xd4   :  { %v247_v2 = vmul.f32 %v2024_v28, %v243_v62  ;;  %598 = vmatpush.msrb.mxu1 %v4719_v9  ;;  %618 = vmatpush.msrb.mxu2 %v4720_v10  ;;  %v4732_v28 = vld [vmem:[#allocation39_spill] sm:$0xff]  ;;  %v4733_v62 = vld [vmem:[#allocation40_spill] sm:$0xff]  ;;  %v4742_v10 = vld [vmem:[#allocation49_spill] sm:$0xff] }
  0xd5   :  { %v4741_v9 = vld [vmem:[#allocation48_spill] sm:$0xff] }
  0xd6   :  { %410 = vmatmul.f32.vlgmr.msrb.gmra.mxu3 %v247_v2  ;;  %430 = vmatmul.f32.vlgmr.msra.gmra.mxu0 %v247_v2 }
  0xd7   :  { %450 = vmatmul.f32.vlgmr.msra.gmra.mxu1 %v247_v2  ;;  %470 = vmatmul.f32.vlgmr.msra.gmra.mxu2 %v247_v2  ;;  %v4735_v2 = vld [vmem:[#allocation42_spill] sm:$0xff] }
  0xd8   :  { %623 = vmatpush.msrb.mxu3 %v4721_v11  ;;  %643 = vmatpush.msra.mxu0 %v4722_v12 }
  0xd9   :  { %663 = vmatpush.msra.mxu1 %v4723_v15  ;;  %683 = vmatpush.msra.mxu2 %v4724_v16 }
  0xda   :  { %624 = vmatpush.msrb.mxu3 %v4725_v40  ;;  %644 = vmatpush.msra.mxu0 %v4726_v19 }
  0xdb   :  { %664 = vmatpush.msra.mxu1 %v4727_v21  ;;  %684 = vmatpush.msra.mxu2 %v4728_v22 }
  0xdc   :  { %625 = vmatpush.msrb.mxu3 %v4729_v24  ;;  %645 = vmatpush.msra.mxu0 %v4730_v25 }
  0xdd   :  { %665 = vmatpush.msra.mxu1 %v4731_v0  ;;  %685 = vmatpush.msra.mxu2 %v4732_v28  ;;  %v4743_v28 = vld [vmem:[#allocation50_spill] sm:$0xff] }
  0xde   :  { %626 = vmatpush.msrb.mxu3 %v4733_v62  ;;  %646 = vmatpush.msra.mxu0 %v4734_v30  ;;  %v4744_v62 = vld [vmem:[#allocation51_spill] sm:$0xff]  ;;  %v4745_v30 = vld [vmem:[#allocation52_spill] sm:$0xff] }
  0xdf   :  { %666 = vmatpush.msra.mxu1 %v4735_v2  ;;  %686 = vmatpush.msra.mxu2 %v4736_v31  ;;  %v4746_v2 = vld [vmem:[#allocation53_spill] sm:$0xff]  ;;  %v4747_v31 = vld [vmem:[#allocation54_spill] sm:$0xff] }
  0xe0   :  { %627 = vmatpush.msrb.mxu3 %v4737_v4  ;;  %647 = vmatpush.msra.mxu0 %v4738_v5  ;;  %v4748_v4 = vld [vmem:[#allocation55_spill] sm:$0xff]  ;;  %v4749_v5 = vld [vmem:[#allocation56_spill] sm:$0xff] }
  0xe1   :  { %667 = vmatpush.msra.mxu1 %v4739_v6  ;;  %687 = vmatpush.msra.mxu2 %v4740_v7  ;;  %v4750_v6 = vld [vmem:[#allocation57_spill] sm:$0xff]  ;;  %v4751_v7 = vld [vmem:[#allocation58_spill] sm:$0xff] }
  0xe2   :  { %628 = vmatpush.msrb.mxu3 %v4741_v9  ;;  %648 = vmatpush.msra.mxu0 %v4742_v10  ;;  %v4752_v9 = vld [vmem:[#allocation59_spill] sm:$0xff]  ;;  %v4753_v10 = vld [vmem:[#allocation60_spill] sm:$0xff] }
  0xe3   :  { %668 = vmatpush.msra.mxu1 %v4743_v28  ;;  %688 = vmatpush.msra.mxu2 %v4744_v62  ;;  %v4754_v28 = vld [vmem:[#allocation61_spill] sm:$0xff]  ;;  %v4755_v62 = vld [vmem:[#allocation62_spill] sm:$0xff] }
  0xe4   :  { %629 = vmatpush.msrb.mxu3 %v4745_v30  ;;  %649 = vmatpush.msra.mxu0 %v4746_v2  ;;  %v4756_v30 = vld [vmem:[#allocation63_spill] sm:$0xff]  ;;  %v4757_v2 = vld [vmem:[#allocation64_spill] sm:$0xff] }
  0xe5   :  { %669 = vmatpush.msra.mxu1 %v4747_v31  ;;  %689 = vmatpush.msra.mxu2 %v4748_v4  ;;  %v4758_v31 = vld [vmem:[#allocation65_spill] sm:$0xff]  ;;  %v4759_v4 = vld [vmem:[#allocation66_spill] sm:$0xff] }
  0xe6   :  { %630 = vmatpush.msrb.mxu3 %v4749_v5  ;;  %650 = vmatpush.msra.mxu0 %v4750_v6  ;;  %v4760_v5 = vld [vmem:[#allocation68_spill] sm:$0xff]  ;;  %v4761_v6 = vld [vmem:[#allocation69_spill] sm:$0xff] }
  0xe7   :  { %670 = vmatpush.msra.mxu1 %v4751_v7  ;;  %690 = vmatpush.msra.mxu2 %v4752_v9  ;;  %v4762_v7 = vld [vmem:[#allocation70_spill] sm:$0xff]  ;;  %v4763_v9 = vld [vmem:[#allocation71_spill] sm:$0xff] }
  0xe8   :  { %631 = vmatpush.msrb.mxu3 %v4753_v10  ;;  %651 = vmatpush.msra.mxu0 %v4754_v28  ;;  %v4764_v10 = vld [vmem:[#allocation72_spill] sm:$0xff]  ;;  %v4765_v28 = vld [vmem:[#allocation73_spill] sm:$0xff] }
  0xe9   :  { %671 = vmatpush.msra.mxu1 %v4755_v62  ;;  %691 = vmatpush.msra.mxu2 %v4756_v30  ;;  %v4766_v62 = vld [vmem:[#allocation74_spill] sm:$0xff]  ;;  %v4767_v30 = vld [vmem:[#allocation75_spill] sm:$0xff] }
  0xea   :  { %632 = vmatpush.msrb.mxu3 %v4757_v2  ;;  %652 = vmatpush.msra.mxu0 %v4758_v31  ;;  %v4768_v2 = vld [vmem:[#allocation76_spill] sm:$0xff]  ;;  %v4769_v31 = vld [vmem:[#allocation77_spill] sm:$0xff] }
  0xeb   :  { %672 = vmatpush.msra.mxu1 %v4759_v4  ;;  %692 = vmatpush.msra.mxu2 %v4760_v5  ;;  %v4770_v4 = vld [vmem:[#allocation78_spill] sm:$0xff]  ;;  %v4771_v5 = vld [vmem:[#allocation80_spill] sm:$0xff] }
  0xec   :  { %633 = vmatpush.msrb.mxu3 %v4761_v6  ;;  %653 = vmatpush.msra.mxu0 %v4762_v7  ;;  %v4772_v6 = vld [vmem:[#allocation81_spill] sm:$0xff] }
  0xed   :  { %673 = vmatpush.msra.mxu1 %v4763_v9  ;;  %693 = vmatpush.msra.mxu2 %v4764_v10  ;;  %v4773_v10 = vld [vmem:[#allocation84_spill] sm:$0xff] }
  0xee   :  { %634 = vmatpush.msrb.mxu3 %v4765_v28  ;;  %654 = vmatpush.msra.mxu0 %v4766_v62  ;;  %v4774_v28 = vld [vmem:[#allocation85_spill] sm:$0xff] }
  0xef   :  { %674 = vmatpush.msra.mxu1 %v4767_v30  ;;  %694 = vmatpush.msra.mxu2 %v4768_v2 }
  0xf0   :  { %635 = vmatpush.msrb.mxu3 %v4769_v31  ;;  %655 = vmatpush.msra.mxu0 %v4770_v4 }
  0xf1   :  { %675 = vmatpush.msra.mxu1 %v4771_v5  ;;  %695 = vmatpush.msra.mxu2 %v4772_v6 }
  0xf2   :  { %636 = vmatpush.msrb.mxu3 %v2957_v43  ;;  %656 = vmatpush.msra.mxu0 %v2959_v63 }
  0xf3   :  { %676 = vmatpush.msra.mxu1 %v4773_v10  ;;  %696 = vmatpush.msra.mxu2 %v4774_v28  ;;  %v287_v63 = vpop.f32.mrf.mxu0  ;;  %v3141_v10 = vperm.slane %v2883_v44, 1 }
  0xf4   :  { %637 = vmatpush.msrb.mxu3 %v2969_v45  ;;  %657 = vmatpush.msra.mxu0 %v2971_v42 }
  0xf5   :  { %677 = vmatpush.msra.mxu1 %v2976_v36  ;;  %697 = vmatpush.msra.mxu2 %v2978_v37  ;;  %4775 = vst [vmem:[#allocation24_spill] sm:$0xff] %v3141_v10  ;;  %v288_v45 = vadd.f32 %v287_v63, %v3141_v10  ;;  %v4776_v37 = vld [vmem:[#allocation79_spill] sm:$0xff] }
  0xf6   :  { %638 = vmatpush.msrb.mxu3 %v2982_v39  ;;  %658 = vmatpush.msra.mxu0 %v2984_v51  ;;  %v1980_v51 = vld [vmem:[%s4300_s0 + $0x4] sm:$0x3] }
  0xf7   :  { %678 = vmatpush.msra.mxu1 %v2988_v34  ;;  %698 = vmatpush.msra.mxu2 %v2990_v49  ;;  %v4777_v34 = vld [vmem:[#allocation67_spill] sm:$0xff] }
  0xf8   :  { %559 = vmatmul.f32.vlgmr.msra.gmra.mxu3 %v1980_v51  ;;  %579 = vmatmul.f32.vlgmr.msrb.gmra.mxu0 %v1980_v51  ;;  %v3149_v10 = vld [vmem:[#allocation2 + $0x1e0] sm:$0xff] }
  0xf9   :  { %v267_v28 = vpop.f32.mrf.mxu3  ;;  %599 = vmatmul.f32.vlgmr.msrb.gmra.mxu1 %v1980_v51  ;;  %619 = vmatmul.f32.vlgmr.msrb.gmra.mxu2 %v1980_v51  ;;  %v3162_v51 = vld [vmem:[#allocation2 + $0x1d8] sm:$0xff] }
  0xfa   :  { %v327_v42 = vpop.f32.mrf.mxu2  ;;  %v268_v39 = vadd.f32 %v267_v28, %v4777_v34  ;;  %772 = vmatpush.msra.mxu3 %v3149_v10  ;;  %792 = vmatpush.msrb.mxu0 %v2696_v46  ;;  %v3157_v28 = vld [vmem:[#allocation2 + $0x1c0] sm:$0xff] }
  0xfb   :  { %v328_v5 = vadd.f32 %v327_v42, %v4776_v37  ;;  %v3154_v42 = vld [vmem:[#allocation2 + $0x1f8] sm:$0xff] }
  0xfc   :  { %832 = vmatpush.msrb.mxu2 %v3154_v42  ;;  %773 = vmatpush.msra.mxu3 %v3157_v28 }
  0xfd   :  { %793 = vmatpush.msrb.mxu0 %v2703_v48  ;;  %v3172_v48 = vld [vmem:[#allocation2 + $0x1b8] sm:$0xff] }
  0xfe   :  { %833 = vmatpush.msrb.mxu2 %v3162_v51 }
  0xff   :  { %794 = vmatpush.msrb.mxu0 %v2710_v50  ;;  %v3181_v50 = vld [vmem:[#allocation2 + $0x198] sm:$0xff] }
 0x100   :  { %834 = vmatpush.msrb.mxu2 %v3172_v48 }
 0x101   :  { %795 = vmatpush.msrb.mxu0 %v2718_v52 }
 0x102   :  { %835 = vmatpush.msrb.mxu2 %v3181_v50 }
 0x103   :  { %796 = vmatpush.msrb.mxu0 %v2723_v53  ;;  %v3204_v53 = vld [vmem:[#allocation2 + $0x120] sm:$0xff] }
 0x105   :  { %797 = vmatpush.msrb.mxu0 %v2728_v54  ;;  %v3212_v54 = vld [vmem:[#allocation2 + $0x138] sm:$0xff] }
 0x107   :  { %798 = vmatpush.msrb.mxu0 %v2733_v55 }
 0x109   :  { %799 = vmatpush.msrb.mxu0 %v2738_v56  ;;  %v3236_v56 = vld [vmem:[#allocation2 + $0xc0] sm:$0xff] }
 0x10a   :  { %4783 = vst [vmem:[#allocation21_spill] sm:$0xff] %v3236_v56 }
 0x10b   :  { %800 = vmatpush.msrb.mxu0 %v2743_v57 }
 0x10d   :  { %801 = vmatpush.msrb.mxu0 %v2748_v58 }
 0x10f   :  { %802 = vmatpush.msrb.mxu0 %v2772_v59  ;;  %v3304_v59 = vld [vmem:[#allocation2 + $0x30] sm:$0xff] }
 0x111   :  { %803 = vmatpush.msrb.mxu0 %v2775_v60 }
 0x113   :  { %804 = vmatpush.msrb.mxu0 %v4706_v27 }
 0x115   :  { %805 = vmatpush.msrb.mxu0 %v4710_v1 }
 0x117   :  { %806 = vmatpush.msrb.mxu0 %v4714_v33  ;;  %v3315_v33 = vld [vmem:[#allocation2 + $0x10] sm:$0xff] }
 0x119   :  { %807 = vmatpush.msrb.mxu0 %v4718_v8 }
 0x153   :  { %v431_v43 = vpop.f32.mrf.mxu0 }
 0x154   :  { %v475_v36 = vadd.f32 %v431_v43, %v288_v45  ;;  %v4778_v45 = vld [vmem:[#allocation12_spill] sm:$0xff] }
 0x155   :  { %812 = vmatpush.msrb.mxu1 %v4778_v45  ;;  %v3199_v45 = vld [vmem:[#allocation2 + $0x158] sm:$0xff] }
 0x156   :  { %v1978_v6 = vmul.f32 -1.442695, %v475_v36 }
 0x157   :  { %813 = vmatpush.msrb.mxu1 %v2585_v13  ;;  %v307_v13 = vpop.f32.mrf.mxu1 }
 0x158   :  { %2025 = vpow2.f32 %v1978_v6  ;;  %v3175_v6 = vld [vmem:[#allocation2 + $0x180] sm:$0xff]  ;;  %v308_v55 = vadd.f32 %v307_v13, %v3001_v61 }
 0x159   :  { %v411_v44 = vpop.f32.mrf.mxu3  ;;  %814 = vmatpush.msrb.mxu1 %v2590_v14  ;;  %v3184_v14 = vld [vmem:[#allocation2 + $0x160] sm:$0xff] }
 0x15a   :  { %v474_v49 = vadd.f32 %v411_v44, %v268_v39  ;;  %v471_v63 = vpop.f32.mrf.mxu2  ;;  %v3189_v44 = vld [vmem:[#allocation2 + $0x178] sm:$0xff] }
 0x15b   :  { %v477_v43 = vadd.f32 %v471_v63, %v328_v5  ;;  %v3165_v5 = vld [vmem:[#allocation2 + $0x1a0] sm:$0xff]  ;;  %815 = vmatpush.msrb.mxu1 %v2600_v17  ;;  %836 = vmatpush.msrb.mxu2 %v3189_v44 }
 0x15c   :  { %v1977_v36 = vmul.f32 -1.442695, %v474_v49  ;;  %774 = vmatpush.msra.mxu3 %v3165_v5  ;;  %v3192_v63 = vld [vmem:[#allocation2 + $0x140] sm:$0xff] }
 0x15d   :  { %v1979_v39 = vmul.f32 -1.442695, %v477_v43  ;;  %816 = vmatpush.msrb.mxu1 %v2610_v20  ;;  %837 = vmatpush.msrb.mxu2 %v3199_v45 }
 0x15e   :  { %v2026_v46 = vpop.eup %2025  ;;  %2027 = vpow2.f32 %v1977_v36  ;;  %775 = vmatpush.msra.mxu3 %v3175_v6 }
 0x15f   :  { %v3169_v49 = vadd.f32 1.0, %v2026_v46  ;;  %2029 = vpow2.f32 %v1979_v39  ;;  %817 = vmatpush.msrb.mxu1 %v2620_v23  ;;  %838 = vmatpush.msrb.mxu2 %v3212_v54  ;;  %v3218_v39 = vld [vmem:[#allocation2 + $0x100] sm:$0xff] }
 0x160   :  { %776 = vmatpush.msra.mxu3 %v3184_v14  ;;  %4779 = vst [vmem:[#allocation20_spill] sm:$0xff] %v3218_v39 }
 0x161   :  { %2031 = vrcp.f32 %v3169_v49  ;;  %818 = vmatpush.msrb.mxu1 %v2630_v26  ;;  %v3224_v26 = vld [vmem:[#allocation2 + $0x118] sm:$0xff]  ;;  %vm506_vm9 = vweird.f32 %v3169_v49 }
 0x162   :  { %777 = vmatpush.msra.mxu3 %v3192_v63  ;;  %4780 = vst [vmem:[#allocation13_spill] sm:$0xff] %v3224_v26  ;;  %839 = vmatpush.msrb.mxu2 %v3224_v26 }
 0x163   :  { %819 = vmatpush.msrb.mxu1 %v2640_v29 }
 0x164   :  { %v2028_v52 = vpop.eup %2027  ;;  %778 = vmatpush.msra.mxu3 %v3204_v53 }
 0x165   :  { %v2030_v17 = vpop.eup %2029  ;;  %v3196_v43 = vadd.f32 1.0, %v2028_v52  ;;  %v451_v52 = vpop.f32.mrf.mxu1  ;;  %820 = vmatpush.msrb.mxu1 %v2650_v32 }
 0x166   :  { %v3202_v20 = vadd.f32 1.0, %v2030_v17  ;;  %779 = vmatpush.msra.mxu3 %v3218_v39  ;;  %v3227_v17 = vld [vmem:[#allocation2 + $0xe0] sm:$0xff]  ;;  %v3232_v39 = vld [vmem:[#allocation2 + $0xf8] sm:$0xff] }
 0x167   :  { %v3208_v36 = vpop.eup %2031  ;;  %2033 = vrcp.f32 %v3196_v43  ;;  %4781 = vst [vmem:[#allocation14_spill] sm:$0xff] %v3227_v17  ;;  %840 = vmatpush.msrb.mxu2 %v3232_v39  ;;  %821 = vmatpush.msrb.mxu1 %v2660_v35  ;;  %v512_v35 = vand.u32 2147483648, %v3169_v49  ;;  %vm487_vm13 = vweird.f32 %v3196_v43 }
 0x168   :  { %v502_v23 = vmul.f32 %v3208_v36, %v3169_v49  ;;  %2035 = vrcp.f32 %v3202_v20  ;;  %780 = vmatpush.msra.mxu3 %v3227_v17  ;;  %4782 = vst [vmem:[#allocation25_spill] sm:$0xff] %v3232_v39  ;;  %v3241_v17 = vld [vmem:[#allocation2 + $0xd8] sm:$0xff]  ;;  %vm507_vm8 = vweird.f32 %v3208_v36  ;;  %v3249_v39 = vld [vmem:[#allocation2 + $0xa0] sm:$0xff]  ;;  %vm526_vm1 = vweird.f32 %v3202_v20 }
 0x169   :  { %4784 = vst [vmem:[#allocation15_spill] sm:$0xff] %v3241_v17  ;;  %841 = vmatpush.msrb.mxu2 %v3241_v17  ;;  %822 = vmatpush.msrb.mxu1 %v2670_v38  ;;  %v3262_v17 = vld [vmem:[#allocation2 + $0x80] sm:$0xff]  ;;  %vm3268_vm10 = vmor %vm506_vm9, %vm507_vm8  ;;  %v493_v38 = vand.u32 2147483648, %v3196_v43  ;;  %v530_v8 = vand.u32 2147483647, %v3202_v20 }
 0x16a   :  { %v503_v46 = vsub.f32 1.0, %v502_v23  ;;  %781 = vmatpush.msra.mxu3 %v3236_v56  ;;  %v476_v23 = vadd.f32 %v451_v52, %v308_v55  ;;  %4785 = vst [vmem:[#allocation16_spill] sm:$0xff] %v3249_v39  ;;  %v3257_v55 = vld [vmem:[#allocation2 + $0xb8] sm:$0xff]  ;;  %v510_v52 = vand.u32 2147483647, %v3169_v49 }
 0x16b   :  { %4786 = vst [vmem:[#allocation26_spill] sm:$0xff] %v3257_v55  ;;  %842 = vmatpush.msrb.mxu2 %v3257_v55  ;;  %823 = vmatpush.msrb.mxu1 %v2680_v41  ;;  %v3274_v55 = vld [vmem:[#allocation2 + $0x98] sm:$0xff]  ;;  %v494_v27 = vor.u32 1.1754944e-38, %v493_v38  ;;  %vm531_vm3 = vcmp.eq.f32.partialorder %v530_v8, 8.507059e+37 }
 0x16c   :  { %v504_v29 = vmul.f32 %v3208_v36, %v503_v46  ;;  %782 = vmatpush.msra.mxu3 %v3249_v39  ;;  %4787 = vst [vmem:[#allocation22_spill] sm:$0xff] %v3262_v17  ;;  %2037 = vtanh.f32 %v476_v23  ;;  %v513_v23 = vor.u32 1.1754944e-38, %v512_v35  ;;  %v3286_v39 = vld [vmem:[#allocation2 + $0x78] sm:$0xff]  ;;  %vm511_vm12 = vcmp.eq.f32.partialorder %v510_v52, 8.507059e+37 }
 0x16d   :  { %v2034_v13 = vpop.eup %2033  ;;  %843 = vmatpush.msrb.mxu2 %v3274_v55  ;;  %824 = vmatpush.msrb.mxu1 %v4707_v47  ;;  %v3296_v47 = vld [vmem:[#allocation2 + $0x58] sm:$0xff] }
 0x16e   :  { %v3244_v32 = vpop.eup %2035  ;;  %v505_v57 = vadd.f32 %v3208_v36, %v504_v29  ;;  %v483_v46 = vmul.f32 %v2034_v13, %v3196_v43  ;;  %783 = vmatpush.msra.mxu3 %v3262_v17  ;;  %vm488_vm11 = vweird.f32 %v2034_v13  ;;  %v3281_v17 = vld [vmem:[#allocation2 + $0x60] sm:$0xff] }
 0x16f   :  { %v522_v58 = vmul.f32 %v3244_v32, %v3202_v20  ;;  %844 = vmatpush.msrb.mxu2 %v3286_v39  ;;  %vm489_vm14 = vmor %vm487_vm13, %vm488_vm11  ;;  %825 = vmatpush.msrb.mxu1 %v4711_v3  ;;  %v3307_v3 = vld [vmem:[#allocation2 + $0x38] sm:$0xff]  ;;  %vm527_vm0 = vweird.f32 %v3244_v32 }
 0x170   :  { %v484_v29 = vsub.f32 1.0, %v483_v46  ;;  %v509_v49 = vsel %vm3268_vm10, %v3208_v36, %v505_v57  ;;  %v491_v46 = vand.u32 2147483647, %v3196_v43  ;;  %784 = vmatpush.msra.mxu3 %v3281_v17  ;;  %v3290_v57 = vld [vmem:[#allocation2 + $0x40] sm:$0xff]  ;;  %vm528_vm2 = vmor %vm526_vm1, %vm527_vm0 }
 0x171   :  { %v523_v41 = vsub.f32 1.0, %v522_v58  ;;  %845 = vmatpush.msrb.mxu2 %v3296_v47  ;;  %v3299_v58 = vld [vmem:[#allocation2 + $0x20] sm:$0xff]  ;;  %826 = vmatpush.msrb.mxu1 %v3304_v59 }
 0x172   :  { %v485_v60 = vmul.f32 %v2034_v13, %v484_v29  ;;  %785 = vmatpush.msra.mxu3 %v3290_v57  ;;  %v514_v29 = vsel %vm511_vm12, %v513_v23, %v509_v49  ;;  %vm492_vm15 = vcmp.eq.f32.partialorder %v491_v46, 8.507059e+37  ;;  %v2038_v43 = vpop.eup %2037  ;;  %v3311_v49 = vld [vmem:[#allocation2] sm:$0xff] }
 0x173   :  { %v524_v52 = vmul.f32 %v3244_v32, %v523_v41  ;;  %846 = vmatpush.msrb.mxu2 %v3307_v3  ;;  %827 = vmatpush.msrb.mxu1 %v3315_v33  ;;  %v4810_v8 = vld [vmem:[#allocation59_spill] sm:$0xff] }
 0x174   :  { %v486_v36 = vadd.f32 %v2034_v13, %v485_v60  ;;  %786 = vmatpush.msra.mxu3 %v3299_v58  ;;  %v3318_v60 = vld [vmem:[#allocation2 + $0x18] sm:$0xff] }
 0x175   :  { %847 = vmatpush.msrb.mxu2 %v3318_v60  ;;  %v525_v23 = vadd.f32 %v3244_v32, %v524_v52  ;;  %v4805_v52 = vld [vmem:[#allocation54_spill] sm:$0xff] }
 0x176   :  { %v490_v35 = vsel %vm489_vm14, %v2034_v13, %v486_v36  ;;  %v536_v13 = vmul.f32 %v514_v29, %v3042_v18  ;;  %787 = vmatpush.msra.mxu3 %v3311_v49  ;;  %v532_v18 = vand.u32 2147483648, %v3202_v20  ;;  %v4801_v20 = vld [vmem:[#allocation50_spill] sm:$0xff] }
 0x177   :  { %v495_v1 = vsel %vm492_vm15, %v494_v27, %v490_v35  ;;  %v529_v41 = vsel %vm528_vm2, %v3244_v32, %v525_v23  ;;  %v4802_v32 = vld [vmem:[#allocation51_spill] sm:$0xff]  ;;  %v4808_v23 = vld [vmem:[#allocation57_spill] sm:$0xff] }
 0x178   :  { %v537_v38 = vmul.f32 %v2038_v43, %v495_v1  ;;  %v533_v36 = vor.u32 1.1754944e-38, %v532_v18  ;;  %v4803_v43 = vld [vmem:[#allocation52_spill] sm:$0xff]  ;;  %v4804_v1 = vld [vmem:[#allocation53_spill] sm:$0xff]  ;;  %v4809_v18 = vld [vmem:[#allocation58_spill] sm:$0xff] }
 0x17a   :  { %v3321_v46 = vadd.f32 %v537_v38, %v536_v13  ;;  %v534_v27 = vsel %vm531_vm3, %v533_v36, %v529_v41  ;;  %v4806_v13 = vld [vmem:[#allocation55_spill] sm:$0xff]  ;;  %v4807_v38 = vld [vmem:[#allocation56_spill] sm:$0xff]  ;;  %v4812_v36 = vld [vmem:[#allocation61_spill] sm:$0xff] }
 0x17b   :  { %v4811_v41 = vld [vmem:[#allocation60_spill] sm:$0xff] }
 0x17c   :  { %2039 = vtanh.f32 %v3321_v46 }
 0x182   :  { %v2040_v29 = vpop.eup %2039 }
 0x183   :  { %v540_v35 = vmul.f32 %v2040_v29, %v534_v27  ;;  %v4813_v29 = vld [vmem:[#allocation62_spill] sm:$0xff]  ;;  %v4814_v27 = vld [vmem:[#allocation63_spill] sm:$0xff] }
 0x185   :  { %639 = vmatmul.f32.vlgmr.msrb.gmra.mxu3 %v540_v35  ;;  %659 = vmatmul.f32.vlgmr.msra.gmra.mxu0 %v540_v35 }
 0x186   :  { %679 = vmatmul.f32.vlgmr.msra.gmra.mxu1 %v540_v35  ;;  %699 = vmatmul.f32.vlgmr.msra.gmra.mxu2 %v540_v35  ;;  %v4815_v35 = vld [vmem:[#allocation64_spill] sm:$0xff] }
 0x187   :  { %852 = vmatpush.msrb.mxu3 %v4721_v11  ;;  %872 = vmatpush.msra.mxu0 %v4722_v12  ;;  %v4790_v11 = vld [vmem:[#allocation39_spill] sm:$0xff]  ;;  %v4791_v12 = vld [vmem:[#allocation40_spill] sm:$0xff] }
 0x188   :  { %892 = vmatpush.msra.mxu1 %v4723_v15  ;;  %912 = vmatpush.msra.mxu2 %v4724_v16  ;;  %v4792_v15 = vld [vmem:[#allocation41_spill] sm:$0xff]  ;;  %v4793_v16 = vld [vmem:[#allocation42_spill] sm:$0xff] }
 0x189   :  { %853 = vmatpush.msrb.mxu3 %v4725_v40  ;;  %873 = vmatpush.msra.mxu0 %v4726_v19  ;;  %v4794_v40 = vld [vmem:[#allocation43_spill] sm:$0xff]  ;;  %v4795_v19 = vld [vmem:[#allocation44_spill] sm:$0xff] }
 0x18a   :  { %893 = vmatpush.msra.mxu1 %v4727_v21  ;;  %913 = vmatpush.msra.mxu2 %v4728_v22  ;;  %v4796_v21 = vld [vmem:[#allocation45_spill] sm:$0xff]  ;;  %v4797_v22 = vld [vmem:[#allocation46_spill] sm:$0xff] }
 0x18b   :  { %854 = vmatpush.msrb.mxu3 %v4729_v24  ;;  %874 = vmatpush.msra.mxu0 %v4730_v25  ;;  %v4798_v24 = vld [vmem:[#allocation47_spill] sm:$0xff]  ;;  %v4799_v25 = vld [vmem:[#allocation48_spill] sm:$0xff] }
 0x18c   :  { %894 = vmatpush.msra.mxu1 %v4731_v0  ;;  %914 = vmatpush.msra.mxu2 %v4790_v11  ;;  %v4800_v0 = vld [vmem:[#allocation49_spill] sm:$0xff] }
 0x18d   :  { %855 = vmatpush.msrb.mxu3 %v4791_v12  ;;  %875 = vmatpush.msra.mxu0 %v4792_v15  ;;  %v4816_v11 = vld [vmem:[#allocation65_spill] sm:$0xff]  ;;  %v4817_v12 = vld [vmem:[#allocation66_spill] sm:$0xff]  ;;  %v4818_v15 = vld [vmem:[#allocation68_spill] sm:$0xff] }
 0x18e   :  { %895 = vmatpush.msra.mxu1 %v4793_v16  ;;  %915 = vmatpush.msra.mxu2 %v4794_v40  ;;  %v4819_v16 = vld [vmem:[#allocation69_spill] sm:$0xff]  ;;  %v4820_v40 = vld [vmem:[#allocation72_spill] sm:$0xff] }
 0x18f   :  { %856 = vmatpush.msrb.mxu3 %v4795_v19  ;;  %876 = vmatpush.msra.mxu0 %v4796_v21  ;;  %v4821_v19 = vld [vmem:[#allocation73_spill] sm:$0xff]  ;;  %v4822_v21 = vld [vmem:[#allocation80_spill] sm:$0xff] }
 0x190   :  { %896 = vmatpush.msra.mxu1 %v4797_v22  ;;  %916 = vmatpush.msra.mxu2 %v4798_v24  ;;  %v4823_v22 = vld [vmem:[#allocation81_spill] sm:$0xff]  ;;  %v4826_v24 = vld [vmem:[#allocation84_spill] sm:$0xff] }
 0x191   :  { %857 = vmatpush.msrb.mxu3 %v4799_v25  ;;  %877 = vmatpush.msra.mxu0 %v4800_v0  ;;  %v4827_v25 = vld [vmem:[#allocation85_spill] sm:$0xff]  ;;  %v4833_v0 = vld [vmem:[#allocation91_spill] sm:$0xff] }
 0x192   :  { %897 = vmatpush.msra.mxu1 %v4801_v20  ;;  %917 = vmatpush.msra.mxu2 %v4802_v32  ;;  %v4834_v20 = vld [vmem:[#allocation92_spill] sm:$0xff]  ;;  %v4835_v32 = vld [vmem:[#allocation93_spill] sm:$0xff] }
 0x193   :  { %858 = vmatpush.msrb.mxu3 %v4803_v43  ;;  %878 = vmatpush.msra.mxu0 %v4804_v1  ;;  %v580_v43 = vpop.f32.mrf.mxu0  ;;  %v560_v1 = vpop.f32.mrf.mxu3 }
 0x194   :  { %898 = vmatpush.msra.mxu1 %v4805_v52  ;;  %918 = vmatpush.msra.mxu2 %v4806_v13  ;;  %v4836_v52 = vld [vmem:[#allocation24_spill] sm:$0xff] }
 0x195   :  { %859 = vmatpush.msrb.mxu3 %v4807_v38  ;;  %879 = vmatpush.msra.mxu0 %v4808_v23  ;;  %v581_v13 = vadd.f32 %v580_v43, %v4836_v52  ;;  %v620_v38 = vpop.f32.mrf.mxu2 }
 0x196   :  { %899 = vmatpush.msra.mxu1 %v4809_v18  ;;  %919 = vmatpush.msra.mxu2 %v4810_v8 }
 0x197   :  { %860 = vmatpush.msrb.mxu3 %v4811_v41  ;;  %880 = vmatpush.msra.mxu0 %v4812_v36  ;;  %v621_v41 = vadd.f32 %v620_v38, %v4776_v37  ;;  %v1984_v36 = vld [vmem:[%s4300_s0 + $0x6] sm:$0x3]  ;;  %v3456_v38 = vld [vmem:[#allocation2 + $0x128] sm:$0xff] }
 0x198   :  { %900 = vmatpush.msra.mxu1 %v4813_v29  ;;  %920 = vmatpush.msra.mxu2 %v4814_v27  ;;  %v561_v29 = vadd.f32 %v560_v1, %v4777_v34  ;;  %v3449_v1 = vld [vmem:[#allocation2 + $0x150] sm:$0xff] }
 0x199   :  { %861 = vmatpush.msrb.mxu3 %v4815_v35  ;;  %881 = vmatpush.msra.mxu0 %v4816_v11 }
 0x19a   :  { %901 = vmatpush.msra.mxu1 %v4817_v12  ;;  %921 = vmatpush.msra.mxu2 %v4818_v15  ;;  %v3401_v12 = vld [vmem:[#allocation2 + $0x1e8] sm:$0xff] }
 0x19b   :  { %862 = vmatpush.msrb.mxu3 %v4819_v16  ;;  %882 = vmatpush.msra.mxu0 %v4762_v7  ;;  %v4824_v7 = vld [vmem:[#allocation82_spill] sm:$0xff] }
 0x19c   :  { %902 = vmatpush.msra.mxu1 %v4763_v9  ;;  %922 = vmatpush.msra.mxu2 %v4820_v40  ;;  %v4825_v9 = vld [vmem:[#allocation83_spill] sm:$0xff]  ;;  %v3404_v16 = vld [vmem:[#allocation2 + $0x1f0] sm:$0xff] }
 0x19d   :  { %863 = vmatpush.msrb.mxu3 %v4821_v19  ;;  %883 = vmatpush.msra.mxu0 %v4766_v62  ;;  %v4828_v62 = vld [vmem:[#allocation86_spill] sm:$0xff]  ;;  %v3409_v19 = vld [vmem:[#allocation2 + $0x1c8] sm:$0xff] }
 0x19e   :  { %903 = vmatpush.msra.mxu1 %v4767_v30  ;;  %923 = vmatpush.msra.mxu2 %v4768_v2  ;;  %v4829_v30 = vld [vmem:[#allocation87_spill] sm:$0xff]  ;;  %v4830_v2 = vld [vmem:[#allocation88_spill] sm:$0xff] }
 0x19f   :  { %864 = vmatpush.msrb.mxu3 %v4769_v31  ;;  %884 = vmatpush.msra.mxu0 %v4770_v4  ;;  %v4831_v31 = vld [vmem:[#allocation89_spill] sm:$0xff]  ;;  %v4832_v4 = vld [vmem:[#allocation90_spill] sm:$0xff] }
 0x1a0   :  { %904 = vmatpush.msra.mxu1 %v4822_v21  ;;  %924 = vmatpush.msra.mxu2 %v4823_v22  ;;  %v3412_v22 = vld [vmem:[#allocation2 + $0x1d0] sm:$0xff] }
 0x1a1   :  { %865 = vmatpush.msrb.mxu3 %v4824_v7  ;;  %885 = vmatpush.msra.mxu0 %v4825_v9  ;;  %v3417_v9 = vld [vmem:[#allocation2 + $0x1a8] sm:$0xff] }
 0x1a2   :  { %905 = vmatpush.msra.mxu1 %v4826_v24  ;;  %925 = vmatpush.msra.mxu2 %v4827_v25  ;;  %v3422_v25 = vld [vmem:[#allocation2 + $0x1b0] sm:$0xff] }
 0x1a3   :  { %866 = vmatpush.msrb.mxu3 %v4828_v62  ;;  %886 = vmatpush.msra.mxu0 %v4829_v30  ;;  %v600_v62 = vpop.f32.mrf.mxu1  ;;  %v3427_v30 = vld [vmem:[#allocation2 + $0x188] sm:$0xff] }
 0x1a4   :  { %906 = vmatpush.msra.mxu1 %v4830_v2  ;;  %926 = vmatpush.msra.mxu2 %v4831_v31  ;;  %v3431_v2 = vld [vmem:[#allocation2 + $0x190] sm:$0xff]  ;;  %v3436_v31 = vld [vmem:[#allocation2 + $0x168] sm:$0xff] }
 0x1a5   :  { %867 = vmatpush.msrb.mxu3 %v4832_v4  ;;  %887 = vmatpush.msra.mxu0 %v4833_v0  ;;  %v3439_v4 = vld [vmem:[#allocation2 + $0x170] sm:$0xff] }
 0x1a6   :  { %907 = vmatpush.msra.mxu1 %v4834_v20  ;;  %927 = vmatpush.msra.mxu2 %v4835_v32  ;;  %v3444_v20 = vld [vmem:[#allocation2 + $0x148] sm:$0xff] }
 0x1a7   :  { %788 = vmatmul.f32.vlgmr.msra.gmra.mxu3 %v1984_v36  ;;  %808 = vmatmul.f32.vlgmr.msrb.gmra.mxu0 %v1984_v36 }
 0x1a8   :  { %828 = vmatmul.f32.vlgmr.msrb.gmra.mxu1 %v1984_v36  ;;  %848 = vmatmul.f32.vlgmr.msrb.gmra.mxu2 %v1984_v36  ;;  %v3470_v36 = vld [vmem:[#allocation2 + $0x108] sm:$0xff] }
 0x1a9   :  { %1001 = vmatpush.msra.mxu3 %v3149_v10  ;;  %1021 = vmatpush.msrb.mxu0 %v3401_v12  ;;  %4838 = vst [vmem:[#allocation17_spill] sm:$0xff] %v3470_v36 }
 0x1aa   :  { %1041 = vmatpush.msrb.mxu1 %v3404_v16  ;;  %1061 = vmatpush.msrb.mxu2 %v3154_v42 }
 0x1ab   :  { %1002 = vmatpush.msra.mxu3 %v3157_v28  ;;  %1022 = vmatpush.msrb.mxu0 %v3409_v19 }
 0x1ac   :  { %1042 = vmatpush.msrb.mxu1 %v3412_v22  ;;  %1062 = vmatpush.msrb.mxu2 %v3162_v51 }
 0x1ad   :  { %1003 = vmatpush.msra.mxu3 %v3165_v5  ;;  %1023 = vmatpush.msrb.mxu0 %v3417_v9 }
 0x1ae   :  { %1043 = vmatpush.msrb.mxu1 %v3422_v25  ;;  %1063 = vmatpush.msrb.mxu2 %v3172_v48 }
 0x1af   :  { %1004 = vmatpush.msra.mxu3 %v3175_v6  ;;  %1024 = vmatpush.msrb.mxu0 %v3427_v30 }
 0x1b0   :  { %1044 = vmatpush.msrb.mxu1 %v3431_v2  ;;  %1064 = vmatpush.msrb.mxu2 %v3181_v50 }
 0x1b1   :  { %1005 = vmatpush.msra.mxu3 %v3184_v14  ;;  %1025 = vmatpush.msrb.mxu0 %v3436_v31 }
 0x1b2   :  { %1045 = vmatpush.msrb.mxu1 %v3439_v4  ;;  %1065 = vmatpush.msrb.mxu2 %v3189_v44 }
 0x1b3   :  { %1006 = vmatpush.msra.mxu3 %v3192_v63  ;;  %1026 = vmatpush.msrb.mxu0 %v3444_v20 }
 0x1b4   :  { %1046 = vmatpush.msrb.mxu1 %v3449_v1  ;;  %1066 = vmatpush.msrb.mxu2 %v3199_v45 }
 0x1b5   :  { %1007 = vmatpush.msra.mxu3 %v3204_v53  ;;  %1027 = vmatpush.msrb.mxu0 %v3456_v38 }
 0x1b6   :  { %1067 = vmatpush.msrb.mxu2 %v3212_v54 }
 0x1b7   :  { %1028 = vmatpush.msrb.mxu0 %v3470_v36  ;;  %v3536_v36 = vld [vmem:[#allocation2 + $0x70] sm:$0xff] }
 0x1b8   :  { %1068 = vmatpush.msrb.mxu2 %v3224_v26 }
 0x202   :  { %v660_v23 = vpop.f32.mrf.mxu0 }
 0x203   :  { %v704_v18 = vadd.f32 %v660_v23, %v581_v13 }
 0x205   :  { %v1982_v8 = vmul.f32 -1.442695, %v704_v18  ;;  %v3462_v18 = vld [vmem:[#allocation2 + $0x130] sm:$0xff] }
 0x206   :  { %1047 = vmatpush.msrb.mxu1 %v3462_v18 }
 0x207   :  { %2041 = vpow2.f32 %v1982_v8 }
 0x208   :  { %v640_v27 = vpop.f32.mrf.mxu3 }
 0x209   :  { %v703_v35 = vadd.f32 %v640_v27, %v561_v29  ;;  %v700_v11 = vpop.f32.mrf.mxu2  ;;  %v601_v29 = vadd.f32 %v600_v62, %v3001_v61  ;;  %v3474_v27 = vld [vmem:[#allocation2 + $0x110] sm:$0xff] }
 0x20a   :  { %v706_v15 = vadd.f32 %v700_v11, %v621_v41  ;;  %v4837_v41 = vld [vmem:[#allocation20_spill] sm:$0xff]  ;;  %4839 = vst [vmem:[#allocation18_spill] sm:$0xff] %v3474_v27  ;;  %1048 = vmatpush.msrb.mxu1 %v3474_v27  ;;  %v680_v11 = vpop.f32.mrf.mxu1 }
 0x20b   :  { %v1981_v40 = vmul.f32 -1.442695, %v703_v35  ;;  %1008 = vmatpush.msra.mxu3 %v4837_v41  ;;  %v3514_v27 = vld [vmem:[#allocation2 + $0x88] sm:$0xff] }
 0x20c   :  { %v1983_v21 = vmul.f32 -1.442695, %v706_v15  ;;  %v4840_v15 = vld [vmem:[#allocation14_spill] sm:$0xff]  ;;  %4852 = vst [vmem:[#allocation31_spill] sm:$0xff] %v3514_v27 }
 0x20d   :  { %v2042_v7 = vpop.eup %2041  ;;  %2043 = vpow2.f32 %v1981_v40  ;;  %1009 = vmatpush.msra.mxu3 %v4840_v15  ;;  %v3479_v40 = vld [vmem:[#allocation2 + $0xe8] sm:$0xff]  ;;  %v3491_v15 = vld [vmem:[#allocation2 + $0xd0] sm:$0xff] }
 0x20e   :  { %v3420_v24 = vadd.f32 1.0, %v2042_v7  ;;  %2045 = vpow2.f32 %v1983_v21  ;;  %4841 = vst [vmem:[#allocation27_spill] sm:$0xff] %v3479_v40  ;;  %1029 = vmatpush.msrb.mxu0 %v3479_v40  ;;  %v3482_v21 = vld [vmem:[#allocation2 + $0xf0] sm:$0xff]  ;;  %v4846_v40 = vld [vmem:[#allocation15_spill] sm:$0xff] }
 0x20f   :  { %4842 = vst [vmem:[#allocation23_spill] sm:$0xff] %v3482_v21  ;;  %1049 = vmatpush.msrb.mxu1 %v3482_v21  ;;  %v4843_v7 = vld [vmem:[#allocation25_spill] sm:$0xff]  ;;  %1010 = vmatpush.msra.mxu3 %v3236_v56  ;;  %v4847_v56 = vld [vmem:[#allocation16_spill] sm:$0xff] }
 0x210   :  { %2047 = vrcp.f32 %v3420_v24  ;;  %1069 = vmatpush.msrb.mxu2 %v4843_v7  ;;  %4845 = vst [vmem:[#allocation28_spill] sm:$0xff] %v3491_v15  ;;  %v3501_v21 = vld [vmem:[#allocation2 + $0xa8] sm:$0xff]  ;;  %vm735_vm5 = vweird.f32 %v3420_v24 }
 0x211   :  { %1050 = vmatpush.msrb.mxu1 %v3491_v15  ;;  %1011 = vmatpush.msra.mxu3 %v4847_v56  ;;  %4848 = vst [vmem:[#allocation29_spill] sm:$0xff] %v3501_v21  ;;  %v739_v15 = vand.u32 2147483647, %v3420_v24 }
 0x212   :  { %1070 = vmatpush.msrb.mxu2 %v4846_v40  ;;  %v3507_v40 = vld [vmem:[#allocation2 + $0xb0] sm:$0xff] }
 0x213   :  { %v2044_v0 = vpop.eup %2043  ;;  %4849 = vst [vmem:[#allocation30_spill] sm:$0xff] %v3507_v40  ;;  %1051 = vmatpush.msrb.mxu1 %v3507_v40  ;;  %v3524_v40 = vld [vmem:[#allocation2 + $0x90] sm:$0xff]  ;;  %vm740_vm8 = vcmp.eq.f32.partialorder %v739_v15, 8.507059e+37 }
 0x214   :  { %v2046_v32 = vpop.eup %2045  ;;  %v3447_v43 = vadd.f32 1.0, %v2044_v0  ;;  %v3488_v0 = vld [vmem:[#allocation2 + $0xc8] sm:$0xff] }
 0x215   :  { %v3453_v13 = vadd.f32 1.0, %v2046_v32  ;;  %4844 = vst [vmem:[#allocation19_spill] sm:$0xff] %v3488_v0  ;;  %1030 = vmatpush.msrb.mxu0 %v3488_v0  ;;  %v4851_v0 = vld [vmem:[#allocation22_spill] sm:$0xff]  ;;  %1052 = vmatpush.msrb.mxu1 %v3524_v40 }
 0x216   :  { %v3459_v23 = vpop.eup %2047  ;;  %2049 = vrcp.f32 %v3447_v43  ;;  %1012 = vmatpush.msra.mxu3 %v4851_v0  ;;  %v3533_v0 = vld [vmem:[#allocation2 + $0x68] sm:$0xff]  ;;  %vm716_vm9 = vweird.f32 %v3447_v43 }
 0x217   :  { %v731_v8 = vmul.f32 %v3459_v23, %v3420_v24  ;;  %2051 = vrcp.f32 %v3453_v13  ;;  %vm736_vm4 = vweird.f32 %v3459_v23  ;;  %1031 = vmatpush.msrb.mxu0 %v3501_v21  ;;  %1053 = vmatpush.msrb.mxu1 %v3536_v36  ;;  %vm755_vm13 = vweird.f32 %v3453_v13 }
 0x218   :  { %vm3519_vm6 = vmor %vm735_vm5, %vm736_vm4  ;;  %1013 = vmatpush.msra.mxu3 %v3281_v17 }
 0x219   :  { %v732_v35 = vsub.f32 1.0, %v731_v8  ;;  %v705_v8 = vadd.f32 %v680_v11, %v601_v29  ;;  %v741_v29 = vand.u32 2147483648, %v3420_v24  ;;  %1032 = vmatpush.msrb.mxu0 %v3514_v27  ;;  %v720_v27 = vand.u32 2147483647, %v3447_v43 }
 0x21a   :  { %1014 = vmatpush.msra.mxu3 %v3290_v57 }
 0x21b   :  { %v733_v62 = vmul.f32 %v3459_v23, %v732_v35  ;;  %2053 = vtanh.f32 %v705_v8  ;;  %1033 = vmatpush.msrb.mxu0 %v3533_v0  ;;  %v742_v8 = vor.u32 1.1754944e-38, %v741_v29  ;;  %v3546_v29 = vld [vmem:[#allocation2 + $0x50] sm:$0xff]  ;;  %vm721_vm11 = vcmp.eq.f32.partialorder %v720_v27, 8.507059e+37  ;;  %v3559_v27 = vld [vmem:[#allocation2 + $0x8] sm:$0xff] }
 0x21c   :  { %v2050_v32 = vpop.eup %2049  ;;  %1054 = vmatpush.msrb.mxu1 %v3546_v29  ;;  %1015 = vmatpush.msra.mxu3 %v3299_v58 }
 0x21d   :  { %v3495_v26 = vpop.eup %2051  ;;  %v734_v7 = vadd.f32 %v3459_v23, %v733_v62  ;;  %v712_v35 = vmul.f32 %v2050_v32, %v3447_v43  ;;  %v4850_v62 = vld [vmem:[#allocation26_spill] sm:$0xff]  ;;  %vm717_vm7 = vweird.f32 %v2050_v32 }
 0x21e   :  { %v751_v11 = vmul.f32 %v3495_v26, %v3453_v13  ;;  %1071 = vmatpush.msrb.mxu2 %v4850_v62  ;;  %v722_v62 = vand.u32 2147483648, %v3447_v43  ;;  %vm718_vm10 = vmor %vm716_vm9, %vm717_vm7  ;;  %v3551_v43 = vld [vmem:[#allocation2 + $0x28] sm:$0xff]  ;;  %1055 = vmatpush.msrb.mxu1 %v3304_v59  ;;  %vm756_vm12 = vweird.f32 %v3495_v26 }
 0x21f   :  { %v713_v56 = vsub.f32 1.0, %v712_v35  ;;  %v738_v24 = vsel %vm3519_vm6, %v3459_v23, %v734_v7  ;;  %1016 = vmatpush.msra.mxu3 %v3311_v49  ;;  %vm757_vm14 = vmor %vm755_vm13, %vm756_vm12 }
 0x220   :  { %1072 = vmatpush.msrb.mxu2 %v3274_v55  ;;  %v752_v61 = vsub.f32 1.0, %v751_v11  ;;  %v743_v21 = vsel %vm740_vm8, %v742_v8, %v738_v24  ;;  %v723_v7 = vor.u32 1.1754944e-38, %v722_v62  ;;  %1056 = vmatpush.msrb.mxu1 %v3315_v33 }
 0x221   :  { %v714_v35 = vmul.f32 %v2050_v32, %v713_v56  ;;  %v3542_v56 = vld [vmem:[#allocation2 + $0x48] sm:$0xff]  ;;  %v2054_v11 = vpop.eup %2053  ;;  %v765_v62 = vmul.f32 %v743_v21, %v3321_v46  ;;  %v759_v46 = vand.u32 2147483647, %v3453_v13 }
 0x222   :  { %1073 = vmatpush.msrb.mxu2 %v3286_v39  ;;  %1034 = vmatpush.msrb.mxu0 %v3542_v56  ;;  %v753_v24 = vmul.f32 %v3495_v26, %v752_v61 }
 0x223   :  { %v715_v23 = vadd.f32 %v2050_v32, %v714_v35  ;;  %vm760_vm15 = vcmp.eq.f32.partialorder %v759_v46, 8.507059e+37  ;;  %v3594_v46 = vld [vmem:[#allocation5 + $0x1d8] sm:$0xff] }
 0x224   :  { %1074 = vmatpush.msrb.mxu2 %v3296_v47  ;;  %1035 = vmatpush.msrb.mxu0 %v3551_v43  ;;  %v754_v61 = vadd.f32 %v3495_v26, %v753_v24  ;;  %v3573_v24 = vld [vmem:[#allocation5 + $0x1e0] sm:$0xff]  ;;  %4861 = vst [vmem:[#allocation38_spill] sm:$0xff] %v3594_v46 }
 0x225   :  { %v719_v15 = vsel %vm718_vm10, %v2050_v32, %v715_v23  ;;  %v761_v23 = vand.u32 2147483648, %v3453_v13  ;;  %v3579_v13 = vld [vmem:[#allocation5 + $0x1f0] sm:$0xff] }
 0x226   :  { %v724_v35 = vsel %vm721_vm11, %v723_v7, %v719_v15  ;;  %1075 = vmatpush.msrb.mxu2 %v3307_v3  ;;  %1036 = vmatpush.msrb.mxu0 %v3559_v27  ;;  %v758_v21 = vsel %vm757_vm14, %v3495_v26, %v754_v61  ;;  %4856 = vst [vmem:[#allocation33_spill] sm:$0xff] %v3579_v13  ;;  %v3582_v26 = vld [vmem:[#allocation5 + $0x1f8] sm:$0xff]  ;;  %v3588_v61 = vld [vmem:[#allocation5 + $0x1c8] sm:$0xff] }
 0x227   :  { %v766_v8 = vmul.f32 %v2054_v11, %v724_v35  ;;  %v762_v7 = vor.u32 1.1754944e-38, %v761_v23  ;;  %4857 = vst [vmem:[#allocation34_spill] sm:$0xff] %v3582_v26  ;;  %v3591_v23 = vld [vmem:[#allocation5 + $0x1d0] sm:$0xff] }
 0x228   :  { %1076 = vmatpush.msrb.mxu2 %v3318_v60  ;;  %4859 = vst [vmem:[#allocation36_spill] sm:$0xff] %v3588_v61 }
 0x229   :  { %v3564_v32 = vadd.f32 %v766_v8, %v765_v62  ;;  %v763_v11 = vsel %vm760_vm15, %v762_v7, %v758_v21  ;;  %v3576_v62 = vld [vmem:[#allocation5 + $0x1e8] sm:$0xff]  ;;  %v3585_v8 = vld [vmem:[#allocation5 + $0x1c0] sm:$0xff]  ;;  %4860 = vst [vmem:[#allocation37_spill] sm:$0xff] %v3591_v23 }
 0x22a   :  { %4855 = vst [vmem:[#allocation32_spill] sm:$0xff] %v3576_v62  ;;  %v3597_v21 = vld [vmem:[#allocation5 + $0x1a0] sm:$0xff]  ;;  %v3600_v7 = vld [vmem:[#allocation5 + $0x1a8] sm:$0xff] }
 0x22b   :  { %2055 = vtanh.f32 %v3564_v32  ;;  %4858 = vst [vmem:[#allocation35_spill] sm:$0xff] %v3585_v8 }
 0x22c   :  { %4862 = vst [vmem:[#allocation70_spill] sm:$0xff] %v3597_v21 }
 0x22d   :  { %4863 = vst [vmem:[#allocation71_spill] sm:$0xff] %v3600_v7 }
 0x231   :  { %v2056_v15 = vpop.eup %2055 }
 0x232   :  { %v769_v35 = vmul.f32 %v2056_v15, %v763_v11  ;;  %v3603_v15 = vld [vmem:[#allocation5 + $0x1b0] sm:$0xff]  ;;  %v3606_v11 = vld [vmem:[#allocation5 + $0x1b8] sm:$0xff] }
 0x233   :  { %4864 = vst [vmem:[#allocation74_spill] sm:$0xff] %v3603_v15 }
 0x234   :  { %868 = vmatmul.f32.vlgmr.msrb.gmra.mxu3 %v769_v35  ;;  %888 = vmatmul.f32.vlgmr.msra.gmra.mxu0 %v769_v35  ;;  %4865 = vst [vmem:[#allocation75_spill] sm:$0xff] %v3606_v11 }
 0x235   :  { %908 = vmatmul.f32.vlgmr.msra.gmra.mxu1 %v769_v35  ;;  %928 = vmatmul.f32.vlgmr.msra.gmra.mxu2 %v769_v35  ;;  %v3609_v35 = vld [vmem:[#allocation5 + $0x180] sm:$0xff] }
 0x236   :  { %1081 = vmatpush.msrb.mxu3 %v3573_v24  ;;  %1101 = vmatpush.msra.mxu0 %v3576_v62  ;;  %4866 = vst [vmem:[#allocation76_spill] sm:$0xff] %v3609_v35 }
 0x237   :  { %1121 = vmatpush.msra.mxu1 %v3579_v13  ;;  %1141 = vmatpush.msra.mxu2 %v3582_v26 }
 0x238   :  { %1082 = vmatpush.msrb.mxu3 %v3585_v8  ;;  %1102 = vmatpush.msra.mxu0 %v3588_v61  ;;  %v849_v61 = vpop.f32.mrf.mxu2 }
 0x239   :  { %1122 = vmatpush.msra.mxu1 %v3591_v23  ;;  %1142 = vmatpush.msra.mxu2 %v3594_v46  ;;  %v3612_v46 = vld [vmem:[#allocation5 + $0x188] sm:$0xff]  ;;  %v789_v23 = vpop.f32.mrf.mxu3  ;;  %v850_v13 = vadd.f32 %v849_v61, %v4776_v37 }
 0x23a   :  { %1083 = vmatpush.msrb.mxu3 %v3597_v21  ;;  %1103 = vmatpush.msra.mxu0 %v3600_v7  ;;  %4867 = vst [vmem:[#allocation77_spill] sm:$0xff] %v3612_v46  ;;  %v3615_v21 = vld [vmem:[#allocation5 + $0x190] sm:$0xff]  ;;  %v3618_v7 = vld [vmem:[#allocation5 + $0x198] sm:$0xff] }
 0x23b   :  { %1123 = vmatpush.msra.mxu1 %v3603_v15  ;;  %1143 = vmatpush.msra.mxu2 %v3606_v11  ;;  %4868 = vst [vmem:[#allocation78_spill] sm:$0xff] %v3615_v21  ;;  %v3621_v15 = vld [vmem:[#allocation5 + $0x160] sm:$0xff]  ;;  %v3624_v11 = vld [vmem:[#allocation5 + $0x168] sm:$0xff] }
 0x23c   :  { %1084 = vmatpush.msrb.mxu3 %v3609_v35  ;;  %1104 = vmatpush.msra.mxu0 %v3612_v46  ;;  %4869 = vst [vmem:[#allocation79_spill] sm:$0xff] %v3618_v7  ;;  %v3627_v35 = vld [vmem:[#allocation5 + $0x170] sm:$0xff]  ;;  %v3630_v46 = vld [vmem:[#allocation5 + $0x178] sm:$0xff] }
 0x23d   :  { %1124 = vmatpush.msra.mxu1 %v3615_v21  ;;  %1144 = vmatpush.msra.mxu2 %v3618_v7  ;;  %4870 = vst [vmem:[#allocation67_spill] sm:$0xff] %v3621_v15  ;;  %v3633_v21 = vld [vmem:[#allocation5 + $0x140] sm:$0xff]  ;;  %v3636_v7 = vld [vmem:[#allocation5 + $0x148] sm:$0xff] }
 0x23e   :  { %1085 = vmatpush.msrb.mxu3 %v3621_v15  ;;  %4871 = vst [vmem:[#allocation12_spill] sm:$0xff] %v3624_v11  ;;  %1105 = vmatpush.msra.mxu0 %v3624_v11  ;;  %v3639_v15 = vld [vmem:[#allocation5 + $0x150] sm:$0xff]  ;;  %v3642_v11 = vld [vmem:[#allocation5 + $0x158] sm:$0xff] }
 0x23f   :  { %4872 = vst [vmem:[#allocation39_spill] sm:$0xff] %v3627_v35  ;;  %1125 = vmatpush.msra.mxu1 %v3627_v35  ;;  %1145 = vmatpush.msra.mxu2 %v3630_v46  ;;  %v3645_v35 = vld [vmem:[#allocation5 + $0x120] sm:$0xff] }
 0x240   :  { %4873 = vst [vmem:[#allocation40_spill] sm:$0xff] %v3630_v46  ;;  %1086 = vmatpush.msrb.mxu3 %v3633_v21  ;;  %1106 = vmatpush.msra.mxu0 %v3636_v7  ;;  %v3648_v46 = vld [vmem:[#allocation5 + $0x128] sm:$0xff] }
 0x241   :  { %4874 = vst [vmem:[#allocation41_spill] sm:$0xff] %v3633_v21  ;;  %1126 = vmatpush.msra.mxu1 %v3639_v15  ;;  %1146 = vmatpush.msra.mxu2 %v3642_v11  ;;  %v3651_v21 = vld [vmem:[#allocation5 + $0x130] sm:$0xff] }
 0x242   :  { %4875 = vst [vmem:[#allocation42_spill] sm:$0xff] %v3636_v7  ;;  %1087 = vmatpush.msrb.mxu3 %v3645_v35  ;;  %1107 = vmatpush.msra.mxu0 %v3648_v46  ;;  %v3654_v7 = vld [vmem:[#allocation5 + $0x138] sm:$0xff] }
 0x243   :  { %4876 = vst [vmem:[#allocation43_spill] sm:$0xff] %v3639_v15  ;;  %1127 = vmatpush.msra.mxu1 %v3651_v21  ;;  %1147 = vmatpush.msra.mxu2 %v3654_v7  ;;  %v3657_v15 = vld [vmem:[#allocation5 + $0x100] sm:$0xff] }
 0x244   :  { %4877 = vst [vmem:[#allocation44_spill] sm:$0xff] %v3642_v11  ;;  %1088 = vmatpush.msrb.mxu3 %v3657_v15  ;;  %v3660_v11 = vld [vmem:[#allocation5 + $0x108] sm:$0xff] }
 0x245   :  { %4878 = vst [vmem:[#allocation45_spill] sm:$0xff] %v3645_v35  ;;  %1108 = vmatpush.msra.mxu0 %v3660_v11  ;;  %v3663_v35 = vld [vmem:[#allocation5 + $0x110] sm:$0xff] }
 0x246   :  { %4879 = vst [vmem:[#allocation46_spill] sm:$0xff] %v3648_v46  ;;  %1128 = vmatpush.msra.mxu1 %v3663_v35  ;;  %v3666_v46 = vld [vmem:[#allocation5 + $0x118] sm:$0xff] }
 0x247   :  { %4880 = vst [vmem:[#allocation47_spill] sm:$0xff] %v3651_v21  ;;  %1148 = vmatpush.msra.mxu2 %v3666_v46  ;;  %v3669_v21 = vld [vmem:[#allocation5 + $0xe0] sm:$0xff] }
 0x248   :  { %4881 = vst [vmem:[#allocation48_spill] sm:$0xff] %v3654_v7  ;;  %1089 = vmatpush.msrb.mxu3 %v3669_v21  ;;  %v3672_v7 = vld [vmem:[#allocation5 + $0xe8] sm:$0xff] }
 0x249   :  { %4882 = vst [vmem:[#allocation49_spill] sm:$0xff] %v3657_v15  ;;  %1109 = vmatpush.msra.mxu0 %v3672_v7  ;;  %v3675_v15 = vld [vmem:[#allocation5 + $0xf0] sm:$0xff] }
 0x24a   :  { %4883 = vst [vmem:[#allocation50_spill] sm:$0xff] %v3660_v11  ;;  %1129 = vmatpush.msra.mxu1 %v3675_v15  ;;  %v3678_v11 = vld [vmem:[#allocation5 + $0xf8] sm:$0xff] }
 0x24b   :  { %4884 = vst [vmem:[#allocation51_spill] sm:$0xff] %v3663_v35  ;;  %1149 = vmatpush.msra.mxu2 %v3678_v11  ;;  %v3681_v35 = vld [vmem:[#allocation5 + $0xc0] sm:$0xff] }
 0x24c   :  { %4885 = vst [vmem:[#allocation52_spill] sm:$0xff] %v3666_v46  ;;  %1090 = vmatpush.msrb.mxu3 %v3681_v35  ;;  %v3684_v46 = vld [vmem:[#allocation5 + $0xc8] sm:$0xff] }
 0x24d   :  { %4886 = vst [vmem:[#allocation53_spill] sm:$0xff] %v3669_v21  ;;  %1110 = vmatpush.msra.mxu0 %v3684_v46  ;;  %v3687_v21 = vld [vmem:[#allocation5 + $0xd0] sm:$0xff] }
 0x24e   :  { %4887 = vst [vmem:[#allocation54_spill] sm:$0xff] %v3672_v7  ;;  %1130 = vmatpush.msra.mxu1 %v3687_v21  ;;  %v3690_v7 = vld [vmem:[#allocation5 + $0xd8] sm:$0xff] }
 0x24f   :  { %4888 = vst [vmem:[#allocation55_spill] sm:$0xff] %v3675_v15  ;;  %1150 = vmatpush.msra.mxu2 %v3690_v7  ;;  %v3693_v15 = vld [vmem:[#allocation5 + $0xa0] sm:$0xff] }
 0x250   :  { %4889 = vst [vmem:[#allocation56_spill] sm:$0xff] %v3678_v11  ;;  %1091 = vmatpush.msrb.mxu3 %v3693_v15  ;;  %v3696_v11 = vld [vmem:[#allocation5 + $0xa8] sm:$0xff] }
 0x251   :  { %4890 = vst [vmem:[#allocation57_spill] sm:$0xff] %v3681_v35  ;;  %1111 = vmatpush.msra.mxu0 %v3696_v11  ;;  %v3699_v35 = vld [vmem:[#allocation5 + $0xb0] sm:$0xff] }
 0x252   :  { %4891 = vst [vmem:[#allocation58_spill] sm:$0xff] %v3684_v46  ;;  %1131 = vmatpush.msra.mxu1 %v3699_v35  ;;  %v3702_v46 = vld [vmem:[#allocation5 + $0xb8] sm:$0xff] }
 0x253   :  { %4892 = vst [vmem:[#allocation59_spill] sm:$0xff] %v3687_v21  ;;  %1151 = vmatpush.msra.mxu2 %v3702_v46  ;;  %v3705_v21 = vld [vmem:[#allocation5 + $0x80] sm:$0xff] }
 0x254   :  { %4893 = vst [vmem:[#allocation60_spill] sm:$0xff] %v3690_v7  ;;  %1092 = vmatpush.msrb.mxu3 %v3705_v21  ;;  %v3708_v7 = vld [vmem:[#allocation5 + $0x88] sm:$0xff] }
 0x255   :  { %4894 = vst [vmem:[#allocation61_spill] sm:$0xff] %v3693_v15  ;;  %1112 = vmatpush.msra.mxu0 %v3708_v7  ;;  %v3711_v15 = vld [vmem:[#allocation5 + $0x90] sm:$0xff] }
 0x256   :  { %4895 = vst [vmem:[#allocation62_spill] sm:$0xff] %v3696_v11  ;;  %1132 = vmatpush.msra.mxu1 %v3711_v15  ;;  %v3714_v11 = vld [vmem:[#allocation5 + $0x98] sm:$0xff] }
 0x257   :  { %4896 = vst [vmem:[#allocation63_spill] sm:$0xff] %v3699_v35  ;;  %1152 = vmatpush.msra.mxu2 %v3714_v11  ;;  %v3717_v35 = vld [vmem:[#allocation5 + $0x60] sm:$0xff] }
 0x258   :  { %4897 = vst [vmem:[#allocation64_spill] sm:$0xff] %v3702_v46  ;;  %1093 = vmatpush.msrb.mxu3 %v3717_v35  ;;  %v3720_v46 = vld [vmem:[#allocation5 + $0x68] sm:$0xff] }
 0x259   :  { %4898 = vst [vmem:[#allocation65_spill] sm:$0xff] %v3705_v21  ;;  %1113 = vmatpush.msra.mxu0 %v3720_v46  ;;  %v3723_v21 = vld [vmem:[#allocation5 + $0x70] sm:$0xff] }
 0x25a   :  { %4899 = vst [vmem:[#allocation66_spill] sm:$0xff] %v3708_v7  ;;  %1133 = vmatpush.msra.mxu1 %v3723_v21  ;;  %v3726_v7 = vld [vmem:[#allocation5 + $0x78] sm:$0xff] }
 0x25b   :  { %4900 = vst [vmem:[#allocation68_spill] sm:$0xff] %v3711_v15  ;;  %1153 = vmatpush.msra.mxu2 %v3726_v7  ;;  %v3729_v15 = vld [vmem:[#allocation5 + $0x40] sm:$0xff] }
 0x25c   :  { %4901 = vst [vmem:[#allocation69_spill] sm:$0xff] %v3714_v11  ;;  %1094 = vmatpush.msrb.mxu3 %v3729_v15  ;;  %v3732_v11 = vld [vmem:[#allocation5 + $0x48] sm:$0xff] }
 0x25d   :  { %4902 = vst [vmem:[#allocation72_spill] sm:$0xff] %v3717_v35  ;;  %1114 = vmatpush.msra.mxu0 %v3732_v11  ;;  %v3735_v35 = vld [vmem:[#allocation5 + $0x50] sm:$0xff] }
 0x25e   :  { %4903 = vst [vmem:[#allocation73_spill] sm:$0xff] %v3720_v46  ;;  %1134 = vmatpush.msra.mxu1 %v3735_v35  ;;  %v3738_v46 = vld [vmem:[#allocation5 + $0x58] sm:$0xff] }
 0x25f   :  { %4904 = vst [vmem:[#allocation80_spill] sm:$0xff] %v3723_v21  ;;  %1154 = vmatpush.msra.mxu2 %v3738_v46  ;;  %v3741_v21 = vld [vmem:[#allocation5 + $0x20] sm:$0xff] }
 0x260   :  { %4905 = vst [vmem:[#allocation81_spill] sm:$0xff] %v3726_v7  ;;  %1095 = vmatpush.msrb.mxu3 %v3741_v21  ;;  %v3744_v7 = vld [vmem:[#allocation5 + $0x28] sm:$0xff] }
 0x261   :  { %4906 = vst [vmem:[#allocation82_spill] sm:$0xff] %v3729_v15  ;;  %1115 = vmatpush.msra.mxu0 %v3744_v7  ;;  %v3747_v15 = vld [vmem:[#allocation5 + $0x30] sm:$0xff] }
 0x262   :  { %4907 = vst [vmem:[#allocation83_spill] sm:$0xff] %v3732_v11  ;;  %1135 = vmatpush.msra.mxu1 %v3747_v15  ;;  %v3750_v11 = vld [vmem:[#allocation5 + $0x38] sm:$0xff] }
 0x263   :  { %4908 = vst [vmem:[#allocation84_spill] sm:$0xff] %v3735_v35  ;;  %1155 = vmatpush.msra.mxu2 %v3750_v11  ;;  %v3753_v35 = vld [vmem:[#allocation5] sm:$0xff] }
 0x264   :  { %4909 = vst [vmem:[#allocation85_spill] sm:$0xff] %v3738_v46  ;;  %1096 = vmatpush.msrb.mxu3 %v3753_v35  ;;  %v3756_v46 = vld [vmem:[#allocation5 + $0x8] sm:$0xff] }
 0x265   :  { %4910 = vst [vmem:[#allocation86_spill] sm:$0xff] %v3741_v21  ;;  %1116 = vmatpush.msra.mxu0 %v3756_v46  ;;  %v3759_v21 = vld [vmem:[#allocation5 + $0x10] sm:$0xff] }
 0x266   :  { %4911 = vst [vmem:[#allocation87_spill] sm:$0xff] %v3744_v7  ;;  %1136 = vmatpush.msra.mxu1 %v3759_v21  ;;  %v3762_v7 = vld [vmem:[#allocation5 + $0x18] sm:$0xff] }
 0x267   :  { %4912 = vst [vmem:[#allocation88_spill] sm:$0xff] %v3747_v15  ;;  %1156 = vmatpush.msra.mxu2 %v3762_v7  ;;  %v809_v15 = vpop.f32.mrf.mxu0 }
 0x268   :  { %4913 = vst [vmem:[#allocation89_spill] sm:$0xff] %v3750_v11  ;;  %v810_v11 = vadd.f32 %v809_v15, %v4836_v52 }
 0x269   :  { %4914 = vst [vmem:[#allocation90_spill] sm:$0xff] %v3753_v35 }
 0x26a   :  { %4915 = vst [vmem:[#allocation91_spill] sm:$0xff] %v3756_v46  ;;  %v1988_v46 = vld [vmem:[%s4300_s0 + $0x8] sm:$0x3] }
 0x26b   :  { %4916 = vst [vmem:[#allocation92_spill] sm:$0xff] %v3759_v21  ;;  %v790_v21 = vadd.f32 %v789_v23, %v4777_v34  ;;  %1017 = vmatmul.f32.vlgmr.msra.gmra.mxu3 %v1988_v46  ;;  %1037 = vmatmul.f32.vlgmr.msrb.gmra.mxu0 %v1988_v46 }
 0x26c   :  { %4917 = vst [vmem:[#allocation93_spill] sm:$0xff] %v3762_v7  ;;  %1057 = vmatmul.f32.vlgmr.msrb.gmra.mxu1 %v1988_v46  ;;  %1077 = vmatmul.f32.vlgmr.msrb.gmra.mxu2 %v1988_v46  ;;  %v4922_v46 = vld [vmem:[#allocation14_spill] sm:$0xff] }
 0x26d   :  { %1230 = vmatpush.msra.mxu3 %v3149_v10  ;;  %1250 = vmatpush.msrb.mxu0 %v3401_v12 }
 0x26e   :  { %1270 = vmatpush.msrb.mxu1 %v3404_v16  ;;  %1290 = vmatpush.msrb.mxu2 %v3154_v42  ;;  %v829_v42 = vpop.f32.mrf.mxu1 }
 0x26f   :  { %1231 = vmatpush.msra.mxu3 %v3157_v28  ;;  %1251 = vmatpush.msrb.mxu0 %v3409_v19 }
 0x270   :  { %1271 = vmatpush.msrb.mxu1 %v3412_v22  ;;  %1291 = vmatpush.msrb.mxu2 %v3162_v51 }
 0x271   :  { %1232 = vmatpush.msra.mxu3 %v3165_v5  ;;  %1252 = vmatpush.msrb.mxu0 %v3417_v9 }
 0x272   :  { %1272 = vmatpush.msrb.mxu1 %v3422_v25  ;;  %1292 = vmatpush.msrb.mxu2 %v3172_v48 }
 0x273   :  { %1233 = vmatpush.msra.mxu3 %v3175_v6  ;;  %1253 = vmatpush.msrb.mxu0 %v3427_v30 }
 0x274   :  { %1273 = vmatpush.msrb.mxu1 %v3431_v2  ;;  %1293 = vmatpush.msrb.mxu2 %v3181_v50 }
 0x275   :  { %1234 = vmatpush.msra.mxu3 %v3184_v14  ;;  %1254 = vmatpush.msrb.mxu0 %v3436_v31  ;;  %v4918_v14 = vld [vmem:[#allocation17_spill] sm:$0xff] }
 0x276   :  { %1274 = vmatpush.msrb.mxu1 %v3439_v4  ;;  %1294 = vmatpush.msrb.mxu2 %v3189_v44  ;;  %v4919_v44 = vld [vmem:[#allocation94_spill] sm:$0xff] }
 0x277   :  { %1235 = vmatpush.msra.mxu3 %v3192_v63  ;;  %1255 = vmatpush.msrb.mxu0 %v3444_v20  ;;  %v830_v63 = vadd.f32 %v829_v42, %v4919_v44 }
 0x278   :  { %1275 = vmatpush.msrb.mxu1 %v3449_v1  ;;  %1295 = vmatpush.msrb.mxu2 %v3199_v45  ;;  %v4920_v45 = vld [vmem:[#allocation18_spill] sm:$0xff] }
 0x279   :  { %1236 = vmatpush.msra.mxu3 %v3204_v53  ;;  %1256 = vmatpush.msrb.mxu0 %v3456_v38  ;;  %v4921_v53 = vld [vmem:[#allocation13_spill] sm:$0xff] }
 0x27a   :  { %1276 = vmatpush.msrb.mxu1 %v3462_v18  ;;  %1296 = vmatpush.msrb.mxu2 %v3212_v54  ;;  %v4924_v54 = vld [vmem:[#allocation23_spill] sm:$0xff] }
 0x27b   :  { %1237 = vmatpush.msra.mxu3 %v4837_v41  ;;  %1257 = vmatpush.msrb.mxu0 %v4918_v14  ;;  %v4926_v41 = vld [vmem:[#allocation21_spill] sm:$0xff] }
 0x27c   :  { %1277 = vmatpush.msrb.mxu1 %v4920_v45  ;;  %1297 = vmatpush.msrb.mxu2 %v4921_v53 }
 0x27d   :  { %1238 = vmatpush.msra.mxu3 %v4922_v46 }
 0x27e   :  { %1278 = vmatpush.msrb.mxu1 %v4924_v54 }
 0x27f   :  { %1239 = vmatpush.msra.mxu3 %v4926_v41  ;;  %v4935_v41 = vld [vmem:[#allocation31_spill] sm:$0xff] }
 0x2b1   :  { %v889_v8 = vpop.f32.mrf.mxu0 }
 0x2b2   :  { %v933_v26 = vadd.f32 %v889_v8, %v810_v11 }
 0x2b4   :  { %v1986_v35 = vmul.f32 -1.442695, %v933_v26 }
 0x2b6   :  { %2057 = vpow2.f32 %v1986_v35  ;;  %v4927_v35 = vld [vmem:[#allocation19_spill] sm:$0xff] }
 0x2b7   :  { %v869_v7 = vpop.f32.mrf.mxu3 }
 0x2b8   :  { %v932_v62 = vadd.f32 %v869_v7, %v790_v21  ;;  %v929_v15 = vpop.f32.mrf.mxu2  ;;  %v4923_v21 = vld [vmem:[#allocation27_spill] sm:$0xff]  ;;  %v4925_v7 = vld [vmem:[#allocation25_spill] sm:$0xff] }
 0x2b9   :  { %v935_v26 = vadd.f32 %v929_v15, %v850_v13  ;;  %v909_v13 = vpop.f32.mrf.mxu1  ;;  %1258 = vmatpush.msrb.mxu0 %v4923_v21  ;;  %1298 = vmatpush.msrb.mxu2 %v4925_v7 }
 0x2ba   :  { %v1985_v8 = vmul.f32 -1.442695, %v932_v62 }
 0x2bb   :  { %v1987_v61 = vmul.f32 -1.442695, %v935_v26  ;;  %1259 = vmatpush.msrb.mxu0 %v4927_v35  ;;  %v934_v26 = vadd.f32 %v909_v13, %v830_v63  ;;  %v4932_v63 = vld [vmem:[#allocation30_spill] sm:$0xff] }
 0x2bc   :  { %v2058_v23 = vpop.eup %2057  ;;  %2059 = vpow2.f32 %v1985_v8  ;;  %v4928_v8 = vld [vmem:[#allocation28_spill] sm:$0xff]  ;;  %v4933_v13 = vld [vmem:[#allocation26_spill] sm:$0xff] }
 0x2bd   :  { %v3781_v10 = vadd.f32 1.0, %v2058_v23  ;;  %2061 = vpow2.f32 %v1987_v61  ;;  %1279 = vmatpush.msrb.mxu1 %v4928_v8  ;;  %v4929_v61 = vld [vmem:[#allocation15_spill] sm:$0xff] }
 0x2be   :  { %1299 = vmatpush.msrb.mxu2 %v4929_v61  ;;  %v4944_v61 = vld [vmem:[#allocation38_spill] sm:$0xff] }
 0x2bf   :  { %2063 = vrcp.f32 %v3781_v10  ;;  %v970_v53 = vand.u32 2147483648, %v3781_v10  ;;  %1280 = vmatpush.msrb.mxu1 %v4932_v63  ;;  %vm964_vm1 = vweird.f32 %v3781_v10  ;;  %v968_v46 = vand.u32 2147483647, %v3781_v10 }
 0x2c0   :  { %1300 = vmatpush.msrb.mxu2 %v4933_v13 }
 0x2c1   :  { %1281 = vmatpush.msrb.mxu1 %v3524_v40  ;;  %vm969_vm4 = vcmp.eq.f32.partialorder %v968_v46, 8.507059e+37  ;;  %v4939_v46 = vld [vmem:[#allocation33_spill] sm:$0xff] }
 0x2c2   :  { %v2060_v28 = vpop.eup %2059  ;;  %1301 = vmatpush.msrb.mxu2 %v3274_v55 }
 0x2c3   :  { %v2062_v51 = vpop.eup %2061  ;;  %v3796_v5 = vadd.f32 1.0, %v2060_v28  ;;  %1282 = vmatpush.msrb.mxu1 %v3536_v36 }
 0x2c4   :  { %v3800_v48 = vadd.f32 1.0, %v2062_v51  ;;  %v4930_v51 = vld [vmem:[#allocation16_spill] sm:$0xff]  ;;  %1302 = vmatpush.msrb.mxu2 %v3286_v39 }
 0x2c5   :  { %v2064_v6 = vpop.eup %2063  ;;  %2065 = vrcp.f32 %v3796_v5  ;;  %1240 = vmatpush.msra.mxu3 %v4930_v51  ;;  %v951_v51 = vand.u32 2147483648, %v3796_v5  ;;  %vm945_vm5 = vweird.f32 %v3796_v5  ;;  %1283 = vmatpush.msrb.mxu1 %v3546_v29 }
 0x2c6   :  { %v960_v50 = vmul.f32 %v2064_v6, %v3781_v10  ;;  %2067 = vrcp.f32 %v3800_v48  ;;  %vm965_vm0 = vweird.f32 %v2064_v6  ;;  %1303 = vmatpush.msrb.mxu2 %v3296_v47  ;;  %vm984_vm9 = vweird.f32 %v3800_v48 }
 0x2c7   :  { %vm3836_vm2 = vmor %vm964_vm1, %vm965_vm0  ;;  %2069 = vtanh.f32 %v934_v26  ;;  %1284 = vmatpush.msrb.mxu1 %v3304_v59  ;;  %v990_v59 = vand.u32 2147483648, %v3800_v48 }
 0x2c8   :  { %v961_v62 = vsub.f32 1.0, %v960_v50  ;;  %v4931_v50 = vld [vmem:[#allocation29_spill] sm:$0xff]  ;;  %1304 = vmatpush.msrb.mxu2 %v3307_v3  ;;  %v988_v3 = vand.u32 2147483647, %v3800_v48 }
 0x2c9   :  { %1260 = vmatpush.msrb.mxu0 %v4931_v50  ;;  %1285 = vmatpush.msrb.mxu1 %v3315_v33  ;;  %v991_v33 = vor.u32 1.1754944e-38, %v990_v59  ;;  %v4960_v59 = vld [vmem:[#allocation44_spill] sm:$0xff] }
 0x2ca   :  { %v962_v11 = vmul.f32 %v2064_v6, %v961_v62  ;;  %1305 = vmatpush.msrb.mxu2 %v3318_v60  ;;  %vm989_vm11 = vcmp.eq.f32.partialorder %v988_v3, 8.507059e+37  ;;  %v4961_v3 = vld [vmem:[#allocation45_spill] sm:$0xff] }
 0x2cb   :  { %v2066_v15 = vpop.eup %2065  ;;  %1261 = vmatpush.msrb.mxu0 %v4935_v41 }
 0x2cc   :  { %v3822_v23 = vpop.eup %2067  ;;  %v963_v42 = vadd.f32 %v2064_v6, %v962_v11  ;;  %v941_v28 = vmul.f32 %v2066_v15, %v3796_v5  ;;  %v4934_v11 = vld [vmem:[#allocation22_spill] sm:$0xff]  ;;  %vm946_vm3 = vweird.f32 %v2066_v15 }
 0x2cd   :  { %v980_v62 = vmul.f32 %v3822_v23, %v3800_v48  ;;  %1241 = vmatpush.msra.mxu3 %v4934_v11  ;;  %1262 = vmatpush.msrb.mxu0 %v3533_v0  ;;  %v971_v11 = vor.u32 1.1754944e-38, %v970_v53  ;;  %vm947_vm6 = vmor %vm945_vm5, %vm946_vm3  ;;  %v2070_v39 = vpop.eup %2069  ;;  %vm985_vm8 = vweird.f32 %v3822_v23  ;;  %v4941_v48 = vld [vmem:[#allocation35_spill] sm:$0xff] }
 0x2ce   :  { %v942_v7 = vsub.f32 1.0, %v941_v28  ;;  %v967_v13 = vsel %vm3836_vm2, %v2064_v6, %v963_v42  ;;  %v949_v28 = vand.u32 2147483647, %v3796_v5  ;;  %v952_v6 = vor.u32 1.1754944e-38, %v951_v51  ;;  %vm986_vm10 = vmor %vm984_vm9, %vm985_vm8  ;;  %v4945_v51 = vld [vmem:[#allocation70_spill] sm:$0xff] }
 0x2cf   :  { %1242 = vmatpush.msra.mxu3 %v3281_v17  ;;  %v981_v41 = vsub.f32 1.0, %v980_v62  ;;  %1263 = vmatpush.msrb.mxu0 %v3542_v56  ;;  %v972_v55 = vsel %vm969_vm4, %v971_v11, %v967_v13  ;;  %v4938_v62 = vld [vmem:[#allocation32_spill] sm:$0xff]  ;;  %v4946_v13 = vld [vmem:[#allocation71_spill] sm:$0xff] }
 0x2d0   :  { %v943_v10 = vmul.f32 %v2066_v15, %v942_v7  ;;  %vm950_vm7 = vcmp.eq.f32.partialorder %v949_v28, 8.507059e+37  ;;  %v4940_v7 = vld [vmem:[#allocation34_spill] sm:$0xff]  ;;  %v4948_v28 = vld [vmem:[#allocation75_spill] sm:$0xff]  ;;  %v4949_v11 = vld [vmem:[#allocation76_spill] sm:$0xff] }
 0x2d1   :  { %1243 = vmatpush.msra.mxu3 %v3290_v57  ;;  %1264 = vmatpush.msrb.mxu0 %v3551_v43  ;;  %v982_v5 = vmul.f32 %v3822_v23, %v981_v41  ;;  %v994_v57 = vmul.f32 %v972_v55, %v3564_v32  ;;  %v4943_v41 = vld [vmem:[#allocation37_spill] sm:$0xff]  ;;  %v4951_v55 = vld [vmem:[#allocation78_spill] sm:$0xff] }
 0x2d2   :  { %v944_v26 = vadd.f32 %v2066_v15, %v943_v10  ;;  %v4947_v10 = vld [vmem:[#allocation74_spill] sm:$0xff] }
 0x2d3   :  { %1244 = vmatpush.msra.mxu3 %v3299_v58  ;;  %1265 = vmatpush.msrb.mxu0 %v3559_v27  ;;  %v983_v58 = vadd.f32 %v3822_v23, %v982_v5  ;;  %v4956_v5 = vld [vmem:[#allocation40_spill] sm:$0xff] }
 0x2d4   :  { %v948_v17 = vsel %vm947_vm6, %v2066_v15, %v944_v26  ;;  %v4950_v26 = vld [vmem:[#allocation77_spill] sm:$0xff] }
 0x2d5   :  { %v953_v42 = vsel %vm950_vm7, %v952_v6, %v948_v17  ;;  %1245 = vmatpush.msra.mxu3 %v3311_v49  ;;  %v987_v49 = vsel %vm986_vm10, %v3822_v23, %v983_v58  ;;  %v4942_v23 = vld [vmem:[#allocation36_spill] sm:$0xff]  ;;  %v4952_v6 = vld [vmem:[#allocation79_spill] sm:$0xff] }
 0x2d6   :  { %v995_v53 = vmul.f32 %v2070_v39, %v953_v42  ;;  %v992_v32 = vsel %vm989_vm11, %v991_v33, %v987_v49  ;;  %v4953_v17 = vld [vmem:[#allocation67_spill] sm:$0xff]  ;;  %v4954_v39 = vld [vmem:[#allocation12_spill] sm:$0xff]  ;;  %v4962_v49 = vld [vmem:[#allocation46_spill] sm:$0xff] }
 0x2d7   :  { %v4955_v42 = vld [vmem:[#allocation39_spill] sm:$0xff] }
 0x2d8   :  { %v3865_v47 = vadd.f32 %v995_v53, %v994_v57  ;;  %v4957_v57 = vld [vmem:[#allocation41_spill] sm:$0xff]  ;;  %v4958_v53 = vld [vmem:[#allocation42_spill] sm:$0xff]  ;;  %v4959_v58 = vld [vmem:[#allocation43_spill] sm:$0xff] }
 0x2d9   :  { %v4963_v33 = vld [vmem:[#allocation47_spill] sm:$0xff] }
 0x2da   :  { %2071 = vtanh.f32 %v3865_v47 }
 0x2e0   :  { %v2072_v60 = vpop.eup %2071 }
 0x2e1   :  { %v998_v15 = vmul.f32 %v2072_v60, %v992_v32  ;;  %v4964_v60 = vld [vmem:[#allocation48_spill] sm:$0xff]  ;;  %v4965_v32 = vld [vmem:[#allocation49_spill] sm:$0xff] }
 0x2e3   :  { %1097 = vmatmul.f32.vlgmr.msrb.gmra.mxu3 %v998_v15  ;;  %1117 = vmatmul.f32.vlgmr.msra.gmra.mxu0 %v998_v15 }
 0x2e4   :  { %1137 = vmatmul.f32.vlgmr.msra.gmra.mxu1 %v998_v15  ;;  %1157 = vmatmul.f32.vlgmr.msra.gmra.mxu2 %v998_v15  ;;  %v4966_v15 = vld [vmem:[#allocation50_spill] sm:$0xff] }
 0x2e5   :  { %1310 = vmatpush.msrb.mxu3 %v3573_v24  ;;  %1330 = vmatpush.msra.mxu0 %v4938_v62 }
 0x2e6   :  { %1350 = vmatpush.msra.mxu1 %v4939_v46  ;;  %1370 = vmatpush.msra.mxu2 %v4940_v7 }
 0x2e7   :  { %1311 = vmatpush.msrb.mxu3 %v4941_v48  ;;  %1331 = vmatpush.msra.mxu0 %v4942_v23 }
 0x2e8   :  { %1351 = vmatpush.msra.mxu1 %v4943_v41  ;;  %1371 = vmatpush.msra.mxu2 %v4944_v61 }
 0x2e9   :  { %1312 = vmatpush.msrb.mxu3 %v4945_v51  ;;  %1332 = vmatpush.msra.mxu0 %v4946_v13 }
 0x2ea   :  { %1352 = vmatpush.msra.mxu1 %v4947_v10  ;;  %1372 = vmatpush.msra.mxu2 %v4948_v28 }
 0x2eb   :  { %1313 = vmatpush.msrb.mxu3 %v4949_v11  ;;  %1333 = vmatpush.msra.mxu0 %v4950_v26 }
 0x2ec   :  { %1353 = vmatpush.msra.mxu1 %v4951_v55  ;;  %1373 = vmatpush.msra.mxu2 %v4952_v6 }
 0x2ed   :  { %1314 = vmatpush.msrb.mxu3 %v4953_v17  ;;  %1334 = vmatpush.msra.mxu0 %v4954_v39 }
 0x2ee   :  { %1354 = vmatpush.msra.mxu1 %v4955_v42  ;;  %1374 = vmatpush.msra.mxu2 %v4956_v5  ;;  %v4967_v5 = vld [vmem:[#allocation51_spill] sm:$0xff] }
 0x2ef   :  { %1315 = vmatpush.msrb.mxu3 %v4957_v57  ;;  %1335 = vmatpush.msra.mxu0 %v4958_v53  ;;  %v4968_v57 = vld [vmem:[#allocation52_spill] sm:$0xff]  ;;  %v4969_v53 = vld [vmem:[#allocation53_spill] sm:$0xff]  ;;  %v1078_v42 = vpop.f32.mrf.mxu2 }
 0x2f0   :  { %1355 = vmatpush.msra.mxu1 %v4959_v58  ;;  %1375 = vmatpush.msra.mxu2 %v4960_v59  ;;  %v4970_v58 = vld [vmem:[#allocation54_spill] sm:$0xff]  ;;  %v4971_v59 = vld [vmem:[#allocation55_spill] sm:$0xff] }
 0x2f1   :  { %1316 = vmatpush.msrb.mxu3 %v4961_v3  ;;  %1336 = vmatpush.msra.mxu0 %v4962_v49  ;;  %v4972_v3 = vld [vmem:[#allocation56_spill] sm:$0xff]  ;;  %v4973_v49 = vld [vmem:[#allocation57_spill] sm:$0xff] }
 0x2f2   :  { %1356 = vmatpush.msra.mxu1 %v4963_v33  ;;  %1376 = vmatpush.msra.mxu2 %v4964_v60  ;;  %v4974_v33 = vld [vmem:[#allocation58_spill] sm:$0xff]  ;;  %v4975_v60 = vld [vmem:[#allocation59_spill] sm:$0xff] }
 0x2f3   :  { %1317 = vmatpush.msrb.mxu3 %v4965_v32  ;;  %1337 = vmatpush.msra.mxu0 %v4966_v15  ;;  %v4976_v32 = vld [vmem:[#allocation60_spill] sm:$0xff]  ;;  %v4977_v15 = vld [vmem:[#allocation61_spill] sm:$0xff] }
 0x2f4   :  { %1357 = vmatpush.msra.mxu1 %v4967_v5  ;;  %1377 = vmatpush.msra.mxu2 %v4968_v57  ;;  %v4978_v5 = vld [vmem:[#allocation62_spill] sm:$0xff]  ;;  %v4979_v57 = vld [vmem:[#allocation63_spill] sm:$0xff] }
 0x2f5   :  { %1318 = vmatpush.msrb.mxu3 %v4969_v53  ;;  %1338 = vmatpush.msra.mxu0 %v4970_v58  ;;  %v4980_v53 = vld [vmem:[#allocation64_spill] sm:$0xff]  ;;  %v4981_v58 = vld [vmem:[#allocation65_spill] sm:$0xff] }
 0x2f6   :  { %1358 = vmatpush.msra.mxu1 %v4971_v59  ;;  %1378 = vmatpush.msra.mxu2 %v4972_v3  ;;  %v4982_v59 = vld [vmem:[#allocation66_spill] sm:$0xff]  ;;  %v4983_v3 = vld [vmem:[#allocation68_spill] sm:$0xff] }
 0x2f7   :  { %1319 = vmatpush.msrb.mxu3 %v4973_v49  ;;  %1339 = vmatpush.msra.mxu0 %v4974_v33  ;;  %v4984_v49 = vld [vmem:[#allocation69_spill] sm:$0xff]  ;;  %v4985_v33 = vld [vmem:[#allocation72_spill] sm:$0xff] }
 0x2f8   :  { %1359 = vmatpush.msra.mxu1 %v4975_v60  ;;  %1379 = vmatpush.msra.mxu2 %v4976_v32  ;;  %v4986_v60 = vld [vmem:[#allocation73_spill] sm:$0xff]  ;;  %v4987_v32 = vld [vmem:[#allocation80_spill] sm:$0xff] }
 0x2f9   :  { %1320 = vmatpush.msrb.mxu3 %v4977_v15  ;;  %1340 = vmatpush.msra.mxu0 %v4978_v5  ;;  %v4988_v15 = vld [vmem:[#allocation81_spill] sm:$0xff]  ;;  %v4989_v5 = vld [vmem:[#allocation82_spill] sm:$0xff] }
 0x2fa   :  { %1360 = vmatpush.msra.mxu1 %v4979_v57  ;;  %1380 = vmatpush.msra.mxu2 %v4980_v53  ;;  %v4990_v57 = vld [vmem:[#allocation83_spill] sm:$0xff]  ;;  %v4991_v53 = vld [vmem:[#allocation84_spill] sm:$0xff] }
 0x2fb   :  { %1321 = vmatpush.msrb.mxu3 %v4981_v58  ;;  %1341 = vmatpush.msra.mxu0 %v4982_v59  ;;  %v4992_v58 = vld [vmem:[#allocation85_spill] sm:$0xff]  ;;  %v4993_v59 = vld [vmem:[#allocation86_spill] sm:$0xff] }
 0x2fc   :  { %1361 = vmatpush.msra.mxu1 %v4983_v3  ;;  %1381 = vmatpush.msra.mxu2 %v4984_v49  ;;  %v4994_v3 = vld [vmem:[#allocation87_spill] sm:$0xff]  ;;  %v4995_v49 = vld [vmem:[#allocation88_spill] sm:$0xff] }
 0x2fd   :  { %1322 = vmatpush.msrb.mxu3 %v4985_v33  ;;  %1342 = vmatpush.msra.mxu0 %v4986_v60  ;;  %v4996_v33 = vld [vmem:[#allocation89_spill] sm:$0xff]  ;;  %v4997_v60 = vld [vmem:[#allocation90_spill] sm:$0xff] }
 0x2fe   :  { %1362 = vmatpush.msra.mxu1 %v4987_v32  ;;  %1382 = vmatpush.msra.mxu2 %v4988_v15  ;;  %v4998_v32 = vld [vmem:[#allocation91_spill] sm:$0xff]  ;;  %v4999_v15 = vld [vmem:[#allocation92_spill] sm:$0xff] }
 0x2ff   :  { %1323 = vmatpush.msrb.mxu3 %v4989_v5  ;;  %1343 = vmatpush.msra.mxu0 %v4990_v57  ;;  %v5000_v5 = vld [vmem:[#allocation93_spill] sm:$0xff]  ;;  %v1038_v57 = vpop.f32.mrf.mxu0 }
 0x300   :  { %1363 = vmatpush.msra.mxu1 %v4991_v53  ;;  %1383 = vmatpush.msra.mxu2 %v4992_v58  ;;  %v1018_v53 = vpop.f32.mrf.mxu3  ;;  %v1039_v58 = vadd.f32 %v1038_v57, %v4836_v52  ;;  %v3944_v52 = vld [vmem:[#allocation2 + $0x1e0] sm:$0xff] }
 0x301   :  { %1324 = vmatpush.msrb.mxu3 %v4993_v59  ;;  %1344 = vmatpush.msra.mxu0 %v4994_v3 }
 0x302   :  { %1364 = vmatpush.msra.mxu1 %v4995_v49  ;;  %1384 = vmatpush.msra.mxu2 %v4996_v33  ;;  %v1079_v49 = vadd.f32 %v1078_v42, %v4776_v37  ;;  %v3949_v42 = vld [vmem:[#allocation2 + $0x1f8] sm:$0xff] }
 0x303   :  { %1325 = vmatpush.msrb.mxu3 %v4997_v60  ;;  %1345 = vmatpush.msra.mxu0 %v4998_v32  ;;  %v1992_v60 = vld [vmem:[%s4300_s0 + $0xa] sm:$0x3]  ;;  %v1019_v32 = vadd.f32 %v1018_v53, %v4777_v34 }
 0x304   :  { %1365 = vmatpush.msra.mxu1 %v4999_v15  ;;  %1385 = vmatpush.msra.mxu2 %v5000_v5 }
 0x305   :  { %1246 = vmatmul.f32.vlgmr.msra.gmra.mxu3 %v1992_v60  ;;  %1266 = vmatmul.f32.vlgmr.msrb.gmra.mxu0 %v1992_v60 }
 0x306   :  { %1286 = vmatmul.f32.vlgmr.msrb.gmra.mxu1 %v1992_v60  ;;  %1306 = vmatmul.f32.vlgmr.msrb.gmra.mxu2 %v1992_v60  ;;  %v3984_v60 = vld [vmem:[#allocation2 + $0x178] sm:$0xff] }
 0x307   :  { %1459 = vmatpush.msra.mxu3 %v3944_v52  ;;  %1479 = vmatpush.msrb.mxu0 %v3401_v12 }
 0x308   :  { %1499 = vmatpush.msrb.mxu1 %v3404_v16  ;;  %1519 = vmatpush.msrb.mxu2 %v3949_v42  ;;  %v3960_v16 = vld [vmem:[#allocation2 + $0x1a0] sm:$0xff] }
 0x309   :  { %1480 = vmatpush.msrb.mxu0 %v3409_v19  ;;  %v3967_v19 = vld [vmem:[#allocation2 + $0x1b8] sm:$0xff] }
 0x30a   :  { %1500 = vmatpush.msrb.mxu1 %v3412_v22  ;;  %v1058_v22 = vpop.f32.mrf.mxu1 }
 0x30b   :  { %1481 = vmatpush.msrb.mxu0 %v3417_v9  ;;  %v3976_v9 = vld [vmem:[#allocation2 + $0x198] sm:$0xff] }
 0x30c   :  { %1501 = vmatpush.msrb.mxu1 %v3422_v25  ;;  %v3979_v25 = vld [vmem:[#allocation2 + $0x160] sm:$0xff] }
 0x30d   :  { %1482 = vmatpush.msrb.mxu0 %v3427_v30 }
 0x30e   :  { %1502 = vmatpush.msrb.mxu1 %v3431_v2 }
 0x30f   :  { %1483 = vmatpush.msrb.mxu0 %v3436_v31 }
 0x310   :  { %1503 = vmatpush.msrb.mxu1 %v3439_v4  ;;  %v3999_v4 = vld [vmem:[#allocation2 + $0x120] sm:$0xff] }
 0x311   :  { %1484 = vmatpush.msrb.mxu0 %v3444_v20  ;;  %v4007_v20 = vld [vmem:[#allocation2 + $0x138] sm:$0xff] }
 0x312   :  { %1504 = vmatpush.msrb.mxu1 %v3449_v1 }
 0x313   :  { %1485 = vmatpush.msrb.mxu0 %v3456_v38  ;;  %v1059_v38 = vadd.f32 %v1058_v22, %v4919_v44 }
 0x314   :  { %1505 = vmatpush.msrb.mxu1 %v3462_v18  ;;  %v4019_v18 = vld [vmem:[#allocation2 + $0x118] sm:$0xff] }
 0x315   :  { %1486 = vmatpush.msrb.mxu0 %v4918_v14 }
 0x316   :  { %1506 = vmatpush.msrb.mxu1 %v4920_v45  ;;  %v4031_v45 = vld [vmem:[#allocation2 + $0xc0] sm:$0xff] }
 0x317   :  { %1487 = vmatpush.msrb.mxu0 %v4923_v21  ;;  %5003 = vst [vmem:[#allocation94_spill] sm:$0xff] %v4031_v45 }
 0x318   :  { %1507 = vmatpush.msrb.mxu1 %v4924_v54 }
 0x319   :  { %1488 = vmatpush.msrb.mxu0 %v4927_v35 }
 0x31a   :  { %1508 = vmatpush.msrb.mxu1 %v4928_v8 }
 0x31b   :  { %1489 = vmatpush.msrb.mxu0 %v4931_v50  ;;  %v5008_v50 = vld [vmem:[#allocation31_spill] sm:$0xff] }
 0x31c   :  { %1509 = vmatpush.msrb.mxu1 %v4932_v63 }
 0x31d   :  { %1490 = vmatpush.msrb.mxu0 %v5008_v50 }
 0x31e   :  { %1510 = vmatpush.msrb.mxu1 %v3524_v40 }
 0x31f   :  { %1491 = vmatpush.msrb.mxu0 %v3533_v0 }
 0x320   :  { %1511 = vmatpush.msrb.mxu1 %v3536_v36  ;;  %v4091_v36 = vld [vmem:[#allocation2 + $0x58] sm:$0xff] }
 0x321   :  { %1492 = vmatpush.msrb.mxu0 %v3542_v56 }
 0x322   :  { %1512 = vmatpush.msrb.mxu1 %v3546_v29  ;;  %v4102_v29 = vld [vmem:[#allocation2 + $0x38] sm:$0xff] }
 0x323   :  { %1493 = vmatpush.msrb.mxu0 %v3551_v43  ;;  %v4110_v43 = vld [vmem:[#allocation2 + $0x10] sm:$0xff] }
 0x325   :  { %1494 = vmatpush.msrb.mxu0 %v3559_v27 }
 0x360   :  { %v1118_v59 = vpop.f32.mrf.mxu0 }
 0x361   :  { %v1162_v39 = vadd.f32 %v1118_v59, %v1039_v58  ;;  %v3952_v58 = vld [vmem:[#allocation2 + $0x1c0] sm:$0xff]  ;;  %v3957_v59 = vld [vmem:[#allocation2 + $0x1d8] sm:$0xff] }
 0x362   :  { %1460 = vmatpush.msra.mxu3 %v3952_v58  ;;  %1520 = vmatpush.msrb.mxu2 %v3957_v59 }
 0x363   :  { %v1990_v3 = vmul.f32 -1.442695, %v1162_v39 }
 0x364   :  { %1461 = vmatpush.msra.mxu3 %v3960_v16  ;;  %1521 = vmatpush.msrb.mxu2 %v3967_v19 }
 0x365   :  { %2073 = vpow2.f32 %v1990_v3 }
 0x366   :  { %v1098_v5 = vpop.f32.mrf.mxu3  ;;  %1522 = vmatpush.msrb.mxu2 %v3976_v9 }
 0x367   :  { %v1161_v15 = vadd.f32 %v1098_v5, %v1019_v32  ;;  %v1158_v57 = vpop.f32.mrf.mxu2  ;;  %v3987_v32 = vld [vmem:[#allocation2 + $0x140] sm:$0xff] }
 0x368   :  { %v1164_v39 = vadd.f32 %v1158_v57, %v1079_v49  ;;  %v3970_v49 = vld [vmem:[#allocation2 + $0x180] sm:$0xff]  ;;  %1523 = vmatpush.msrb.mxu2 %v3984_v60  ;;  %v3994_v57 = vld [vmem:[#allocation2 + $0x158] sm:$0xff] }
 0x369   :  { %v1989_v53 = vmul.f32 -1.442695, %v1161_v15  ;;  %1462 = vmatpush.msra.mxu3 %v3970_v49 }
 0x36a   :  { %v1991_v5 = vmul.f32 -1.442695, %v1164_v39  ;;  %1524 = vmatpush.msrb.mxu2 %v3994_v57 }
 0x36b   :  { %v2074_v12 = vpop.eup %2073  ;;  %2075 = vpow2.f32 %v1989_v53  ;;  %1463 = vmatpush.msra.mxu3 %v3979_v25  ;;  %v4013_v53 = vld [vmem:[#allocation2 + $0x100] sm:$0xff] }
 0x36c   :  { %v3964_v3 = vadd.f32 1.0, %v2074_v12  ;;  %2077 = vpow2.f32 %v1991_v5  ;;  %1525 = vmatpush.msrb.mxu2 %v4007_v20  ;;  %v1138_v12 = vpop.f32.mrf.mxu1 }
 0x36d   :  { %1464 = vmatpush.msra.mxu3 %v3987_v32 }
 0x36e   :  { %2079 = vrcp.f32 %v3964_v3  ;;  %1526 = vmatpush.msrb.mxu2 %v4019_v18  ;;  %v1199_v35 = vand.u32 2147483648, %v3964_v3  ;;  %vm1193_vm13 = vweird.f32 %v3964_v3 }
 0x36f   :  { %1465 = vmatpush.msra.mxu3 %v3999_v4 }
 0x371   :  { %v2076_v30 = vpop.eup %2075  ;;  %1466 = vmatpush.msra.mxu3 %v4013_v53 }
 0x372   :  { %v2078_v2 = vpop.eup %2077  ;;  %v3991_v15 = vadd.f32 1.0, %v2076_v30  ;;  %v4022_v30 = vld [vmem:[#allocation2 + $0xe0] sm:$0xff] }
 0x373   :  { %v3997_v31 = vadd.f32 1.0, %v2078_v2  ;;  %5001 = vst [vmem:[#allocation20_spill] sm:$0xff] %v4022_v30  ;;  %1467 = vmatpush.msra.mxu3 %v4022_v30  ;;  %v4027_v2 = vld [vmem:[#allocation2 + $0xf8] sm:$0xff] }
 0x374   :  { %v4003_v39 = vpop.eup %2079  ;;  %2081 = vrcp.f32 %v3991_v15  ;;  %5002 = vst [vmem:[#allocation17_spill] sm:$0xff] %v4027_v2  ;;  %1527 = vmatpush.msrb.mxu2 %v4027_v2  ;;  %v4036_v30 = vld [vmem:[#allocation2 + $0xd8] sm:$0xff]  ;;  %v4044_v2 = vld [vmem:[#allocation2 + $0xa0] sm:$0xff]  ;;  %v1180_v63 = vand.u32 2147483648, %v3991_v15  ;;  %v1178_v50 = vand.u32 2147483647, %v3991_v15  ;;  %vm1174_vm1 = vweird.f32 %v3991_v15 }
 0x375   :  { %v1189_v1 = vmul.f32 %v4003_v39, %v3964_v3  ;;  %2083 = vrcp.f32 %v3997_v31  ;;  %1468 = vmatpush.msra.mxu3 %v4031_v45  ;;  %5004 = vst [vmem:[#allocation18_spill] sm:$0xff] %v4036_v30  ;;  %vm1194_vm12 = vweird.f32 %v4003_v39  ;;  %v4081_v45 = vld [vmem:[#allocation2 + $0x78] sm:$0xff]  ;;  %vm1213_vm5 = vweird.f32 %v3997_v31 }
 0x376   :  { %1528 = vmatpush.msrb.mxu2 %v4036_v30  ;;  %5005 = vst [vmem:[#allocation13_spill] sm:$0xff] %v4044_v2  ;;  %v4057_v30 = vld [vmem:[#allocation2 + $0x80] sm:$0xff]  ;;  %vm4063_vm14 = vmor %vm1193_vm13, %vm1194_vm12  ;;  %v1181_v0 = vor.u32 1.1754944e-38, %v1180_v63  ;;  %vm1179_vm3 = vcmp.eq.f32.partialorder %v1178_v50, 8.507059e+37  ;;  %v1217_v27 = vand.u32 2147483647, %v3997_v31 }
 0x377   :  { %v1190_v5 = vsub.f32 1.0, %v1189_v1  ;;  %v1163_v1 = vadd.f32 %v1138_v12, %v1059_v38  ;;  %1469 = vmatpush.msra.mxu3 %v4044_v2  ;;  %v4052_v38 = vld [vmem:[#allocation2 + $0xb8] sm:$0xff]  ;;  %v1197_v12 = vand.u32 2147483647, %v3964_v3  ;;  %5007 = vst [vmem:[#allocation27_spill] sm:$0xff] %v4057_v30  ;;  %v4085_v2 = vld [vmem:[#allocation2 + $0x40] sm:$0xff] }
 0x378   :  { %5006 = vst [vmem:[#allocation14_spill] sm:$0xff] %v4052_v38  ;;  %1529 = vmatpush.msrb.mxu2 %v4052_v38  ;;  %v4069_v38 = vld [vmem:[#allocation2 + $0x98] sm:$0xff]  ;;  %vm1218_vm7 = vcmp.eq.f32.partialorder %v1217_v27, 8.507059e+37  ;;  %v5037_v27 = vld [vmem:[#allocation64_spill] sm:$0xff] }
 0x379   :  { %v1191_v14 = vmul.f32 %v4003_v39, %v1190_v5  ;;  %1470 = vmatpush.msra.mxu3 %v4057_v30  ;;  %2085 = vtanh.f32 %v1163_v1  ;;  %v4076_v30 = vld [vmem:[#allocation2 + $0x60] sm:$0xff]  ;;  %v1200_v1 = vor.u32 1.1754944e-38, %v1199_v35  ;;  %vm1198_vm0 = vcmp.eq.f32.partialorder %v1197_v12, 8.507059e+37 }
 0x37a   :  { %v2082_v22 = vpop.eup %2081  ;;  %1530 = vmatpush.msrb.mxu2 %v4069_v38 }
 0x37b   :  { %v4039_v21 = vpop.eup %2083  ;;  %v1192_v54 = vadd.f32 %v4003_v39, %v1191_v14  ;;  %v1170_v5 = vmul.f32 %v2082_v22, %v3991_v15  ;;  %vm1175_vm15 = vweird.f32 %v2082_v22  ;;  %1471 = vmatpush.msra.mxu3 %v4076_v30 }
 0x37c   :  { %v1209_v8 = vmul.f32 %v4039_v21, %v3997_v31  ;;  %1531 = vmatpush.msrb.mxu2 %v4081_v45  ;;  %vm1176_vm2 = vmor %vm1174_vm1, %vm1175_vm15  ;;  %vm1214_vm4 = vweird.f32 %v4039_v21 }
 0x37d   :  { %v1171_v14 = vsub.f32 1.0, %v1170_v5  ;;  %v1196_v3 = vsel %vm4063_vm14, %v4003_v39, %v1192_v54  ;;  %1472 = vmatpush.msra.mxu3 %v4085_v2  ;;  %vm1215_vm6 = vmor %vm1213_vm5, %vm1214_vm4 }
 0x37e   :  { %v1210_v40 = vsub.f32 1.0, %v1209_v8  ;;  %v1201_v54 = vsel %vm1198_vm0, %v1200_v1, %v1196_v3  ;;  %1532 = vmatpush.msrb.mxu2 %v4091_v36  ;;  %v4094_v8 = vld [vmem:[#allocation2 + $0x20] sm:$0xff] }
 0x37f   :  { %v1172_v5 = vmul.f32 %v2082_v22, %v1171_v14  ;;  %1473 = vmatpush.msra.mxu3 %v4094_v8  ;;  %v2086_v15 = vpop.eup %2085  ;;  %v4099_v14 = vld [vmem:[#allocation2 + $0x30] sm:$0xff]  ;;  %v4106_v3 = vld [vmem:[#allocation2] sm:$0xff] }
 0x380   :  { %v1211_v12 = vmul.f32 %v4039_v21, %v1210_v40  ;;  %1513 = vmatpush.msrb.mxu1 %v4099_v14  ;;  %1533 = vmatpush.msrb.mxu2 %v4102_v29 }
 0x381   :  { %v1173_v39 = vadd.f32 %v2082_v22, %v1172_v5  ;;  %1474 = vmatpush.msra.mxu3 %v4106_v3  ;;  %v4113_v5 = vld [vmem:[#allocation2 + $0x18] sm:$0xff] }
 0x382   :  { %1514 = vmatpush.msrb.mxu1 %v4110_v43  ;;  %1534 = vmatpush.msrb.mxu2 %v4113_v5  ;;  %v1212_v1 = vadd.f32 %v4039_v21, %v1211_v12  ;;  %v5032_v12 = vld [vmem:[#allocation59_spill] sm:$0xff] }
 0x383   :  { %v1177_v35 = vsel %vm1176_vm2, %v2082_v22, %v1173_v39  ;;  %v1223_v22 = vmul.f32 %v1201_v54, %v3865_v47  ;;  %v1219_v47 = vand.u32 2147483648, %v3997_v31  ;;  %v5028_v31 = vld [vmem:[#allocation55_spill] sm:$0xff] }
 0x384   :  { %v1182_v56 = vsel %vm1179_vm3, %v1181_v0, %v1177_v35  ;;  %v1216_v40 = vsel %vm1215_vm6, %v4039_v21, %v1212_v1  ;;  %v5029_v21 = vld [vmem:[#allocation56_spill] sm:$0xff]  ;;  %v5035_v1 = vld [vmem:[#allocation62_spill] sm:$0xff] }
 0x385   :  { %v1224_v63 = vmul.f32 %v2086_v15, %v1182_v56  ;;  %v1220_v39 = vor.u32 1.1754944e-38, %v1219_v47  ;;  %v5030_v15 = vld [vmem:[#allocation57_spill] sm:$0xff]  ;;  %v5031_v56 = vld [vmem:[#allocation58_spill] sm:$0xff]  ;;  %v5036_v47 = vld [vmem:[#allocation63_spill] sm:$0xff] }
 0x387   :  { %v4116_v50 = vadd.f32 %v1224_v63, %v1223_v22  ;;  %v1221_v0 = vsel %vm1218_vm7, %v1220_v39, %v1216_v40  ;;  %v5033_v22 = vld [vmem:[#allocation60_spill] sm:$0xff]  ;;  %v5034_v63 = vld [vmem:[#allocation61_spill] sm:$0xff]  ;;  %v5039_v39 = vld [vmem:[#allocation66_spill] sm:$0xff] }
 0x388   :  { %v5038_v40 = vld [vmem:[#allocation65_spill] sm:$0xff] }
 0x389   :  { %2087 = vtanh.f32 %v4116_v50 }
 0x38f   :  { %v2088_v54 = vpop.eup %2087 }
 0x390   :  { %v1227_v35 = vmul.f32 %v2088_v54, %v1221_v0  ;;  %v5040_v54 = vld [vmem:[#allocation68_spill] sm:$0xff]  ;;  %v5041_v0 = vld [vmem:[#allocation69_spill] sm:$0xff] }
 0x392   :  { %1326 = vmatmul.f32.vlgmr.msrb.gmra.mxu3 %v1227_v35  ;;  %1346 = vmatmul.f32.vlgmr.msra.gmra.mxu0 %v1227_v35 }
 0x393   :  { %1366 = vmatmul.f32.vlgmr.msra.gmra.mxu1 %v1227_v35  ;;  %1386 = vmatmul.f32.vlgmr.msra.gmra.mxu2 %v1227_v35  ;;  %v5042_v35 = vld [vmem:[#allocation72_spill] sm:$0xff] }
 0x394   :  { %1539 = vmatpush.msrb.mxu3 %v3573_v24  ;;  %1559 = vmatpush.msra.mxu0 %v4938_v62  ;;  %v5011_v24 = vld [vmem:[#allocation12_spill] sm:$0xff]  ;;  %v5012_v62 = vld [vmem:[#allocation39_spill] sm:$0xff] }
 0x395   :  { %1579 = vmatpush.msra.mxu1 %v4939_v46  ;;  %1599 = vmatpush.msra.mxu2 %v4940_v7  ;;  %v5013_v46 = vld [vmem:[#allocation40_spill] sm:$0xff]  ;;  %v5014_v7 = vld [vmem:[#allocation41_spill] sm:$0xff] }
 0x396   :  { %1540 = vmatpush.msrb.mxu3 %v4941_v48  ;;  %1560 = vmatpush.msra.mxu0 %v4942_v23  ;;  %v5015_v48 = vld [vmem:[#allocation42_spill] sm:$0xff]  ;;  %v5016_v23 = vld [vmem:[#allocation43_spill] sm:$0xff] }
 0x397   :  { %1580 = vmatpush.msra.mxu1 %v4943_v41  ;;  %1600 = vmatpush.msra.mxu2 %v4944_v61  ;;  %v5017_v41 = vld [vmem:[#allocation44_spill] sm:$0xff]  ;;  %v5018_v61 = vld [vmem:[#allocation45_spill] sm:$0xff] }
 0x398   :  { %1541 = vmatpush.msrb.mxu3 %v4945_v51  ;;  %1561 = vmatpush.msra.mxu0 %v4946_v13  ;;  %v5019_v51 = vld [vmem:[#allocation46_spill] sm:$0xff]  ;;  %v5020_v13 = vld [vmem:[#allocation47_spill] sm:$0xff] }
 0x399   :  { %1581 = vmatpush.msra.mxu1 %v4947_v10  ;;  %1601 = vmatpush.msra.mxu2 %v4948_v28  ;;  %v5021_v10 = vld [vmem:[#allocation48_spill] sm:$0xff]  ;;  %v5022_v28 = vld [vmem:[#allocation49_spill] sm:$0xff] }
 0x39a   :  { %1542 = vmatpush.msrb.mxu3 %v4949_v11  ;;  %1562 = vmatpush.msra.mxu0 %v4950_v26  ;;  %v5023_v11 = vld [vmem:[#allocation50_spill] sm:$0xff]  ;;  %v5024_v26 = vld [vmem:[#allocation51_spill] sm:$0xff] }
 0x39b   :  { %1582 = vmatpush.msra.mxu1 %v4951_v55  ;;  %1602 = vmatpush.msra.mxu2 %v4952_v6  ;;  %v5025_v55 = vld [vmem:[#allocation52_spill] sm:$0xff]  ;;  %v5026_v6 = vld [vmem:[#allocation53_spill] sm:$0xff] }
 0x39c   :  { %1543 = vmatpush.msrb.mxu3 %v4953_v17  ;;  %1563 = vmatpush.msra.mxu0 %v5011_v24  ;;  %v5027_v17 = vld [vmem:[#allocation54_spill] sm:$0xff]  ;;  %v5043_v24 = vld [vmem:[#allocation73_spill] sm:$0xff] }
 0x39d   :  { %1583 = vmatpush.msra.mxu1 %v5012_v62  ;;  %1603 = vmatpush.msra.mxu2 %v5013_v46  ;;  %v5044_v62 = vld [vmem:[#allocation80_spill] sm:$0xff]  ;;  %v5045_v46 = vld [vmem:[#allocation81_spill] sm:$0xff] }
 0x39e   :  { %1544 = vmatpush.msrb.mxu3 %v5014_v7  ;;  %1564 = vmatpush.msra.mxu0 %v5015_v48  ;;  %v5046_v7 = vld [vmem:[#allocation82_spill] sm:$0xff]  ;;  %v5047_v48 = vld [vmem:[#allocation83_spill] sm:$0xff] }
 0x39f   :  { %1584 = vmatpush.msra.mxu1 %v5016_v23  ;;  %1604 = vmatpush.msra.mxu2 %v5017_v41  ;;  %v5048_v23 = vld [vmem:[#allocation84_spill] sm:$0xff]  ;;  %v5049_v41 = vld [vmem:[#allocation85_spill] sm:$0xff] }
 0x3a0   :  { %1545 = vmatpush.msrb.mxu3 %v5018_v61  ;;  %1565 = vmatpush.msra.mxu0 %v5019_v51  ;;  %v5050_v61 = vld [vmem:[#allocation86_spill] sm:$0xff]  ;;  %v5051_v51 = vld [vmem:[#allocation87_spill] sm:$0xff] }
 0x3a1   :  { %1585 = vmatpush.msra.mxu1 %v5020_v13  ;;  %1605 = vmatpush.msra.mxu2 %v5021_v10  ;;  %v5052_v13 = vld [vmem:[#allocation88_spill] sm:$0xff]  ;;  %v5053_v10 = vld [vmem:[#allocation90_spill] sm:$0xff] }
 0x3a2   :  { %1546 = vmatpush.msrb.mxu3 %v5022_v28  ;;  %1566 = vmatpush.msra.mxu0 %v5023_v11  ;;  %v5054_v28 = vld [vmem:[#allocation91_spill] sm:$0xff]  ;;  %v5055_v11 = vld [vmem:[#allocation92_spill] sm:$0xff] }
 0x3a3   :  { %1586 = vmatpush.msra.mxu1 %v5024_v26  ;;  %1606 = vmatpush.msra.mxu2 %v5025_v55  ;;  %v5056_v26 = vld [vmem:[#allocation93_spill] sm:$0xff]  ;;  %v1267_v55 = vpop.f32.mrf.mxu0 }
 0x3a4   :  { %1547 = vmatpush.msrb.mxu3 %v5026_v6  ;;  %1567 = vmatpush.msra.mxu0 %v5027_v17  ;;  %v1247_v6 = vpop.f32.mrf.mxu3  ;;  %v5057_v17 = vld [vmem:[#allocation24_spill] sm:$0xff] }
 0x3a5   :  { %1587 = vmatpush.msra.mxu1 %v5028_v31  ;;  %1607 = vmatpush.msra.mxu2 %v5029_v21  ;;  %v1268_v31 = vadd.f32 %v1267_v55, %v5057_v17  ;;  %v1307_v21 = vpop.f32.mrf.mxu2  ;;  %v2316_v55 = vld [vmem:[#allocation2 + $0xf0] sm:$0xff] }
 0x3a6   :  { %1548 = vmatpush.msrb.mxu3 %v5030_v15  ;;  %1568 = vmatpush.msra.mxu0 %v5031_v56 }
 0x3a7   :  { %1588 = vmatpush.msra.mxu1 %v5032_v12  ;;  %1608 = vmatpush.msra.mxu2 %v5033_v22  ;;  %v1308_v22 = vadd.f32 %v1307_v21, %v4776_v37  ;;  %v2317_v21 = vld [vmem:[#allocation2 + $0xc8] sm:$0xff] }
 0x3a8   :  { %1549 = vmatpush.msrb.mxu3 %v5034_v63  ;;  %1569 = vmatpush.msra.mxu0 %v5035_v1  ;;  %v1248_v63 = vadd.f32 %v1247_v6, %v4777_v34  ;;  %v5059_v6 = vld [vmem:[#allocation17_spill] sm:$0xff] }
 0x3a9   :  { %1589 = vmatpush.msra.mxu1 %v5036_v47  ;;  %1609 = vmatpush.msra.mxu2 %v5037_v27 }
 0x3aa   :  { %1550 = vmatpush.msrb.mxu3 %v5038_v40  ;;  %1570 = vmatpush.msra.mxu0 %v5039_v39  ;;  %v2299_v40 = vld [vmem:[#allocation2 + $0x1e8] sm:$0xff] }
 0x3ab   :  { %1590 = vmatpush.msra.mxu1 %v5040_v54  ;;  %1610 = vmatpush.msra.mxu2 %v5041_v0  ;;  %v2300_v54 = vld [vmem:[#allocation2 + $0x1f0] sm:$0xff] }
 0x3ac   :  { %1551 = vmatpush.msrb.mxu3 %v5042_v35  ;;  %1571 = vmatpush.msra.mxu0 %v5043_v24  ;;  %v2301_v35 = vld [vmem:[#allocation2 + $0x1c8] sm:$0xff] }
 0x3ad   :  { %1591 = vmatpush.msra.mxu1 %v5044_v62  ;;  %1611 = vmatpush.msra.mxu2 %v5045_v46  ;;  %v2302_v62 = vld [vmem:[#allocation2 + $0x1d0] sm:$0xff] }
 0x3ae   :  { %1552 = vmatpush.msrb.mxu3 %v5046_v7  ;;  %1572 = vmatpush.msra.mxu0 %v5047_v48  ;;  %v2305_v48 = vld [vmem:[#allocation2 + $0x188] sm:$0xff] }
 0x3af   :  { %1592 = vmatpush.msra.mxu1 %v5048_v23  ;;  %1612 = vmatpush.msra.mxu2 %v5049_v41  ;;  %v2308_v23 = vld [vmem:[#allocation2 + $0x170] sm:$0xff] }
 0x3b0   :  { %1553 = vmatpush.msrb.mxu3 %v5050_v61  ;;  %1573 = vmatpush.msra.mxu0 %v5051_v51  ;;  %v2310_v51 = vld [vmem:[#allocation2 + $0x150] sm:$0xff] }
 0x3b1   :  { %1593 = vmatpush.msra.mxu1 %v5052_v13  ;;  %1613 = vmatpush.msra.mxu2 %v4996_v33  ;;  %v1996_v33 = vld [vmem:[%s4300_s0 + $0xc] sm:$0x3] }
 0x3b2   :  { %1554 = vmatpush.msrb.mxu3 %v5053_v10  ;;  %1574 = vmatpush.msra.mxu0 %v5054_v28  ;;  %v2314_v10 = vld [vmem:[#allocation2 + $0x110] sm:$0xff] }
 0x3b3   :  { %1594 = vmatpush.msra.mxu1 %v5055_v11  ;;  %1614 = vmatpush.msra.mxu2 %v5056_v26  ;;  %v5058_v26 = vld [vmem:[#allocation20_spill] sm:$0xff] }
 0x3b4   :  { %1475 = vmatmul.f32.vlgmr.msra.gmra.mxu3 %v1996_v33  ;;  %1495 = vmatmul.f32.vlgmr.msrb.gmra.mxu0 %v1996_v33 }
 0x3b5   :  { %1515 = vmatmul.f32.vlgmr.msrb.gmra.mxu1 %v1996_v33  ;;  %1535 = vmatmul.f32.vlgmr.msrb.gmra.mxu2 %v1996_v33 }
 0x3b6   :  { %1688 = vmatpush.msra.mxu3 %v3944_v52  ;;  %1708 = vmatpush.msrb.mxu0 %v2299_v40  ;;  %v2303_v52 = vld [vmem:[#allocation2 + $0x1a8] sm:$0xff] }
 0x3b7   :  { %1728 = vmatpush.msrb.mxu1 %v2300_v54  ;;  %1748 = vmatpush.msrb.mxu2 %v3949_v42  ;;  %v2304_v42 = vld [vmem:[#allocation2 + $0x1b0] sm:$0xff] }
 0x3b8   :  { %1689 = vmatpush.msra.mxu3 %v3952_v58  ;;  %1709 = vmatpush.msrb.mxu0 %v2301_v35  ;;  %v1287_v58 = vpop.f32.mrf.mxu1  ;;  %v5063_v54 = vld [vmem:[#allocation14_spill] sm:$0xff] }
 0x3b9   :  { %1729 = vmatpush.msrb.mxu1 %v2302_v62  ;;  %1749 = vmatpush.msrb.mxu2 %v3957_v59  ;;  %v2306_v59 = vld [vmem:[#allocation2 + $0x190] sm:$0xff]  ;;  %v2321_v62 = vld [vmem:[#allocation2 + $0x88] sm:$0xff] }
 0x3ba   :  { %1690 = vmatpush.msra.mxu3 %v3960_v16  ;;  %1710 = vmatpush.msrb.mxu0 %v2303_v52  ;;  %v2307_v16 = vld [vmem:[#allocation2 + $0x168] sm:$0xff] }
 0x3bb   :  { %1730 = vmatpush.msrb.mxu1 %v2304_v42  ;;  %1750 = vmatpush.msrb.mxu2 %v3967_v19  ;;  %v2322_v42 = vld [vmem:[#allocation2 + $0x90] sm:$0xff] }
 0x3bc   :  { %1691 = vmatpush.msra.mxu3 %v3970_v49  ;;  %1711 = vmatpush.msrb.mxu0 %v2305_v48  ;;  %v2309_v49 = vld [vmem:[#allocation2 + $0x148] sm:$0xff] }
 0x3bd   :  { %1731 = vmatpush.msrb.mxu1 %v2306_v59  ;;  %1751 = vmatpush.msrb.mxu2 %v3976_v9  ;;  %v2323_v59 = vld [vmem:[#allocation2 + $0x68] sm:$0xff] }
 0x3be   :  { %1692 = vmatpush.msra.mxu3 %v3979_v25  ;;  %1712 = vmatpush.msrb.mxu0 %v2307_v16  ;;  %v2311_v25 = vld [vmem:[#allocation2 + $0x128] sm:$0xff] }
 0x3bf   :  { %1732 = vmatpush.msrb.mxu1 %v2308_v23  ;;  %1752 = vmatpush.msrb.mxu2 %v3984_v60  ;;  %v2312_v60 = vld [vmem:[#allocation2 + $0x130] sm:$0xff] }
 0x3c0   :  { %1693 = vmatpush.msra.mxu3 %v3987_v32  ;;  %1713 = vmatpush.msrb.mxu0 %v2309_v49  ;;  %v2325_v49 = vld [vmem:[#allocation2 + $0x48] sm:$0xff] }
 0x3c1   :  { %1733 = vmatpush.msrb.mxu1 %v2310_v51  ;;  %1753 = vmatpush.msrb.mxu2 %v3994_v57  ;;  %v2313_v57 = vld [vmem:[#allocation2 + $0x108] sm:$0xff]  ;;  %v2326_v51 = vld [vmem:[#allocation2 + $0x50] sm:$0xff] }
 0x3c2   :  { %1694 = vmatpush.msra.mxu3 %v3999_v4  ;;  %1714 = vmatpush.msrb.mxu0 %v2311_v25  ;;  %v1288_v4 = vadd.f32 %v1287_v58, %v4919_v44 }
 0x3c3   :  { %1734 = vmatpush.msrb.mxu1 %v2312_v60  ;;  %1754 = vmatpush.msrb.mxu2 %v4007_v20  ;;  %v2315_v20 = vld [vmem:[#allocation2 + $0xe8] sm:$0xff] }
 0x3c4   :  { %1695 = vmatpush.msra.mxu3 %v4013_v53  ;;  %1715 = vmatpush.msrb.mxu0 %v2313_v57 }
 0x3c5   :  { %1735 = vmatpush.msrb.mxu1 %v2314_v10  ;;  %1755 = vmatpush.msrb.mxu2 %v4019_v18  ;;  %v5061_v18 = vld [vmem:[#allocation18_spill] sm:$0xff]  ;;  %v2329_v10 = vld [vmem:[#allocation5 + $0x1e0] sm:$0xff] }
 0x3c6   :  { %1696 = vmatpush.msra.mxu3 %v5058_v26  ;;  %1716 = vmatpush.msrb.mxu0 %v2315_v20  ;;  %v2332_v26 = vld [vmem:[#allocation5 + $0x1f8] sm:$0xff]  ;;  %v2334_v20 = vld [vmem:[#allocation5 + $0x1c8] sm:$0xff] }
 0x3c7   :  { %1736 = vmatpush.msrb.mxu1 %v2316_v55  ;;  %1756 = vmatpush.msrb.mxu2 %v5059_v6  ;;  %v2335_v55 = vld [vmem:[#allocation5 + $0x1d0] sm:$0xff]  ;;  %v2336_v6 = vld [vmem:[#allocation5 + $0x1d8] sm:$0xff] }
 0x3c8   :  { %1717 = vmatpush.msrb.mxu0 %v2317_v21  ;;  %v2339_v21 = vld [vmem:[#allocation5 + $0x1b0] sm:$0xff] }
 0x3c9   :  { %1757 = vmatpush.msrb.mxu2 %v5061_v18  ;;  %v2343_v18 = vld [vmem:[#allocation5 + $0x190] sm:$0xff] }
 0x3cb   :  { %1758 = vmatpush.msrb.mxu2 %v5063_v54  ;;  %v2352_v54 = vld [vmem:[#allocation5 + $0x158] sm:$0xff] }
 0x3cd   :  { %1759 = vmatpush.msrb.mxu2 %v4069_v38 }
 0x3cf   :  { %1760 = vmatpush.msrb.mxu2 %v4081_v45  ;;  %v2327_v45 = vld [vmem:[#allocation2 + $0x28] sm:$0xff] }
 0x3d1   :  { %1761 = vmatpush.msrb.mxu2 %v4091_v36  ;;  %v2328_v36 = vld [vmem:[#allocation2 + $0x8] sm:$0xff] }
 0x3d3   :  { %1762 = vmatpush.msrb.mxu2 %v4102_v29 }
 0x3d5   :  { %1763 = vmatpush.msrb.mxu2 %v4113_v5 }
 0x40f   :  { %v1347_v15 = vpop.f32.mrf.mxu0 }
 0x410   :  { %v1391_v56 = vadd.f32 %v1347_v15, %v1268_v31  ;;  %v1367_v11 = vpop.f32.mrf.mxu1  ;;  %v5060_v31 = vld [vmem:[#allocation94_spill] sm:$0xff] }
 0x411   :  { %1697 = vmatpush.msra.mxu3 %v5060_v31  ;;  %v2338_v31 = vld [vmem:[#allocation5 + $0x1a8] sm:$0xff] }
 0x412   :  { %v1994_v12 = vmul.f32 -1.442695, %v1391_v56  ;;  %v1392_v56 = vadd.f32 %v1367_v11, %v1288_v4  ;;  %v2331_v11 = vld [vmem:[#allocation5 + $0x1f0] sm:$0xff] }
 0x414   :  { %2089 = vpow2.f32 %v1994_v12  ;;  %v2318_v12 = vld [vmem:[#allocation2 + $0xd0] sm:$0xff] }
 0x415   :  { %v1327_v1 = vpop.f32.mrf.mxu3  ;;  %1737 = vmatpush.msrb.mxu1 %v2318_v12  ;;  %v2342_v12 = vld [vmem:[#allocation5 + $0x188] sm:$0xff] }
 0x416   :  { %v1390_v47 = vadd.f32 %v1327_v1, %v1248_v63  ;;  %v1387_v27 = vpop.f32.mrf.mxu2  ;;  %v5062_v1 = vld [vmem:[#allocation13_spill] sm:$0xff] }
 0x417   :  { %v1393_v39 = vadd.f32 %v1387_v27, %v1308_v22  ;;  %1698 = vmatpush.msra.mxu3 %v5062_v1  ;;  %v2347_v1 = vld [vmem:[#allocation5 + $0x170] sm:$0xff] }
 0x418   :  { %v1993_v0 = vmul.f32 -1.442695, %v1390_v47  ;;  %v2319_v47 = vld [vmem:[#allocation2 + $0xa8] sm:$0xff] }
 0x419   :  { %v1995_v24 = vmul.f32 -1.442695, %v1393_v39  ;;  %1718 = vmatpush.msrb.mxu0 %v2319_v47  ;;  %v2320_v39 = vld [vmem:[#allocation2 + $0xb0] sm:$0xff]  ;;  %v2348_v47 = vld [vmem:[#allocation5 + $0x178] sm:$0xff] }
 0x41a   :  { %v2090_v46 = vpop.eup %2089  ;;  %2091 = vpow2.f32 %v1993_v0  ;;  %1738 = vmatpush.msrb.mxu1 %v2320_v39  ;;  %v2351_v39 = vld [vmem:[#allocation5 + $0x150] sm:$0xff] }
 0x41b   :  { %v4200_v7 = vadd.f32 1.0, %v2090_v46  ;;  %2093 = vpow2.f32 %v1995_v24  ;;  %v5064_v24 = vld [vmem:[#allocation27_spill] sm:$0xff]  ;;  %1719 = vmatpush.msrb.mxu0 %v2321_v62 }
 0x41c   :  { %1699 = vmatpush.msra.mxu3 %v5064_v24  ;;  %1739 = vmatpush.msrb.mxu1 %v2322_v42  ;;  %v2355_v24 = vld [vmem:[#allocation5 + $0x130] sm:$0xff]  ;;  %v2356_v62 = vld [vmem:[#allocation5 + $0x138] sm:$0xff]  ;;  %v2357_v46 = vld [vmem:[#allocation5 + $0x100] sm:$0xff] }
 0x41d   :  { %2095 = vrcp.f32 %v4200_v7  ;;  %v1428_v27 = vand.u32 2147483648, %v4200_v7  ;;  %vm1422_vm9 = vweird.f32 %v4200_v7  ;;  %v1426_v0 = vand.u32 2147483647, %v4200_v7  ;;  %1720 = vmatpush.msrb.mxu0 %v2323_v59  ;;  %v2359_v42 = vld [vmem:[#allocation5 + $0x110] sm:$0xff] }
 0x41e   :  { %1700 = vmatpush.msra.mxu3 %v4076_v30  ;;  %v2363_v59 = vld [vmem:[#allocation5 + $0xf0] sm:$0xff] }
 0x41f   :  { %v1429_v16 = vor.u32 1.1754944e-38, %v1428_v27  ;;  %vm1427_vm12 = vcmp.eq.f32.partialorder %v1426_v0, 8.507059e+37  ;;  %1721 = vmatpush.msrb.mxu0 %v2325_v49  ;;  %v2349_v27 = vld [vmem:[#allocation5 + $0x140] sm:$0xff]  ;;  %v2368_v49 = vld [vmem:[#allocation5 + $0xd8] sm:$0xff] }
 0x420   :  { %v2092_v19 = vpop.eup %2091  ;;  %1701 = vmatpush.msra.mxu3 %v4085_v2  ;;  %v2353_v0 = vld [vmem:[#allocation5 + $0x120] sm:$0xff] }
 0x421   :  { %v2094_v41 = vpop.eup %2093  ;;  %v4209_v61 = vadd.f32 1.0, %v2092_v19  ;;  %v2324_v19 = vld [vmem:[#allocation2 + $0x70] sm:$0xff]  ;;  %1722 = vmatpush.msrb.mxu0 %v2327_v45  ;;  %v2373_v45 = vld [vmem:[#allocation5 + $0x80] sm:$0xff] }
 0x422   :  { %v4212_v9 = vadd.f32 1.0, %v2094_v41  ;;  %1740 = vmatpush.msrb.mxu1 %v2324_v19  ;;  %1702 = vmatpush.msra.mxu3 %v4094_v8  ;;  %v2366_v19 = vld [vmem:[#allocation5 + $0xc8] sm:$0xff] }
 0x423   :  { %v4215_v13 = vpop.eup %2095  ;;  %2097 = vrcp.f32 %v4209_v61  ;;  %v1409_v52 = vand.u32 2147483648, %v4209_v61  ;;  %v1407_v48 = vand.u32 2147483647, %v4209_v61  ;;  %vm1403_vm13 = vweird.f32 %v4209_v61  ;;  %1723 = vmatpush.msrb.mxu0 %v2328_v36  ;;  %v2379_v36 = vld [vmem:[#allocation5 + $0x70] sm:$0xff] }
 0x424   :  { %v1418_v32 = vmul.f32 %v4215_v13, %v4200_v7  ;;  %2099 = vrcp.f32 %v4212_v9  ;;  %vm1423_vm8 = vweird.f32 %v4215_v13  ;;  %1741 = vmatpush.msrb.mxu1 %v2326_v51  ;;  %1703 = vmatpush.msra.mxu3 %v4106_v3  ;;  %vm1442_vm1 = vweird.f32 %v4212_v9  ;;  %v2371_v51 = vld [vmem:[#allocation5 + $0xb0] sm:$0xff] }
 0x425   :  { %vm4245_vm10 = vmor %vm1422_vm9, %vm1423_vm8  ;;  %2101 = vtanh.f32 %v1392_v56  ;;  %v1410_v30 = vor.u32 1.1754944e-38, %v1409_v52  ;;  %vm1408_vm15 = vcmp.eq.f32.partialorder %v1407_v48, 8.507059e+37  ;;  %v1446_v29 = vand.u32 2147483647, %v4212_v9  ;;  %v2341_v56 = vld [vmem:[#allocation5 + $0x180] sm:$0xff]  ;;  %v2358_v52 = vld [vmem:[#allocation5 + $0x108] sm:$0xff] }
 0x426   :  { %v1419_v28 = vsub.f32 1.0, %v1418_v32  ;;  %1742 = vmatpush.msrb.mxu1 %v4099_v14  ;;  %v1448_v14 = vand.u32 2147483648, %v4212_v9  ;;  %v2362_v48 = vld [vmem:[#allocation5 + $0xe8] sm:$0xff] }
 0x427   :  { %vm1447_vm3 = vcmp.eq.f32.partialorder %v1446_v29, 8.507059e+37  ;;  %v2382_v29 = vld [vmem:[#allocation5 + $0x48] sm:$0xff] }
 0x428   :  { %v1420_v53 = vmul.f32 %v4215_v13, %v1419_v28  ;;  %1743 = vmatpush.msrb.mxu1 %v4110_v43  ;;  %v1449_v43 = vor.u32 1.1754944e-38, %v1448_v14  ;;  %v2330_v28 = vld [vmem:[#allocation5 + $0x1e8] sm:$0xff]  ;;  %v2381_v14 = vld [vmem:[#allocation5 + $0x40] sm:$0xff] }
 0x429   :  { %v2098_v15 = vpop.eup %2097 }
 0x42a   :  { %v4230_v22 = vpop.eup %2099  ;;  %v1421_v33 = vadd.f32 %v4215_v13, %v1420_v53  ;;  %v1399_v63 = vmul.f32 %v2098_v15, %v4209_v61  ;;  %vm1404_vm11 = vweird.f32 %v2098_v15  ;;  %v2337_v53 = vld [vmem:[#allocation5 + $0x1a0] sm:$0xff] }
 0x42b   :  { %v1438_v40 = vmul.f32 %v4230_v22, %v4212_v9  ;;  %vm1405_vm14 = vmor %vm1403_vm13, %vm1404_vm11  ;;  %vm1443_vm0 = vweird.f32 %v4230_v22  ;;  %v2333_v9 = vld [vmem:[#allocation5 + $0x1c0] sm:$0xff] }
 0x42c   :  { %v1400_v35 = vsub.f32 1.0, %v1399_v63  ;;  %v1425_v7 = vsel %vm4245_vm10, %v4215_v13, %v1421_v33  ;;  %v2102_v13 = vpop.eup %2101  ;;  %vm1444_vm2 = vmor %vm1442_vm1, %vm1443_vm0  ;;  %v2345_v33 = vld [vmem:[#allocation5 + $0x160] sm:$0xff]  ;;  %v2346_v63 = vld [vmem:[#allocation5 + $0x168] sm:$0xff] }
 0x42d   :  { %v1439_v23 = vsub.f32 1.0, %v1438_v40  ;;  %v1430_v41 = vsel %vm1427_vm12, %v1429_v16, %v1425_v7  ;;  %v2350_v40 = vld [vmem:[#allocation5 + $0x148] sm:$0xff]  ;;  %v2360_v7 = vld [vmem:[#allocation5 + $0x118] sm:$0xff] }
 0x42e   :  { %v1401_v58 = vmul.f32 %v2098_v15, %v1400_v35  ;;  %v1452_v60 = vmul.f32 %v1430_v41, %v4116_v50  ;;  %v2354_v35 = vld [vmem:[#allocation5 + $0x128] sm:$0xff]  ;;  %v2364_v16 = vld [vmem:[#allocation5 + $0xf8] sm:$0xff]  ;;  %v2369_v41 = vld [vmem:[#allocation5 + $0xa0] sm:$0xff] }
 0x42f   :  { %v1440_v2 = vmul.f32 %v4230_v22, %v1439_v23  ;;  %v2365_v23 = vld [vmem:[#allocation5 + $0xc0] sm:$0xff] }
 0x430   :  { %v1402_v38 = vadd.f32 %v2098_v15, %v1401_v58  ;;  %v2361_v58 = vld [vmem:[#allocation5 + $0xe0] sm:$0xff] }
 0x431   :  { %v1441_v57 = vadd.f32 %v4230_v22, %v1440_v2  ;;  %v2376_v2 = vld [vmem:[#allocation5 + $0x98] sm:$0xff] }
 0x432   :  { %v1406_v25 = vsel %vm1405_vm14, %v2098_v15, %v1402_v38  ;;  %v2340_v15 = vld [vmem:[#allocation5 + $0x1b8] sm:$0xff]  ;;  %v2367_v38 = vld [vmem:[#allocation5 + $0xd0] sm:$0xff] }
 0x433   :  { %v1411_v61 = vsel %vm1408_vm15, %v1410_v30, %v1406_v25  ;;  %v1445_v3 = vsel %vm1444_vm2, %v4230_v22, %v1441_v57  ;;  %v2344_v22 = vld [vmem:[#allocation5 + $0x198] sm:$0xff]  ;;  %v2370_v30 = vld [vmem:[#allocation5 + $0xa8] sm:$0xff] }
 0x434   :  { %v1453_v32 = vmul.f32 %v2102_v13, %v1411_v61  ;;  %v1450_v50 = vsel %vm1447_vm3, %v1449_v43, %v1445_v3  ;;  %v2372_v25 = vld [vmem:[#allocation5 + $0xb8] sm:$0xff]  ;;  %v2374_v13 = vld [vmem:[#allocation5 + $0x88] sm:$0xff]  ;;  %v2375_v61 = vld [vmem:[#allocation5 + $0x90] sm:$0xff] }
 0x435   :  { %v2380_v57 = vld [vmem:[#allocation5 + $0x78] sm:$0xff]  ;;  %v2383_v3 = vld [vmem:[#allocation5 + $0x50] sm:$0xff] }
 0x436   :  { %v4269_v8 = vadd.f32 %v1453_v32, %v1452_v60  ;;  %v2377_v60 = vld [vmem:[#allocation5 + $0x60] sm:$0xff]  ;;  %v2378_v32 = vld [vmem:[#allocation5 + $0x68] sm:$0xff]  ;;  %v2384_v43 = vld [vmem:[#allocation5 + $0x58] sm:$0xff] }
 0x438   :  { %2103 = vtanh.f32 %v4269_v8 }
 0x43e   :  { %v2104_v5 = vpop.eup %2103 }
 0x43f   :  { %v1456_v4 = vmul.f32 %v2104_v5, %v1450_v50  ;;  %v2385_v5 = vld [vmem:[#allocation5 + $0x20] sm:$0xff]  ;;  %v2386_v50 = vld [vmem:[#allocation5 + $0x28] sm:$0xff] }
 0x441   :  { %1555 = vmatmul.f32.vlgmr.msrb.gmra.mxu3 %v1456_v4  ;;  %1575 = vmatmul.f32.vlgmr.msra.gmra.mxu0 %v1456_v4 }
 0x442   :  { %1595 = vmatmul.f32.vlgmr.msra.gmra.mxu1 %v1456_v4  ;;  %1615 = vmatmul.f32.vlgmr.msra.gmra.mxu2 %v1456_v4  ;;  %v2387_v4 = vld [vmem:[#allocation5 + $0x30] sm:$0xff] }
 0x443   :  { %1768 = vmatpush.msrb.mxu3 %v2329_v10  ;;  %1788 = vmatpush.msra.mxu0 %v2330_v28  ;;  %v2388_v10 = vld [vmem:[#allocation5 + $0x38] sm:$0xff]  ;;  %v2389_v28 = vld [vmem:[#allocation5] sm:$0xff] }
 0x444   :  { %1808 = vmatpush.msra.mxu1 %v2331_v11  ;;  %1828 = vmatpush.msra.mxu2 %v2332_v26  ;;  %v2390_v11 = vld [vmem:[#allocation5 + $0x8] sm:$0xff]  ;;  %v2391_v26 = vld [vmem:[#allocation5 + $0x10] sm:$0xff] }
 0x445   :  { %1769 = vmatpush.msrb.mxu3 %v2333_v9  ;;  %1789 = vmatpush.msra.mxu0 %v2334_v20  ;;  %v2392_v9 = vld [vmem:[#allocation5 + $0x18] sm:$0xff]  ;;  %v1496_v20 = vpop.f32.mrf.mxu0 }
 0x446   :  { %1809 = vmatpush.msra.mxu1 %v2335_v55  ;;  %1829 = vmatpush.msra.mxu2 %v2336_v6  ;;  %v1476_v55 = vpop.f32.mrf.mxu3  ;;  %v1497_v6 = vadd.f32 %v1496_v20, %v5057_v17 }
 0x447   :  { %1770 = vmatpush.msrb.mxu3 %v2337_v53  ;;  %1790 = vmatpush.msra.mxu0 %v2338_v31  ;;  %v1536_v53 = vpop.f32.mrf.mxu2 }
 0x448   :  { %1810 = vmatpush.msra.mxu1 %v2339_v21  ;;  %1830 = vmatpush.msra.mxu2 %v2340_v15 }
 0x449   :  { %1771 = vmatpush.msrb.mxu3 %v2341_v56  ;;  %1791 = vmatpush.msra.mxu0 %v2342_v12  ;;  %v1537_v56 = vadd.f32 %v1536_v53, %v4776_v37  ;;  %v2000_v12 = vld [vmem:[%s4300_s0 + $0xe] sm:$0x3] }
 0x44a   :  { %1811 = vmatpush.msra.mxu1 %v2343_v18  ;;  %1831 = vmatpush.msra.mxu2 %v2344_v22  ;;  %v1477_v18 = vadd.f32 %v1476_v55, %v4777_v34 }
 0x44b   :  { %1772 = vmatpush.msrb.mxu3 %v2345_v33  ;;  %1792 = vmatpush.msra.mxu0 %v2346_v63 }
 0x44c   :  { %1812 = vmatpush.msra.mxu1 %v2347_v1  ;;  %1832 = vmatpush.msra.mxu2 %v2348_v47 }
 0x44d   :  { %1773 = vmatpush.msrb.mxu3 %v2349_v27  ;;  %1793 = vmatpush.msra.mxu0 %v2350_v40 }
 0x44e   :  { %1813 = vmatpush.msra.mxu1 %v2351_v39  ;;  %1833 = vmatpush.msra.mxu2 %v2352_v54  ;;  %v1516_v54 = vpop.f32.mrf.mxu1 }
 0x44f   :  { %1774 = vmatpush.msrb.mxu3 %v2353_v0  ;;  %1794 = vmatpush.msra.mxu0 %v2354_v35 }
 0x450   :  { %1814 = vmatpush.msra.mxu1 %v2355_v24  ;;  %1834 = vmatpush.msra.mxu2 %v2356_v62 }
 0x451   :  { %1775 = vmatpush.msrb.mxu3 %v2357_v46  ;;  %1795 = vmatpush.msra.mxu0 %v2358_v52 }
 0x452   :  { %1815 = vmatpush.msra.mxu1 %v2359_v42  ;;  %1835 = vmatpush.msra.mxu2 %v2360_v7  ;;  %v1517_v42 = vadd.f32 %v1516_v54, %v4919_v44 }
 0x453   :  { %1776 = vmatpush.msrb.mxu3 %v2361_v58  ;;  %1796 = vmatpush.msra.mxu0 %v2362_v48 }
 0x454   :  { %1816 = vmatpush.msra.mxu1 %v2363_v59  ;;  %1836 = vmatpush.msra.mxu2 %v2364_v16 }
 0x455   :  { %1777 = vmatpush.msrb.mxu3 %v2365_v23  ;;  %1797 = vmatpush.msra.mxu0 %v2366_v19 }
 0x456   :  { %1817 = vmatpush.msra.mxu1 %v2367_v38  ;;  %1837 = vmatpush.msra.mxu2 %v2368_v49 }
 0x457   :  { %1778 = vmatpush.msrb.mxu3 %v2369_v41  ;;  %1798 = vmatpush.msra.mxu0 %v2370_v30 }
 0x458   :  { %1818 = vmatpush.msra.mxu1 %v2371_v51  ;;  %1838 = vmatpush.msra.mxu2 %v2372_v25 }
 0x459   :  { %1779 = vmatpush.msrb.mxu3 %v2373_v45  ;;  %1799 = vmatpush.msra.mxu0 %v2374_v13 }
 0x45a   :  { %1819 = vmatpush.msra.mxu1 %v2375_v61  ;;  %1839 = vmatpush.msra.mxu2 %v2376_v2 }
 0x45b   :  { %1780 = vmatpush.msrb.mxu3 %v2377_v60  ;;  %1800 = vmatpush.msra.mxu0 %v2378_v32 }
 0x45c   :  { %1820 = vmatpush.msra.mxu1 %v2379_v36  ;;  %1840 = vmatpush.msra.mxu2 %v2380_v57 }
 0x45d   :  { %1781 = vmatpush.msrb.mxu3 %v2381_v14  ;;  %1801 = vmatpush.msra.mxu0 %v2382_v29 }
 0x45e   :  { %1821 = vmatpush.msra.mxu1 %v2383_v3  ;;  %1841 = vmatpush.msra.mxu2 %v2384_v43 }
 0x45f   :  { %1782 = vmatpush.msrb.mxu3 %v2385_v5  ;;  %1802 = vmatpush.msra.mxu0 %v2386_v50 }
 0x460   :  { %1822 = vmatpush.msra.mxu1 %v2387_v4  ;;  %1842 = vmatpush.msra.mxu2 %v2388_v10 }
 0x461   :  { %1783 = vmatpush.msrb.mxu3 %v2389_v28  ;;  %1803 = vmatpush.msra.mxu0 %v2390_v11 }
 0x462   :  { %1823 = vmatpush.msra.mxu1 %v2391_v26  ;;  %1843 = vmatpush.msra.mxu2 %v2392_v9 }
 0x463   :  { %1704 = vmatmul.f32.vlgmr.msra.gmra.mxu3 %v2000_v12  ;;  %1724 = vmatmul.f32.vlgmr.msrb.gmra.mxu0 %v2000_v12 }
 0x464   :  { %1744 = vmatmul.f32.vlgmr.msrb.gmra.mxu1 %v2000_v12  ;;  %1764 = vmatmul.f32.vlgmr.msrb.gmra.mxu2 %v2000_v12  ;;  %v1926_v12 = vld [vmem:[#allocation7 + $0x58] sm:$0xff] }
 0x4be   :  { %v1576_v31 = vpop.f32.mrf.mxu0 }
 0x4bf   :  { %v1620_v21 = vadd.f32 %v1576_v31, %v1497_v6  ;;  %v1596_v58 = vpop.f32.mrf.mxu1  ;;  %v1929_v31 = vld [vmem:[#allocation7 + $0x70] sm:$0xff] }
 0x4c0   :  { %v1621_v16 = vadd.f32 %v1596_v58, %v1517_v42  ;;  %v1919_v42 = vld [vmem:[#allocation7 + $0x20] sm:$0xff] }
 0x4c1   :  { %v1998_v15 = vmul.f32 -1.442695, %v1620_v21  ;;  %v1928_v21 = vld [vmem:[#allocation7 + $0x68] sm:$0xff] }
 0x4c3   :  { %2105 = vpow2.f32 %v1998_v15  ;;  %v1927_v15 = vld [vmem:[#allocation7 + $0x60] sm:$0xff] }
 0x4c4   :  { %v1556_v22 = vpop.f32.mrf.mxu3 }
 0x4c5   :  { %v1619_v33 = vadd.f32 %v1556_v22, %v1477_v18  ;;  %v1616_v63 = vpop.f32.mrf.mxu2 }
 0x4c6   :  { %v1622_v1 = vadd.f32 %v1616_v63, %v1537_v56 }
 0x4c7   :  { %v1997_v47 = vmul.f32 -1.442695, %v1619_v33  ;;  %v1925_v33 = vld [vmem:[#allocation7 + $0x50] sm:$0xff] }
 0x4c8   :  { %v1999_v27 = vmul.f32 -1.442695, %v1622_v1  ;;  %v1924_v1 = vld [vmem:[#allocation7 + $0x48] sm:$0xff] }
 0x4c9   :  { %v2106_v40 = vpop.eup %2105  ;;  %2107 = vpow2.f32 %v1997_v47 }
 0x4ca   :  { %v1645_v39 = vadd.f32 1.0, %v2106_v40  ;;  %2109 = vpow2.f32 %v1999_v27  ;;  %v1923_v27 = vld [vmem:[#allocation7 + $0x40] sm:$0xff] }
 0x4cc   :  { %2111 = vrcp.f32 %v1645_v39  ;;  %v1657_v49 = vand.u32 2147483648, %v1645_v39  ;;  %vm1651_vm5 = vweird.f32 %v1645_v39  ;;  %v1655_v30 = vand.u32 2147483647, %v1645_v39 }
 0x4ce   :  { %v1658_v2 = vor.u32 1.1754944e-38, %v1657_v49  ;;  %vm1656_vm8 = vcmp.eq.f32.partialorder %v1655_v30, 8.507059e+37 }
 0x4cf   :  { %v2108_v0 = vpop.eup %2107 }
 0x4d0   :  { %v2110_v35 = vpop.eup %2109  ;;  %v1626_v24 = vadd.f32 1.0, %v2108_v0  ;;  %v1921_v0 = vld [vmem:[#allocation7 + $0x30] sm:$0xff] }
 0x4d1   :  { %v1665_v62 = vadd.f32 1.0, %v2110_v35 }
 0x4d2   :  { %v2112_v46 = vpop.eup %2111  ;;  %2113 = vrcp.f32 %v1626_v24  ;;  %v1638_v25 = vand.u32 2147483648, %v1626_v24  ;;  %v1636_v61 = vand.u32 2147483647, %v1626_v24  ;;  %vm1632_vm9 = vweird.f32 %v1626_v24 }
 0x4d3   :  { %v1647_v52 = vmul.f32 %v2112_v46, %v1645_v39  ;;  %2115 = vrcp.f32 %v1665_v62  ;;  %vm1652_vm4 = vweird.f32 %v2112_v46  ;;  %v1677_v28 = vand.u32 2147483648, %v1665_v62  ;;  %v1922_v39 = vld [vmem:[#allocation7 + $0x38] sm:$0xff] }
 0x4d4   :  { %vm1653_vm6 = vmor %vm1651_vm5, %vm1652_vm4  ;;  %2117 = vtanh.f32 %v1621_v16  ;;  %v1639_v57 = vor.u32 1.1754944e-38, %v1638_v25  ;;  %vm1637_vm11 = vcmp.eq.f32.partialorder %v1636_v61, 8.507059e+37  ;;  %vm1671_vm13 = vweird.f32 %v1665_v62  ;;  %v1917_v16 = vld [vmem:[#allocation7 + $0x10] sm:$0xff] }
 0x4d5   :  { %v1648_v7 = vsub.f32 1.0, %v1647_v52  ;;  %v1675_v11 = vand.u32 2147483647, %v1665_v62  ;;  %v1678_v9 = vor.u32 1.1754944e-38, %v1677_v28 }
 0x4d7   :  { %v1649_v48 = vmul.f32 %v2112_v46, %v1648_v7  ;;  %vm1676_vm15 = vcmp.eq.f32.partialorder %v1675_v11, 8.507059e+37 }
 0x4d8   :  { %v2114_v59 = vpop.eup %2113 }
 0x4d9   :  { %v2116_v23 = vpop.eup %2115  ;;  %v1650_v19 = vadd.f32 %v2112_v46, %v1649_v48  ;;  %v1628_v38 = vmul.f32 %v2114_v59, %v1626_v24  ;;  %vm1633_vm7 = vweird.f32 %v2114_v59  ;;  %v1920_v24 = vld [vmem:[#allocation7 + $0x28] sm:$0xff]  ;;  %v1918_v48 = vld [vmem:[#allocation7 + $0x18] sm:$0xff] }
 0x4da   :  { %v1667_v41 = vmul.f32 %v2116_v23, %v1665_v62  ;;  %vm1634_vm10 = vmor %vm1632_vm9, %vm1633_vm7  ;;  %v2118_v29 = vpop.eup %2117  ;;  %vm1672_vm12 = vweird.f32 %v2116_v23 }
 0x4db   :  { %v1629_v51 = vsub.f32 1.0, %v1628_v38  ;;  %v1654_v45 = vsel %vm1653_vm6, %v2112_v46, %v1650_v19  ;;  %vm1673_vm14 = vmor %vm1671_vm13, %vm1672_vm12  ;;  %v1915_v19 = vld [vmem:[#allocation7] sm:$0xff] }
 0x4dc   :  { %v1668_v60 = vsub.f32 1.0, %v1667_v41  ;;  %v1659_v36 = vsel %vm1656_vm8, %v1658_v2, %v1654_v45 }
 0x4dd   :  { %v1630_v13 = vmul.f32 %v2114_v59, %v1629_v51  ;;  %v1681_v5 = vmul.f32 %v1659_v36, %v4269_v8  ;;  %v1930_v8 = vld [vmem:[#allocation7 + $0x78] sm:$0xff] }
 0x4de   :  { %v1669_v43 = vmul.f32 %v2116_v23, %v1668_v60  ;;  %1935 = vmatpush.msra.mxu3 %v1930_v8 }
 0x4df   :  { %v1631_v32 = vadd.f32 %v2114_v59, %v1630_v13 }
 0x4e0   :  { %v1670_v10 = vadd.f32 %v2116_v23, %v1669_v43  ;;  %v1725_v53 = vpop.f32.mrf.mxu0  ;;  %1936 = vmatpush.msra.mxu3 %v1929_v31 }
 0x4e1   :  { %v1635_v14 = vsel %vm1634_vm10, %v2114_v59, %v1631_v32  ;;  %v1726_v18 = vadd.f32 %v1725_v53, %v5057_v17 }
 0x4e2   :  { %v1640_v3 = vsel %vm1637_vm11, %v1639_v57, %v1635_v14  ;;  %v1674_v26 = vsel %vm1673_vm14, %v2116_v23, %v1670_v10  ;;  %1937 = vmatpush.msra.mxu3 %v1928_v21  ;;  %v1916_v23 = vld [vmem:[#allocation7 + $0x8] sm:$0xff] }
 0x4e3   :  { %v1682_v50 = vmul.f32 %v2118_v29, %v1640_v3  ;;  %v1679_v55 = vsel %vm1676_vm15, %v1678_v9, %v1674_v26 }
 0x4e4   :  { %1938 = vmatpush.msra.mxu3 %v1927_v15 }
 0x4e5   :  { %v4286_v4 = vadd.f32 %v1682_v50, %v1681_v5 }
 0x4e6   :  { %v1705_v56 = vpop.f32.mrf.mxu3  ;;  %1939 = vmatpush.msra.mxu3 %v1926_v12 }
 0x4e7   :  { %2119 = vtanh.f32 %v4286_v4  ;;  %v1765_v22 = vpop.f32.mrf.mxu2  ;;  %v1706_v35 = vadd.f32 %v1705_v56, %v4777_v34  ;;  %v1745_v34 = vpop.f32.mrf.mxu1 }
 0x4e8   :  { %1940 = vmatpush.msra.mxu3 %v1925_v33  ;;  %v1766_v54 = vadd.f32 %v1765_v22, %v4776_v37  ;;  %v1746_v45 = vadd.f32 %v1745_v34, %v4919_v44 }
 0x4ea   :  { %1941 = vmatpush.msra.mxu3 %v1924_v1 }
 0x4ec   :  { %1942 = vmatpush.msra.mxu3 %v1923_v27 }
 0x4ed   :  { %v2120_v20 = vpop.eup %2119 }
 0x4ee   :  { %v1685_v6 = vmul.f32 %v2120_v20, %v1679_v55  ;;  %1943 = vmatpush.msra.mxu3 %v1922_v39 }
 0x4f0   :  { %1784 = vmatmul.f32.vlgmr.msrb.gmra.mxu3 %v1685_v6  ;;  %1804 = vmatmul.f32.vlgmr.msra.gmra.mxu0 %v1685_v6 }
 0x4f1   :  { %1824 = vmatmul.f32.vlgmr.msra.gmra.mxu1 %v1685_v6  ;;  %1844 = vmatmul.f32.vlgmr.msra.gmra.mxu2 %v1685_v6 }
 0x4f2   :  { %1944 = vmatpush.msra.mxu3 %v1921_v0 }
 0x4f4   :  { %1945 = vmatpush.msra.mxu3 %v1920_v24 }
 0x4f6   :  { %1946 = vmatpush.msra.mxu3 %v1919_v42 }
 0x4f8   :  { %1947 = vmatpush.msra.mxu3 %v1918_v48 }
 0x4fa   :  { %1948 = vmatpush.msra.mxu3 %v1917_v16 }
 0x4fc   :  { %1949 = vmatpush.msra.mxu3 %v1916_v23 }
 0x4fe   :  { %1950 = vmatpush.msra.mxu3 %v1915_v19 }
 0x56d   :  { %v1805_v63 = vpop.f32.mrf.mxu0 }
 0x56e   :  { %v1849_v47 = vadd.f32 %v1805_v63, %v1726_v18  ;;  %v1825_v61 = vpop.f32.mrf.mxu1 }
 0x56f   :  { %v1850_v32 = vadd.f32 %v1825_v61, %v1746_v45 }
 0x570   :  { %v2002_v40 = vmul.f32 -1.442695, %v1849_v47 }
 0x572   :  { %2121 = vpow2.f32 %v2002_v40 }
 0x573   :  { %v1785_v17 = vpop.f32.mrf.mxu3 }
 0x574   :  { %v1848_v62 = vadd.f32 %v1785_v17, %v1706_v35  ;;  %v1845_v46 = vpop.f32.mrf.mxu2 }
 0x575   :  { %v1851_v52 = vadd.f32 %v1845_v46, %v1766_v54 }
 0x576   :  { %v2001_v7 = vmul.f32 -1.442695, %v1848_v62 }
 0x577   :  { %v2003_v58 = vmul.f32 -1.442695, %v1851_v52 }
 0x578   :  { %v2122_v59 = vpop.eup %2121  ;;  %2123 = vpow2.f32 %v2001_v7 }
 0x579   :  { %v1874_v37 = vadd.f32 1.0, %v2122_v59  ;;  %2125 = vpow2.f32 %v2003_v58 }
 0x57b   :  { %2127 = vrcp.f32 %v1874_v37  ;;  %v1886_v29 = vand.u32 2147483648, %v1874_v37  ;;  %vm1880_vm1 = vweird.f32 %v1874_v37  ;;  %v1884_v43 = vand.u32 2147483647, %v1874_v37 }
 0x57d   :  { %v1887_v11 = vor.u32 1.1754944e-38, %v1886_v29  ;;  %vm1885_vm4 = vcmp.eq.f32.partialorder %v1884_v43, 8.507059e+37 }
 0x57e   :  { %v2124_v38 = vpop.eup %2123 }
 0x57f   :  { %v2126_v49 = vpop.eup %2125  ;;  %v1855_v41 = vadd.f32 1.0, %v2124_v38 }
 0x580   :  { %v1894_v30 = vadd.f32 1.0, %v2126_v49 }
 0x581   :  { %v2128_v51 = vpop.eup %2127  ;;  %2129 = vrcp.f32 %v1855_v41  ;;  %v1867_v50 = vand.u32 2147483648, %v1855_v41  ;;  %v1865_v44 = vand.u32 2147483647, %v1855_v41  ;;  %vm1861_vm5 = vweird.f32 %v1855_v41 }
 0x582   :  { %v1876_v25 = vmul.f32 %v2128_v51, %v1874_v37  ;;  %2131 = vrcp.f32 %v1894_v30  ;;  %vm1881_vm0 = vweird.f32 %v2128_v51  ;;  %v1906_v18 = vand.u32 2147483648, %v1894_v30 }
 0x583   :  { %vm1882_vm2 = vmor %vm1880_vm1, %vm1881_vm0  ;;  %2133 = vtanh.f32 %v1850_v32  ;;  %v1868_v20 = vor.u32 1.1754944e-38, %v1867_v50  ;;  %vm1866_vm7 = vcmp.eq.f32.partialorder %v1865_v44, 8.507059e+37  ;;  %vm1900_vm9 = vweird.f32 %v1894_v30 }
 0x584   :  { %v1877_v13 = vsub.f32 1.0, %v1876_v25  ;;  %v1904_v22 = vand.u32 2147483647, %v1894_v30  ;;  %v1907_v63 = vor.u32 1.1754944e-38, %v1906_v18 }
 0x586   :  { %v1878_v2 = vmul.f32 %v2128_v51, %v1877_v13  ;;  %vm1905_vm11 = vcmp.eq.f32.partialorder %v1904_v22, 8.507059e+37 }
 0x587   :  { %v2130_v60 = vpop.eup %2129 }
 0x588   :  { %v2132_v36 = vpop.eup %2131  ;;  %v1879_v57 = vadd.f32 %v2128_v51, %v1878_v2  ;;  %v1857_v14 = vmul.f32 %v2130_v60, %v1855_v41  ;;  %vm1862_vm3 = vweird.f32 %v2130_v60 }
 0x589   :  { %v1896_v3 = vmul.f32 %v2132_v36, %v1894_v30  ;;  %vm1863_vm6 = vmor %vm1861_vm5, %vm1862_vm3  ;;  %v2134_v8 = vpop.eup %2133  ;;  %vm1901_vm8 = vweird.f32 %v2132_v36 }
 0x58a   :  { %v1858_v5 = vsub.f32 1.0, %v1857_v14  ;;  %v1883_v10 = vsel %vm1882_vm2, %v2128_v51, %v1879_v57  ;;  %vm1902_vm10 = vmor %vm1900_vm9, %vm1901_vm8 }
 0x58b   :  { %v1897_v26 = vsub.f32 1.0, %v1896_v3  ;;  %v1888_v55 = vsel %vm1885_vm4, %v1887_v11, %v1883_v10 }
 0x58c   :  { %v1859_v28 = vmul.f32 %v2130_v60, %v1858_v5  ;;  %v1910_v21 = vmul.f32 %v1888_v55, %v4286_v4  ;;  %v2012_v4 = vld [vmem:[%s4305_s5] ss:$0 sm:$0xff] }
 0x58d   :  { %v1898_v31 = vmul.f32 %v2132_v36, %v1897_v26 }
 0x58e   :  { %v1860_v9 = vadd.f32 %v2130_v60, %v1859_v28 }
 0x58f   :  { %v1899_v12 = vadd.f32 %v2132_v36, %v1898_v31 }
 0x590   :  { %v1864_v6 = vsel %vm1863_vm6, %v2130_v60, %v1860_v9 }
 0x591   :  { %v1869_v53 = vsel %vm1866_vm7, %v1868_v20, %v1864_v6  ;;  %v1903_v33 = vsel %vm1902_vm10, %v2132_v36, %v1899_v12 }
 0x592   :  { %v1911_v15 = vmul.f32 %v2134_v8, %v1869_v53  ;;  %v1908_v47 = vsel %vm1905_vm11, %v1907_v63, %v1903_v33 }
 0x594   :  { %v1912_v56 = vadd.f32 %v1911_v15, %v1910_v21 }
 0x596   :  { %2135 = vtanh.f32 %v1912_v56 }
 0x59c   :  { %v2136_v1 = vpop.eup %2135 }
 0x59d   :  { %v1914_v27 = vmul.f32 %v2136_v1, %v1908_v47 }
 0x59f   :  { %1951 = vmatmul.f32.vlgmr.msra.gmra.mxu3 %v1914_v27 }
 0x622   :  { %v1952_v40 = vpop.f32.mrf.mxu3 }
 0x623   :  { %v1953_v39 = vadd.f32 %v2012_v4, %v1952_v40 }
 0x625   :  { %1955 = vst [vmem:[#allocation8] sm:$0x3] %v1953_v39 }
 0x626   :  { %1966 = dma.vmem_to_hbm [thread:$0]  %s1962_s8, 32, %s1964_s11, [#allocation4]  }
 0x627   :  { %2493 = dma.done.wait [#allocation4], 32  }
 0x628   :  { %2494 = vsyncadd [#allocation4], 4294967264 }
 0x629   :  { %1971 = vsyncpa [#allocation3], 1 }
 0x62a   :  { %1972 = vsyncpa [#allocation6], 1 }
 0x62b   :  { %1973 = vsyncpa [#allocation4], 1 }

</bundles_post_ra>
